<compile_context>
chip_gen: v5e
topology: v5e:2x2
jax: 0.10.0
libtpu: 0.0.40
codegen_flags: <defaults>
</compile_context>

<pallas_src>
import jax
import jax.numpy as jnp
from jax.experimental import pallas as pl
from jax.experimental.pallas import tpu as pltpu


# Largest bf16 adjacency kept fully resident in VMEM (v7x-safe: 64 MiB
# physical per TensorCore).  N_pad <= 4096.
# TODO(synk): raise toward ~96 MiB on v5e/v6e (128 MiB physical VMEM).
_RESIDENT_ADJ_BYTES = 32 << 20


def _round_up(x, m):
    return (x + m - 1) // m * m


# ---------------------------------------------------------------------------
# Fused kernel: adjacency resident in VMEM, read from HBM exactly once.
#   grid = (2, num_row_tiles)
#   phase 0, row tile i: DMA adjacency row-block i (prefetch i+1), compute
#                        hw[i] = relu(A[i] @ xw + b1) @ [W_mu|W_log]
#   phase 1, row tile i: out[i] = A[i] @ hw + [b_mu|b_log]  (A from VMEM)
# ---------------------------------------------------------------------------

def _fused_resident_kernel(xw_ref, b1_ref, wcat_ref, bcat_ref, adj_hbm,
                           out_ref, adj_vmem, hw_vmem, sem):
    phase = pl.program_id(0)
    i = pl.program_id(1)
    n_row_tiles = pl.num_programs(1)
    tm = out_ref.shape[0]

    def adj_copy(blk):
        return pltpu.make_async_copy(
            adj_hbm.at[pl.ds(blk * tm, tm), :],
            adj_vmem.at[blk],
            sem.at[blk % 2])

    @pl.when((phase == 0) & (i == 0))
    def _():
        adj_copy(0).start()

    @pl.when(phase == 0)
    def _():
        adj_copy(i).wait()

        @pl.when(i + 1 < n_row_tiles)
        def _():
            adj_copy(i + 1).start()           # overlap next row-block DMA

        a = adj_vmem[i]                        # (tm, n_pad) bf16
        s = jnp.dot(a, xw_ref[...], preferred_element_type=jnp.float32)
        h = jnp.maximum(s + b1_ref[...], 0.0)  # f32 epilogue
        hw = jnp.dot(h.astype(jnp.bfloat16), wcat_ref[...],
                     preferred_element_type=jnp.float32)
        row0 = pl.multiple_of(i * tm, tm)
        hw_vmem[pl.ds(row0, tm), :] = hw.astype(hw_vmem.dtype)

    @pl.when(phase == 1)
    def _():
        a = adj_vmem[i]                        # resident, no HBM re-read
        acc = jnp.dot(a, hw_vmem[...], preferred_element_type=jnp.float32)
        out_ref[...] = (acc + bcat_ref[...]).astype(out_ref.dtype)


def _gcn_fused_resident(adj, xw, b1p, wcatp, bcatp, n_pad, tm, hp, wp):
    n_row_tiles = n_pad // tm

    vmem_need = (n_pad * n_pad * 2              # resident adjacency scratch
                 + n_pad * wp * 2               # resident hw slab
                 + 2 * n_pad * hp * 2           # xw input (double buffered)
                 + 2 * tm * wp * 4              # out tile (double buffered)
                 + 2 * (hp * wp * 2 + hp * 4 + wp * 4))
    vmem_limit = int(min(vmem_need + (8 << 20), 60 << 20))

    def full_spec(shape):
        return pl.BlockSpec(shape, lambda p, i: (0,) * len(shape))

    out = pl.pallas_call(
        _fused_resident_kernel,
        grid=(2, n_row_tiles),
        in_specs=[
            full_spec((n_pad, hp)),               # xw = x @ W1 (bf16)
            full_spec((1, hp)),                   # b1 (f32)
            full_spec((hp, wp)),                  # [W_mu | W_log] (bf16)
            full_spec((1, wp)),                   # [b_mu | b_log] (f32)
            pl.BlockSpec(memory_space=pl.ANY),    # adjacency stays in HBM
        ],
        # phase 0 parks the output index at block 0 (no garbage writebacks);
        # phase 1 visits block i and writes the real result.
        out_specs=pl.BlockSpec((tm, wp), lambda p, i: (p * i, 0)),
        out_shape=jax.ShapeDtypeStruct((n_pad, wp), jnp.float32),
        scratch_shapes=[
            pltpu.VMEM((n_row_tiles, tm, n_pad), jnp.bfloat16),  # resident A
            pltpu.VMEM((n_pad, wp), jnp.bfloat16),               # resident hw
            pltpu.SemaphoreType.DMA((2,)),
        ],
        compiler_params=pltpu.CompilerParams(
            # Both axes "arbitrary": phase 1 needs every hw row produced by
            # phase 0 in this core's VMEM scratch (no cross-core sharding).
            dimension_semantics=("arbitrary", "arbitrary"),
            vmem_limit_bytes=vmem_limit),
        cost_estimate=pl.CostEstimate(
            flops=2 * n_pad * n_pad * (hp + wp) + 2 * n_pad * hp * wp,
            transcendentals=0,
            bytes_accessed=(n_pad * n_pad * 2 + n_pad * hp * 2
                            + n_pad * wp * 4 + hp * wp * 2)),
    )(xw, b1p, wcatp, bcatp, adj)
    return out


# ---------------------------------------------------------------------------
# Streamed fallback: adjacency tiled (tm, tk) with a K grid axis and an f32
# VMEM accumulator (used when A_hat does not fit VMEM).
# ---------------------------------------------------------------------------

def _stream_conv1_kernel(adj_ref, xw_ref, b1_ref, wcat_ref, hw_ref, acc_ref):
    k = pl.program_id(1)

    @pl.when(k == 0)
    def _():
        acc_ref[...] = jnp.zeros_like(acc_ref)

    acc_ref[...] += jnp.dot(adj_ref[...], xw_ref[...],
                            preferred_element_type=jnp.float32)

    @pl.when(k == pl.num_programs(1) - 1)
    def _():
        h = jnp.maximum(acc_ref[...] + b1_ref[...], 0.0)
        hw_ref[...] = jnp.dot(h.astype(jnp.bfloat16), wcat_ref[...],
                              preferred_element_type=jnp.float32
                              ).astype(hw_ref.dtype)


def _stream_conv2_kernel(adj_ref, hw_ref, bcat_ref, out_ref, acc_ref):
    k = pl.program_id(1)

    @pl.when(k == 0)
    def _():
        acc_ref[...] = jnp.zeros_like(acc_ref)

    acc_ref[...] += jnp.dot(adj_ref[...], hw_ref[...],
                            preferred_element_type=jnp.float32)

    @pl.when(k == pl.num_programs(1) - 1)
    def _():
        out_ref[...] = (acc_ref[...] + bcat_ref[...]).astype(out_ref.dtype)


def _gcn_streamed(adj, xw, b1p, wcatp, bcatp, n_pad, tm, tk, hp, wp):
    grid = (n_pad // tm, n_pad // tk)
    cparams = pltpu.CompilerParams(
        dimension_semantics=("parallel", "arbitrary"),
        vmem_limit_bytes=32 << 20)

    hw = pl.pallas_call(
        _stream_conv1_kernel,
        grid=grid,
        in_specs=[
            pl.BlockSpec((tm, tk), lambda i, k: (i, k)),
            pl.BlockSpec((tk, hp), lambda i, k: (k, 0)),
            pl.BlockSpec((1, hp), lambda i, k: (0, 0)),
            pl.BlockSpec((hp, wp), lambda i, k: (0, 0)),
        ],
        out_specs=pl.BlockSpec((tm, wp), lambda i, k: (i, 0)),
        out_shape=jax.ShapeDtypeStruct((n_pad, wp), jnp.bfloat16),
        scratch_shapes=[pltpu.VMEM((tm, hp), jnp.float32)],
        compiler_params=cparams,
    )(adj, xw, b1p, wcatp)

    out = pl.pallas_call(
        _stream_conv2_kernel,
        grid=grid,
        in_specs=[
            pl.BlockSpec((tm, tk), lambda i, k: (i, k)),
            pl.BlockSpec((tk, wp), lambda i, k: (k, 0)),
            pl.BlockSpec((1, wp), lambda i, k: (0, 0)),
        ],
        out_specs=pl.BlockSpec((tm, wp), lambda i, k: (i, 0)),
        out_shape=jax.ShapeDtypeStruct((n_pad, wp), jnp.float32),
        scratch_shapes=[pltpu.VMEM((tm, wp), jnp.float32)],
        compiler_params=cparams,
    )(adj, hw, bcatp)
    return out


# ---------------------------------------------------------------------------
# Wrapper (module forward): mu, log = GCNencoder(x, edge_index)
# ---------------------------------------------------------------------------

def gcn_encoder(adj_hat, x, w1, b1, wmu, bmu, wlog, blog, *,
                force_streaming=False):
    n = x.shape[0]
    hidden = w1.shape[1]
    out_channels = wmu.shape[1]

    hp = _round_up(hidden, 128)              # padded hidden lane width
    wp = _round_up(2 * out_channels, 128)    # padded merged-head lane width

    f32 = jnp.float32
    # Zero-pad narrow feature dims to 128 lanes (numerically exact).
    w1p = jnp.zeros((w1.shape[0], hp), f32).at[:, :hidden].set(w1)
    b1p = jnp.zeros((1, hp), f32).at[:, :hidden].set(b1.reshape(1, -1))
    wcat = jnp.zeros((hp, wp), f32)
    wcat = wcat.at[:hidden, :out_channels].set(wmu)
    wcat = wcat.at[:hidden, out_channels:2 * out_channels].set(wlog)
    bcat = jnp.zeros((1, wp), f32)
    bcat = bcat.at[:, :out_channels].set(bmu.reshape(1, -1))
    bcat = bcat.at[:, out_channels:2 * out_channels].set(blog.reshape(1, -1))

    # bf16 MXU operands; adjacency should already arrive as bf16 (no extra
    # N^2 cast pass), biases stay f32 for the f32 epilogue.
    adj = adj_hat if adj_hat.dtype == jnp.bfloat16 else adj_hat.astype(jnp.bfloat16)
    wcat_bf = wcat.astype(jnp.bfloat16)

    # Trivial feature transform x @ W1: left to XLA.
    xw = jnp.dot(x.astype(jnp.bfloat16), w1p.astype(jnp.bfloat16),
                 preferred_element_type=jnp.float32).astype(jnp.bfloat16)

    tm_res = min(256, _round_up(n, 16))
    n_pad_res = _round_up(n, tm_res)
    use_resident = (not force_streaming
                    and n_pad_res * n_pad_res * 2 <= _RESIDENT_ADJ_BYTES)

    if use_resident:
        n_pad, tm, tk = n_pad_res, tm_res, None
    else:
        tm, tk = 256, 512
        n_pad = _round_up(n, tk)

    pad = n_pad - n
    if pad:  # padded adj rows/cols are zero -> padded outputs never leak back
        adj = jnp.pad(adj, ((0, pad), (0, pad)))
        xw = jnp.pad(xw, ((0, pad), (0, 0)))

    if use_resident:
        out = _gcn_fused_resident(adj, xw, b1p, wcat_bf, bcat, n_pad, tm, hp, wp)
    else:
        out = _gcn_streamed(adj, xw, b1p, wcat_bf, bcat, n_pad, tm, tk, hp, wp)

    mu = out[:n, :out_channels]
    log = out[:n, out_channels:2 * out_channels]
    return mu, log


# ---------------------------------------------------------------------------
# Glue: dense GCN normalization (PyG gcn_norm, dense form), bf16 at source
# ---------------------------------------------------------------------------

def build_normalized_adjacency(edge_index, num_nodes, dtype=jnp.bfloat16):
    """A_hat = D^{-1/2} (A + I) D^{-1/2}, produced directly in `dtype`."""
    src, dst = edge_index[0], edge_index[1]
    a = jnp.zeros((num_nodes, num_nodes), jnp.float32)
    a = a.at[dst, src].add(1.0)                     # row i aggregates j -> i
    a = a + jnp.eye(num_nodes, dtype=jnp.float32)   # add_self_loops
    deg = a.sum(axis=1)
    d_inv_sqrt = jnp.where(deg > 0.0, jax.lax.rsqrt(deg), 0.0)
    a_hat = d_inv_sqrt[:, None] * a * d_inv_sqrt[None, :]
    return a_hat.astype(dtype)


# ---------------------------------------------------------------------------
# Demo / correctness check
# ---------------------------------------------------------------------------

if __name__ == "__main__":
    key = jax.random.PRNGKey(0)

    num_nodes = 1024
    num_edges = 2048
    in_channels = 32
    out_channels = 16
    hidden = 2 * out_channels

    k_x, k_e0, k_e1, k_w1, k_wm, k_wl = jax.random.split(key, 6)

    x = jax.random.normal(k_x, (num_nodes, in_channels), jnp.float32)
    src = jax.random.randint(k_e0, (num_edges,), 0, num_nodes)
    dst = jax.random.randint(k_e1, (num_edges,), 0, num_nodes)
    # undirected: edge_index contains both directions (PyG convention)
    edge_index = jnp.stack([jnp.concatenate([src, dst]),
                            jnp.concatenate([dst, src])])

    adj_hat = build_normalized_adjacency(edge_index, num_nodes)  # bf16 at source

    def glorot(k, fan_in, fan_out):
        s = jnp.sqrt(6.0 / (fan_in + fan_out))
        return jax.random.uniform(k, (fan_in, fan_out), jnp.float32, -s, s)

    w1 = glorot(k_w1, in_channels, hidden)
    b1 = jnp.zeros((1, hidden), jnp.float32)
    wmu = glorot(k_wm, hidden, out_channels)
    bmu = jnp.zeros((1, out_channels), jnp.float32)
    wlog = glorot(k_wl, hidden, out_channels)
    blog = jnp.zeros((1, out_channels), jnp.float32)

    run = jax.jit(gcn_encoder, static_argnames=("force_streaming",))

    # Fused, adjacency-resident path (adjacency read from HBM exactly once).
    mu, log = run(adj_hat, x, w1, b1, wmu, bmu, wlog, blog)
    jax.block_until_ready((mu, log))

    # Streamed fallback path (row x K tiles, f32 accumulator) — exercised too.
    mu_s, log_s = run(adj_hat, x, w1, b1, wmu, bmu, wlog, blog,
                      force_streaming=True)
    jax.block_until_ready((mu_s, log_s))

    # Pure-JAX f32 reference on the same bf16-rounded adjacency values.
    adj32 = adj_hat.astype(jnp.float32)
    h_ref = jnp.maximum(adj32 @ (x @ w1) + b1, 0.0)
    mu_ref = adj32 @ (h_ref @ wmu) + bmu
    log_ref = adj32 @ (h_ref @ wlog) + blog

    assert mu.shape == (num_nodes, out_channels)
    assert log.shape == (num_nodes, out_channels)
    assert jnp.allclose(mu, mu_ref, atol=5e-2, rtol=5e-2), "mu mismatch (fused)"
    assert jnp.allclose(log, log_ref, atol=5e-2, rtol=5e-2), "log mismatch (fused)"
    assert jnp.allclose(mu_s, mu_ref, atol=5e-2, rtol=5e-2), "mu mismatch (streamed)"
    assert jnp.allclose(log_s, log_ref, atol=5e-2, rtol=5e-2), "log mismatch (streamed)"

    print("KERNEL_OK")
</pallas_src>

<mosaic_0001>
module attributes {stable_mosaic.version = 11 : i64} {
  func.func @_fused_resident_kernel(%arg0: i32, %arg1: i32, %arg2: memref<1024x128xbf16, #tpu.memory_space<vmem>>, %arg3: memref<1x128xf32, #tpu.memory_space<vmem>>, %arg4: memref<128x128xbf16, #tpu.memory_space<vmem>>, %arg5: memref<1x128xf32, #tpu.memory_space<vmem>>, %arg6: memref<1024x1024xbf16, #tpu.memory_space<any>>, %arg7: memref<256x128xf32, #tpu.memory_space<vmem>>, %arg8: memref<4x256x1024xbf16, #tpu.memory_space<vmem>>, %arg9: memref<1024x128xbf16, #tpu.memory_space<vmem>>, %arg10: memref<2x!tpu.dma_semaphore, #tpu.memory_space<semaphore_mem>>) attributes {dimension_semantics = [#tpu.dimension_semantics<arbitrary>, #tpu.dimension_semantics<arbitrary>], iteration_bounds = array<i64: 2, 4>, scalar_prefetch = 0 : i64, scratch_operands = 3 : i64, tpu.core_type = #tpu.core_type<tc>, window_params = [{pipeline_mode = #tpu.pipeline_mode<synchronous>, transform_indices = @transform_0, window_bounds = array<i64: 1024, 128>}, {pipeline_mode = #tpu.pipeline_mode<synchronous>, transform_indices = @transform_1, window_bounds = array<i64: 1, 128>}, {pipeline_mode = #tpu.pipeline_mode<synchronous>, transform_indices = @transform_2, window_bounds = array<i64: 128, 128>}, {pipeline_mode = #tpu.pipeline_mode<synchronous>, transform_indices = @transform_3, window_bounds = array<i64: 1, 128>}, {}, {transform_indices = @transform_5, window_bounds = array<i64: 256, 128>}]} {
    %c0_i32 = arith.constant 0 : i32
    %0 = arith.cmpi eq, %arg0, %c0_i32 : i32
    %c0_i32_0 = arith.constant 0 : i32
    %1 = arith.cmpi eq, %arg1, %c0_i32_0 : i32
    %2 = arith.andi %0, %1 : i1
    %3 = arith.extui %2 : i1 to i32
    %c0_i32_1 = arith.constant 0 : i32
    %4 = arith.cmpi ne, %3, %c0_i32_1 : i32
    scf.if %4 {
      %c0_i32_5 = arith.constant 0 : i32
      %c0_i32_6 = arith.constant 0 : i32
      %c0_i32_7 = arith.constant 0 : i32
      %c0_i32_8 = arith.constant 0 : i32
      %11 = tpu.memref_slice %arg6[%c0_i32_7, %c0_i32_8] : memref<1024x1024xbf16, #tpu.memory_space<any>> -> memref<256x1024xbf16, #tpu.memory_space<any>>
      %c0_i32_9 = arith.constant 0 : i32
      %c0_i32_10 = arith.constant 0 : i32
      %12 = tpu.memref_slice %arg8[%c0_i32_5, %c0_i32_9, %c0_i32_10] : memref<4x256x1024xbf16, #tpu.memory_space<vmem>> -> memref<1x256x1024xbf16, #tpu.memory_space<vmem>>
      %13 = tpu.memref_squeeze %12 : memref<1x256x1024xbf16, #tpu.memory_space<vmem>> -> memref<256x1024xbf16, #tpu.memory_space<vmem>>
      %14 = tpu.memref_slice %arg10[%c0_i32_6] : memref<2x!tpu.dma_semaphore, #tpu.memory_space<semaphore_mem>> -> memref<1x!tpu.dma_semaphore, #tpu.memory_space<semaphore_mem>>
      %15 = tpu.memref_squeeze %14 : memref<1x!tpu.dma_semaphore, #tpu.memory_space<semaphore_mem>> -> memref<!tpu.dma_semaphore, #tpu.memory_space<semaphore_mem>>
      tpu.enqueue_dma source(%11 : memref<256x1024xbf16, #tpu.memory_space<any>>) target(%13 : memref<256x1024xbf16, #tpu.memory_space<vmem>>) target_semaphore(%15 : memref<!tpu.dma_semaphore, #tpu.memory_space<semaphore_mem>>)
    } else {
    }
    %c0_i32_2 = arith.constant 0 : i32
    %5 = arith.cmpi eq, %arg0, %c0_i32_2 : i32
    %6 = arith.extui %5 : i1 to i32
    %c0_i32_3 = arith.constant 0 : i32
    %7 = arith.cmpi ne, %6, %c0_i32_3 : i32
    scf.if %7 {
      %c256_i32 = arith.constant 256 : i32
      %11 = arith.muli %arg1, %c256_i32 : i32
      %c2_i32 = arith.constant 2 : i32
      %c0_i32_5 = arith.constant 0 : i32
      %12 = arith.cmpi eq, %c2_i32, %c0_i32_5 : i32
      %c1_i32_6 = arith.constant 1 : i32
      %13 = arith.select %12, %c1_i32_6, %c2_i32 : i32
      %14 = arith.remsi %arg1, %13 : i32
      %c0_i32_7 = arith.constant 0 : i32
      %15 = arith.cmpi ne, %14, %c0_i32_7 : i32
      %c0_i32_8 = arith.constant 0 : i32
      %16 = arith.cmpi slt, %14, %c0_i32_8 : i32
      %c0_i32_9 = arith.constant 0 : i32
      %17 = arith.cmpi slt, %13, %c0_i32_9 : i32
      %18 = arith.xori %16, %17 : i1
      %19 = arith.andi %18, %15 : i1
      %20 = arith.addi %14, %13 : i32
      %21 = arith.select %19, %20, %14 : i32
      %c0_i32_10 = arith.constant 0 : i32
      %22 = tpu.memref_slice %arg6[%11, %c0_i32_10] : memref<1024x1024xbf16, #tpu.memory_space<any>> -> memref<256x1024xbf16, #tpu.memory_space<any>>
      %c0_i32_11 = arith.constant 0 : i32
      %c0_i32_12 = arith.constant 0 : i32
      %23 = tpu.memref_slice %arg8[%arg1, %c0_i32_11, %c0_i32_12] : memref<4x256x1024xbf16, #tpu.memory_space<vmem>> -> memref<1x256x1024xbf16, #tpu.memory_space<vmem>>
      %24 = tpu.memref_squeeze %23 : memref<1x256x1024xbf16, #tpu.memory_space<vmem>> -> memref<256x1024xbf16, #tpu.memory_space<vmem>>
      %25 = tpu.memref_slice %arg10[%21] : memref<2x!tpu.dma_semaphore, #tpu.memory_space<semaphore_mem>> -> memref<1x!tpu.dma_semaphore, #tpu.memory_space<semaphore_mem>>
      %26 = tpu.memref_squeeze %25 : memref<1x!tpu.dma_semaphore, #tpu.memory_space<semaphore_mem>> -> memref<!tpu.dma_semaphore, #tpu.memory_space<semaphore_mem>>
      tpu.wait_dma2 semaphore(%26 : memref<!tpu.dma_semaphore, #tpu.memory_space<semaphore_mem>>) src(%22 : memref<256x1024xbf16, #tpu.memory_space<any>>) dst(%24 : memref<256x1024xbf16, #tpu.memory_space<vmem>>)
      %c1_i32_13 = arith.constant 1 : i32
      %27 = arith.addi %arg1, %c1_i32_13 : i32
      %c4_i32 = arith.constant 4 : i32
      %28 = arith.cmpi slt, %27, %c4_i32 : i32
      %29 = arith.extui %28 : i1 to i32
      %c0_i32_14 = arith.constant 0 : i32
      %30 = arith.cmpi ne, %29, %c0_i32_14 : i32
      scf.if %30 {
        %c1_i32_26 = arith.constant 1 : i32
        %49 = arith.addi %arg1, %c1_i32_26 : i32
        %c256_i32_27 = arith.constant 256 : i32
        %50 = arith.muli %49, %c256_i32_27 : i32
        %c2_i32_28 = arith.constant 2 : i32
        %c0_i32_29 = arith.constant 0 : i32
        %51 = arith.cmpi eq, %c2_i32_28, %c0_i32_29 : i32
        %c1_i32_30 = arith.constant 1 : i32
        %52 = arith.select %51, %c1_i32_30, %c2_i32_28 : i32
        %53 = arith.remsi %49, %52 : i32
        %c0_i32_31 = arith.constant 0 : i32
        %54 = arith.cmpi ne, %53, %c0_i32_31 : i32
        %c0_i32_32 = arith.constant 0 : i32
        %55 = arith.cmpi slt, %53, %c0_i32_32 : i32
        %c0_i32_33 = arith.constant 0 : i32
        %56 = arith.cmpi slt, %52, %c0_i32_33 : i32
        %57 = arith.xori %55, %56 : i1
        %58 = arith.andi %57, %54 : i1
        %59 = arith.addi %53, %52 : i32
        %60 = arith.select %58, %59, %53 : i32
        %c0_i32_34 = arith.constant 0 : i32
        %61 = tpu.memref_slice %arg6[%50, %c0_i32_34] : memref<1024x1024xbf16, #tpu.memory_space<any>> -> memref<256x1024xbf16, #tpu.memory_space<any>>
        %c0_i32_35 = arith.constant 0 : i32
        %c0_i32_36 = arith.constant 0 : i32
        %62 = tpu.memref_slice %arg8[%49, %c0_i32_35, %c0_i32_36] : memref<4x256x1024xbf16, #tpu.memory_space<vmem>> -> memref<1x256x1024xbf16, #tpu.memory_space<vmem>>
        %63 = tpu.memref_squeeze %62 : memref<1x256x1024xbf16, #tpu.memory_space<vmem>> -> memref<256x1024xbf16, #tpu.memory_space<vmem>>
        %64 = tpu.memref_slice %arg10[%60] : memref<2x!tpu.dma_semaphore, #tpu.memory_space<semaphore_mem>> -> memref<1x!tpu.dma_semaphore, #tpu.memory_space<semaphore_mem>>
        %65 = tpu.memref_squeeze %64 : memref<1x!tpu.dma_semaphore, #tpu.memory_space<semaphore_mem>> -> memref<!tpu.dma_semaphore, #tpu.memory_space<semaphore_mem>>
        tpu.enqueue_dma source(%61 : memref<256x1024xbf16, #tpu.memory_space<any>>) target(%63 : memref<256x1024xbf16, #tpu.memory_space<vmem>>) target_semaphore(%65 : memref<!tpu.dma_semaphore, #tpu.memory_space<semaphore_mem>>)
      } else {
      }
      %31 = arith.index_cast %arg1 : i32 to index
      %c0 = arith.constant 0 : index
      %c0_15 = arith.constant 0 : index
      %32 = vector.load %arg8[%31, %c0, %c0_15] : memref<4x256x1024xbf16, #tpu.memory_space<vmem>>, vector<1x256x1024xbf16>
      %33 = vector.shape_cast %32 : vector<1x256x1024xbf16> to vector<256x1024xbf16>
      %c0_16 = arith.constant 0 : index
      %c0_17 = arith.constant 0 : index
      %34 = vector.load %arg2[%c0_16, %c0_17] : memref<1024x128xbf16, #tpu.memory_space<vmem>>, vector<1024x128xbf16>
      %cst = arith.constant dense<0.000000e+00> : vector<256x128xf32>
      %35 = tpu.matmul %33, %34, %cst {dimension_numbers = #tpu.dot_dimension_numbers<[1], [0], [0], [1], [0, 0, 1, 1], [], []>} : vector<256x1024xbf16>, vector<1024x128xbf16>, vector<256x128xf32> -> vector<256x128xf32>
      %c0_18 = arith.constant 0 : index
      %c0_19 = arith.constant 0 : index
      %36 = vector.load %arg3[%c0_18, %c0_19] : memref<1x128xf32, #tpu.memory_space<vmem>>, vector<1x128xf32>
      %37 = vector.broadcast %36 : vector<1x128xf32> to vector<256x128xf32>
      %38 = arith.addf %35, %37 : vector<256x128xf32>
      %cst_20 = arith.constant 0.000000e+00 : f32
      %39 = vector.broadcast %cst_20 : f32 to vector<256x128xf32>
      %40 = arith.maximumf %38, %39 : vector<256x128xf32>
      %41 = arith.truncf %40 : vector<256x128xf32> to vector<256x128xbf16>
      %c0_21 = arith.constant 0 : index
      %c0_22 = arith.constant 0 : index
      %42 = vector.load %arg4[%c0_21, %c0_22] : memref<128x128xbf16, #tpu.memory_space<vmem>>, vector<128x128xbf16>
      %cst_23 = arith.constant dense<0.000000e+00> : vector<256x128xf32>
      %43 = tpu.matmul %41, %42, %cst_23 {dimension_numbers = #tpu.dot_dimension_numbers<[1], [0], [0], [1], [0, 0, 1, 1], [], []>} : vector<256x128xbf16>, vector<128x128xbf16>, vector<256x128xf32> -> vector<256x128xf32>
      %c256_i32_24 = arith.constant 256 : i32
      %44 = arith.muli %arg1, %c256_i32_24 : i32
      %45 = tpu.assume_multiple %44, 256 : i32
      %46 = arith.truncf %43 : vector<256x128xf32> to vector<256x128xbf16>
      %47 = arith.index_cast %45 : i32 to index
      %c0_25 = arith.constant 0 : index
      %48 = vector.load %arg9[%47, %c0_25] : memref<1024x128xbf16, #tpu.memory_space<vmem>>, vector<256x128xbf16>
      tpu.vector_store %arg9[%47, %c0_25], %46 {strides = array<i32>} : memref<1024x128xbf16, #tpu.memory_space<vmem>>, vector<256x128xbf16>,
    } else {
    }
    %c1_i32 = arith.constant 1 : i32
    %8 = arith.cmpi eq, %arg0, %c1_i32 : i32
    %9 = arith.extui %8 : i1 to i32
    %c0_i32_4 = arith.constant 0 : i32
    %10 = arith.cmpi ne, %9, %c0_i32_4 : i32
    scf.if %10 {
      %11 = arith.index_cast %arg1 : i32 to index
      %c0 = arith.constant 0 : index
      %c0_5 = arith.constant 0 : index
      %12 = vector.load %arg8[%11, %c0, %c0_5] : memref<4x256x1024xbf16, #tpu.memory_space<vmem>>, vector<1x256x1024xbf16>
      %13 = vector.shape_cast %12 : vector<1x256x1024xbf16> to vector<256x1024xbf16>
      %c0_6 = arith.constant 0 : index
      %c0_7 = arith.constant 0 : index
      %14 = vector.load %arg9[%c0_6, %c0_7] : memref<1024x128xbf16, #tpu.memory_space<vmem>>, vector<1024x128xbf16>
      %cst = arith.constant dense<0.000000e+00> : vector<256x128xf32>
      %15 = tpu.matmul %13, %14, %cst {dimension_numbers = #tpu.dot_dimension_numbers<[1], [0], [0], [1], [0, 0, 1, 1], [], []>} : vector<256x1024xbf16>, vector<1024x128xbf16>, vector<256x128xf32> -> vector<256x128xf32>
      %c0_8 = arith.constant 0 : index
      %c0_9 = arith.constant 0 : index
      %16 = vector.load %arg5[%c0_8, %c0_9] : memref<1x128xf32, #tpu.memory_space<vmem>>, vector<1x128xf32>
      %17 = vector.broadcast %16 : vector<1x128xf32> to vector<256x128xf32>
      %18 = arith.addf %15, %17 : vector<256x128xf32>
      %c0_10 = arith.constant 0 : index
      %c0_11 = arith.constant 0 : index
      %19 = vector.load %arg7[%c0_10, %c0_11] : memref<256x128xf32, #tpu.memory_space<vmem>>, vector<256x128xf32>
      tpu.vector_store %arg7[%c0_10, %c0_11], %18 {strides = array<i32>} : memref<256x128xf32, #tpu.memory_space<vmem>>, vector<256x128xf32>,
    } else {
    }
    return
  }
  func.func @transform_0(%arg0: i32, %arg1: i32) -> (i32, i32) {
    %c0_i32 = arith.constant 0 : i32
    %c0_i32_0 = arith.constant 0 : i32
    %c0_i32_1 = arith.constant 0 : i32
    return %c0_i32, %c0_i32_0 : i32, i32
  }
  func.func @transform_1(%arg0: i32, %arg1: i32) -> (i32, i32) {
    %c0_i32 = arith.constant 0 : i32
    %c0_i32_0 = arith.constant 0 : i32
    %c0_i32_1 = arith.constant 0 : i32
    return %c0_i32, %c0_i32_0 : i32, i32
  }
  func.func @transform_2(%arg0: i32, %arg1: i32) -> (i32, i32) {
    %c0_i32 = arith.constant 0 : i32
    %c0_i32_0 = arith.constant 0 : i32
    %c0_i32_1 = arith.constant 0 : i32
    return %c0_i32, %c0_i32_0 : i32, i32
  }
  func.func @transform_3(%arg0: i32, %arg1: i32) -> (i32, i32) {
    %c0_i32 = arith.constant 0 : i32
    %c0_i32_0 = arith.constant 0 : i32
    %c0_i32_1 = arith.constant 0 : i32
    return %c0_i32, %c0_i32_0 : i32, i32
  }
  func.func @transform_5(%arg0: i32, %arg1: i32) -> (i32, i32) {
    %0 = arith.muli %arg0, %arg1 : i32
    %c0_i32 = arith.constant 0 : i32
    %c0_i32_0 = arith.constant 0 : i32
    return %0, %c0_i32 : i32, i32
  }
}

</mosaic_0001>

<bundles_post_ra>
// kernel: gcn_encoder.1
= control target key start
LH: loop header
LB: loop body
LE: loop exit
PB: predicated region body
PF: predicated region fallthrough
CT: control target
= control target key end

     0   :  { %s6956_s18 = smov 0   ;;  %s6958_s19 = smov 0   ;;  %s8250_s0 = inlined_call_operand.vmem [shape: bf16[1024,128], index: 0, kind: input, shape index: {}]   ;;  %s8251_s1 = inlined_call_operand.vmem [shape: f32[1,128], index: 1, kind: input, shape index: {}]   ;;  %s8252_s2 = inlined_call_operand.vmem [shape: bf16[128,128], index: 2, kind: input, shape index: {}]   ;;  %s8253_s3 = inlined_call_operand.vmem [shape: f32[1,128], index: 3, kind: input, shape index: {}]   ;;  %s8254_s4 = inlined_call_operand.hbm [shape: bf16[1024,1024], index: 4, kind: input, shape index: {}]   ;;  %s8255_s5 = inlined_call_operand.vmem [shape: f32[1024,128], index: 5, kind: output, shape index: {}]  }
   0x1   :  { %s6960_s20 = smov 0   ;;  %s6962_s21 = smov 0  }
   0x2   :  { %s6964_s22 = smov 0  }
   0x3 LB: > { %s24_s23 = sadd.s32 1, %s6914_s20  ;;  %s27_s24 = sadd.s32 1, %s6918_s21  ;;  %s6922_s22 = sphi %s6964_s22, %s15_s22   ;;  %s6918_s21 = sphi %s6962_s21, %s8259_s21   ;;  %s6914_s20 = sphi %s6960_s20, %s8258_s20   ;;  %s6910_s19 = sphi %s6958_s19, %s8257_s19   ;;  %s6906_s18 = sphi %s6956_s18, %s8256_s18  }
   0x4   : > { %p25_p0 = scmp.ge.s32.totalorder %s24_s23, 4  ;;  %p4666_p1 = scmp.ge.s32.totalorder %s6922_s22, 1 }
   0x5   : > { %p167_p2 = scmp.lt.s32.totalorder %s6922_s22, 9 }
   0x6   : > { %s8261_s23 = smov (%p25_p0, %s24_s23), 0  ;;  %s8263_s24 = smov (!%p25_p0, %s27_s24), %s6918_s21 }
   0x7   : > { %p168_p3 = pnand %p4666_p1, %p167_p2  ;;  %p29_p4 = scmp.ge.s32.totalorder %s8263_s24, 2 }
   0x8   : > { %s189_s25 = smul.u32 (!%p168_p3), %s6906_s18, %s6910_s19  ;;  %p197_p5 = scmp.eq.s32.totalorder (!%p168_p3), %s6910_s19, 0 }
   0x9   : > { %s8265_s24 = smov (%p29_p4, %s8263_s24), 0  ;;  %171 = sbr.rel (%p168_p3) target bundleno = 1611 (0x64b), region = 36 }
   0xa   : > { %p198_p6 = scmp.eq.s32.totalorder (!%p168_p3), %s6906_s18, 0  ;;  %s210_s28 = sshll.u32 (!%p168_p3), %s8254_s4, 4  ;;  %s211_s28 = int_to_ptr.hbm [resolvable:$true] %s210_s28 }
   0xb   : > { %s4667_s29 = sshll.u32 (!%p168_p3), %s189_s25, 5  ;;  %s6924_s30 = smov (!%p168_p3), [#allocation2]  }
   0xc   : > { %p191_p7 = scmp.lt.s32.totalorder (!%p168_p3), %s4667_s29, 127  ;;  %p199_p8 = pnand (!%p168_p3), %p198_p6, %p197_p5 }
   0xd   : > { %s212_s6 = sshll.u32 (!%p168_p3), %s6924_s30, 4  ;;  %p4669_p9 = scmp.ne.s32.totalorder (!%p168_p3), %s6910_s19, 0  ;;  %s213_s6 = int_to_ptr.vmem [resolvable:$true] %s212_s6 }
   0xe   : > { %s8267_s29 = smov (!%p191_p7, %s4667_s29), 127  ;;  %s4670_s11 = sshll.u32 (!%p4669_p9), %s6906_s18, 8 }
   0xf   : > { %s4668_s7 = sshll.u32 %s8267_s29, 3  ;;  %218 = sbr.rel (%p4669_p9) target bundleno = 929 (0x3a1), region = 48 }
  0x10   : > { %s7000_s10 = scalar_lea.vmem %s8255_s5, %s4668_s7  ;;  %p220_p10 = scmp.lt.s32.totalorder (!%p4669_p9), %s6906_s18, 0 }
  0x11   : > { %6776 = dma.hbm_to_vmem [thread:$0]  (!%p199_p8), %s211_s28, 16384, %s213_s6, [#allocation4] }
  0x12   : > { %s221_s12 = ssub.s32 (!%p4669_p9), 0, %s6906_s18  ;;  %s6259_s13 = sshll.u32 (!%p4669_p9), %s6906_s18, 10 }
  0x13   : > { %s4671_s14 = smin.u32 (!%p4669_p9), %s6906_s18, %s221_s12  ;;  %s7008_s25 = scalar_lea.vmem (!%p4669_p9), [#allocation2], %s6259_s13 }
  0x14   : > { %s223_s15 = sand.u32 1, %s4671_s14  }
  0x15   : > { %s224_s16 = ssub.s32 0, %s223_s15 }
  0x16   : > { %s8269_s16 = smov (!%p220_p10, %s224_s16), %s223_s15 }
  0x17   : > { %p4673_p11 = scmp.lt.s32.totalorder %s8269_s16, 0  ;;  %s230_s17 = sadd.s32 2, %s8269_s16 }
  0x19   : > { %s8271_s17 = smov (!%p4673_p11, %s230_s17), %s8269_s16 }
  0x1a   : > { %s234_s26 = scalar_lea.sflag [#allocation4], %s8271_s17 }
  0x1b   : > { %6902 = dma.done.wait %s234_s26, 16384 }
  0x1c   : > { %6903 = vsyncadd %s234_s26, 4294950912  ;;  %s7011_s27 = sadd.s32 1, %s6906_s18  ;;  %s6261_s28 = sadd.s32 256, %s4670_s11  ;;  %v6398_v0 = vld [vmem:[%s8250_s0 + $0x38] sm:$0xff]  ;;  %v6397_v1 = vld [vmem:[%s8250_s0 + $0x30] sm:$0xff] }
  0x1d   : > { %p6779_p12 = scmp.lt.s32.totalorder %s7011_s27, 4  ;;  %p245_p13 = scmp.lt.s32.totalorder %s7011_s27, 0  ;;  %6751 = vmatpush.bf16.msra.mxu1 %v6398_v0  ;;  %6752 = vmatpush.bf16.msra.mxu2 %v6398_v0  ;;  %v6396_v2 = vld [vmem:[%s8250_s0 + $0x28] sm:$0xff] }
  0x1e   : > { %s246_s29 = ssub.s32 0, %s7011_s27  ;;  %s257_s6 = sshra.s32 %s6261_s28, 3  ;;  %6753 = vmatpush.bf16.msra.mxu3 %v6398_v0  ;;  %1562 = vmatpush.bf16.msra.mxu0 %v6398_v0 }
  0x1f   : > { %s4677_s30 = smin.u32 %s246_s29, %s7011_s27  ;;  %s6262_s8 = sshll.u32 %s257_s6, 5 }
  0x20   : > { %s248_s7 = sand.u32 1, %s4677_s30   ;;  %s261_s14 = scalar_lea.hbm %s8254_s4, %s6262_s8 }
  0x21   : > { %s249_s9 = ssub.s32 0, %s248_s7  ;;  %s4627_s17 = scalar_lea.vmem %s7008_s25, 1024 [#allocation2]  ;;  %6754 = vmatpush.bf16.msra.mxu1 %v6397_v1  ;;  %6755 = vmatpush.bf16.msra.mxu2 %v6397_v1 }
  0x22   : > { %s8273_s9 = smov (!%p245_p13, %s249_s9), %s248_s7  ;;  %s7026_s26 = sshll.u32 %s261_s14, 4  ;;  %s273_s26 = int_to_ptr.hbm [resolvable:$true] %s7026_s26 }
  0x23   : > { %p4679_p0 = scmp.lt.s32.totalorder %s8273_s9, 0  ;;  %s255_s29 = sadd.s32 2, %s8273_s9 }
  0x24   : > { %s7032_s6 = sshll.u32 %s4627_s17, 4  ;;  %s6854_s13 = sshra.s32 %s273_s26, 4  ;;  %s275_s6 = int_to_ptr.vmem [resolvable:$true] %s7032_s6  ;;  %s6855_s13 = int_to_ptr.hbm [resolvable:$true] %s6854_s13 }
  0x25   : > { %s8275_s29 = smov (!%p4679_p0, %s255_s29), %s8273_s9  ;;  %s6856_s14 = scalar_lea.hbm %s6855_s13, 1024 }
  0x26   : > { %s264_s12 = scalar_lea.sflag [#allocation4], %s8275_s29  ;;  %p6857_p1 = scmp.ne.s32.totalorder %s6855_s13, %s6856_s14 }
  0x27   : > { %s6860_s16 = scalar_lea.hbm %s8254_s4, 4096  ;;  %p6861_p4 = scmp.lt.s32.totalorder %s6855_s13, %s8254_s4 }
  0x28   : > { %p6858_p2 = pnand %p6857_p1, %p6779_p12  ;;  %p6862_p5 = scmp.lt.s32.totalorder %s6860_s16, %s6856_s14 }
  0x2a   : > { %p6859_p3 = pneg %p6858_p2  ;;  %p6863_p6 = por %p6862_p5, %p6861_p4 }
  0x2c   : > { %p6864_p7 = pnand %p6863_p6, %p6859_p3 }
  0x2e   : > { %6867 = shalt.err (!%p6864_p7)  }
  0x2f   : > { %s6868_s29 = sshra.s32 %s275_s6, 4  ;;  %s6925_s7 = smov [#allocation2]   ;;  %s6869_s29 = int_to_ptr.vmem [resolvable:$true] %s6868_s29 }
  0x30   : > { %s6870_s30 = scalar_lea.vmem %s6869_s29, 1024  ;;  %s6874_s8 = scalar_lea.vmem %s6925_s7, 4096 }
  0x31   : > { %p6871_p8 = scmp.ne.s32.totalorder %s6869_s29, %s6870_s30  ;;  %p6875_p11 = scmp.lt.s32.totalorder %s6869_s29, [#allocation2] }
  0x32   : > { %p6876_p13 = scmp.lt.s32.totalorder %s6874_s8, %s6870_s30 }
  0x33   : > { %p6872_p9 = pnand %p6871_p8, %p6779_p12 }
  0x34   : > { %p6877_p0 = por %p6876_p13, %p6875_p11 }
  0x35   : > { %p6873_p10 = pneg %p6872_p9 }
  0x37   : > { %p6878_p1 = pnand %p6877_p0, %p6873_p10 }
  0x39   : > { %6881 = shalt.err (!%p6878_p1)  }
  0x3a   : > { %6778 = dma.hbm_to_vmem [thread:$0]  (%p6779_p12), %s273_s26, 16384, %s275_s6, %s264_s12  ;;  %6756 = vmatpush.bf16.msra.mxu3 %v6397_v1  ;;  %1563 = vmatpush.bf16.msra.mxu0 %v6397_v1  ;;  %v6395_v3 = vld [vmem:[%s8250_s0 + $0x20] sm:$0xff]  ;;  %v6394_v4 = vld [vmem:[%s8250_s0 + $0x18] sm:$0xff]  ;;  %v6393_v5 = vld [vmem:[%s8250_s0 + $0x10] sm:$0xff] }
  0x3b   : > { %6757 = vmatpush.bf16.msra.mxu1 %v6396_v2  ;;  %6758 = vmatpush.bf16.msra.mxu2 %v6396_v2  ;;  %v6392_v6 = vld [vmem:[%s8250_s0 + $0x8] sm:$0xff]  ;;  %v6391_v7 = vld [vmem:[%s8250_s0] sm:$0xff]  ;;  %v6414_v14 = vld [vmem:[%s8250_s0 + $0xb8] sm:$0xff] }
  0x3c   : > { %v4813_v8 = vld [vmem:[%s7008_s25 + $0x100] sm:$0xf]  ;;  %v6422_v15 = vld [vmem:[%s8250_s0 + $0xf8] sm:$0xff]  ;;  %v6413_v22 = vld [vmem:[%s8250_s0 + $0xb0] sm:$0xff] }
  0x3d   : > { %v6299_v9 = vld [vmem:[%s7008_s25 + $0x11c] sm:$0xf0]  ;;  %v6406_v16 = vld [vmem:[%s8250_s0 + $0x78] sm:$0xff]  ;;  %v6421_v23 = vld [vmem:[%s8250_s0 + $0xf0] sm:$0xff] }
  0x3e   : > { %6759 = vmatpush.bf16.msra.mxu3 %v6396_v2  ;;  %1564 = vmatpush.bf16.msra.mxu0 %v6396_v2  ;;  %v4941_v10 = vld [vmem:[%s7008_s25 + $0x200] sm:$0xf]  ;;  %v4814_v17 = vor.u32 %v6299_v9, %v4813_v8  ;;  %v6405_v24 = vld [vmem:[%s8250_s0 + $0x70] sm:$0xff]  ;;  %v6412_v26 = vld [vmem:[%s8250_s0 + $0xa8] sm:$0xff] }
  0x3f   : > { %6760 = vmatpush.bf16.msra.mxu1 %v6395_v3  ;;  %6761 = vmatpush.bf16.msra.mxu2 %v6395_v3  ;;  %v6331_v11 = vld [vmem:[%s7008_s25 + $0x21c] sm:$0xf0]  ;;  %v6420_v27 = vld [vmem:[%s8250_s0 + $0xe8] sm:$0xff]  ;;  %v6430_v29 = vld [vmem:[%s8250_s0 + $0x138] sm:$0xff] }
  0x40   : > { %v5069_v12 = vld [vmem:[%s7008_s25 + $0x300] sm:$0xf]  ;;  %v4942_v18 = vor.u32 %v6331_v11, %v4941_v10  ;;  %v6404_v28 = vld [vmem:[%s8250_s0 + $0x68] sm:$0xff]  ;;  %v6429_v31 = vld [vmem:[%s8250_s0 + $0x130] sm:$0xff] }
  0x41   : > { %v6363_v13 = vld [vmem:[%s7008_s25 + $0x31c] sm:$0xf0]  ;;  %v6410_v40 = vld [vmem:[%s8250_s0 + $0x98] sm:$0xff]  ;;  %v6409_v48 = vld [vmem:[%s8250_s0 + $0x90] sm:$0xff] }
  0x42   : > { %6762 = vmatpush.bf16.msra.mxu3 %v6395_v3  ;;  %1565 = vmatpush.bf16.msra.mxu0 %v6395_v3  ;;  %v5070_v19 = vor.u32 %v6363_v13, %v5069_v12  ;;  %v4685_v20 = vld [vmem:[%s7008_s25] sm:$0xf]  ;;  %v6418_v41 = vld [vmem:[%s8250_s0 + $0xd8] sm:$0xff]  ;;  %v6417_v49 = vld [vmem:[%s8250_s0 + $0xd0] sm:$0xff] }
  0x43   : > { %6763 = vmatpush.bf16.msra.mxu1 %v6394_v4  ;;  %6764 = vmatpush.bf16.msra.mxu2 %v6394_v4  ;;  %v6267_v21 = vld [vmem:[%s7008_s25 + $0x1c] sm:$0xf0]  ;;  %v6402_v42 = vld [vmem:[%s8250_s0 + $0x58] sm:$0xff]  ;;  %v6401_v50 = vld [vmem:[%s8250_s0 + $0x50] sm:$0xff] }
  0x44   : > { %v4686_v25 = vor.u32 %v6267_v21, %v4685_v20  ;;  %v6411_v30 = vld [vmem:[%s8250_s0 + $0xa0] sm:$0xff]  ;;  %v6428_v52 = vld [vmem:[%s8250_s0 + $0x128] sm:$0xff]  ;;  %v6426_v0 = vld [vmem:[%s8250_s0 + $0x118] sm:$0xff] }
  0x45   : > { %v6419_v32 = vld [vmem:[%s8250_s0 + $0xe0] sm:$0xff]  ;;  %v6408_v53 = vld [vmem:[%s8250_s0 + $0x88] sm:$0xff]  ;;  %v6425_v8 = vld [vmem:[%s8250_s0 + $0x110] sm:$0xff] }
  0x46   : > { %6765 = vmatpush.bf16.msra.mxu3 %v6394_v4  ;;  %1566 = vmatpush.bf16.msra.mxu0 %v6394_v4  ;;  %v6403_v33 = vld [vmem:[%s8250_s0 + $0x60] sm:$0xff]  ;;  %v6416_v54 = vld [vmem:[%s8250_s0 + $0xc8] sm:$0xff]  ;;  %v6446_v10 = vld [vmem:[%s8250_s0 + $0x1b8] sm:$0xff] }
  0x47   : > { %6766 = vmatpush.bf16.msra.mxu1 %v6393_v5  ;;  %6767 = vmatpush.bf16.msra.mxu2 %v6393_v5  ;;  %v4845_v34 = vld [vmem:[%s7008_s25 + $0x140] sm:$0xf]  ;;  %v6400_v55 = vld [vmem:[%s8250_s0 + $0x48] sm:$0xff]  ;;  %v6454_v11 = vld [vmem:[%s8250_s0 + $0x1f8] sm:$0xff] }
  0x48   : > { %v6307_v35 = vld [vmem:[%s7008_s25 + $0x15c] sm:$0xf0]  ;;  %v6424_v12 = vld [vmem:[%s8250_s0 + $0x108] sm:$0xff]  ;;  %v6438_v13 = vld [vmem:[%s8250_s0 + $0x178] sm:$0xff] }
  0x49   : > { %v4973_v36 = vld [vmem:[%s7008_s25 + $0x240] sm:$0xf]  ;;  %v4846_v43 = vor.u32 %v6307_v35, %v4845_v34 }
  0x4a   : > { %6768 = vmatpush.bf16.msra.mxu3 %v6393_v5  ;;  %1567 = vmatpush.bf16.msra.mxu0 %v6393_v5  ;;  %v6339_v37 = vld [vmem:[%s7008_s25 + $0x25c] sm:$0xf0] }
  0x4b   : > { %6769 = vmatpush.bf16.msra.mxu1 %v6392_v6  ;;  %6770 = vmatpush.bf16.msra.mxu2 %v6392_v6  ;;  %v5101_v38 = vld [vmem:[%s7008_s25 + $0x340] sm:$0xf]  ;;  %v4974_v44 = vor.u32 %v6339_v37, %v4973_v36  ;;  %v4701_v36 = vld [vmem:[%s7008_s25 + $0x10] sm:$0xf] }
  0x4c   : > { %v6371_v39 = vld [vmem:[%s7008_s25 + $0x35c] sm:$0xf0]  ;;  %v6269_v37 = vld [vmem:[%s7008_s25 + $0x2c] sm:$0xf0] }
  0x4d   : > { %v5102_v45 = vor.u32 %v6371_v39, %v5101_v38  ;;  %v4717_v46 = vld [vmem:[%s7008_s25 + $0x40] sm:$0xf]  ;;  %v4702_v38 = vor.u32 %v6269_v37, %v4701_v36  ;;  %v6445_v39 = vld [vmem:[%s8250_s0 + $0x1b0] sm:$0xff] }
  0x4e   : > { %6771 = vmatpush.bf16.msra.mxu3 %v6392_v6  ;;  %1568 = vmatpush.bf16.msra.mxu0 %v6392_v6  ;;  %v6275_v47 = vld [vmem:[%s7008_s25 + $0x5c] sm:$0xf0] }
  0x4f   : > { %6772 = vmatpush.bf16.msra.mxu1 %v6391_v7  ;;  %6773 = vmatpush.bf16.msra.mxu2 %v6391_v7  ;;  %v4718_v51 = vor.u32 %v6275_v47, %v4717_v46  ;;  %v6427_v56 = vld [vmem:[%s8250_s0 + $0x120] sm:$0xff]  ;;  %v6272_v46 = vld [vmem:[%s7008_s25 + $0x4c] sm:$0xf] }
  0x50   : > { %v6407_v57 = vld [vmem:[%s8250_s0 + $0x80] sm:$0xff]  ;;  %v4727_v47 = vld [vmem:[%s7008_s25 + $0x68] sm:$0xf0] }
  0x51   : > { %v6415_v58 = vld [vmem:[%s8250_s0 + $0xc0] sm:$0xff] }
  0x52   : > { %6774 = vmatpush.bf16.msra.mxu3 %v6391_v7  ;;  %1590 = vmatmul.bf16.vlgmr.msra.gmra.mxu1 %v4814_v17  ;;  %v6399_v59 = vld [vmem:[%s8250_s0 + $0x40] sm:$0xff] }
  0x53   : > { %1740 = vmatpush.bf16.msrb.mxu2 %v6414_v14  ;;  %1651 = vmatpush.bf16.msrb.mxu1 %v6406_v16  ;;  %v4877_v60 = vld [vmem:[%s7008_s25 + $0x180] sm:$0xf] }
  0x54   : > { %1610 = vmatmul.bf16.vlgmr.msra.gmra.mxu2 %v4942_v18  ;;  %1569 = vmatpush.bf16.msra.mxu0 %v6391_v7  ;;  %v6315_v61 = vld [vmem:[%s7008_s25 + $0x19c] sm:$0xf0] }
  0x55   : > { %1630 = vmatmul.bf16.vlgmr.msra.gmra.mxu3 %v5070_v19  ;;  %v5005_v62 = vld [vmem:[%s7008_s25 + $0x280] sm:$0xf]  ;;  %v4878_v3 = vor.u32 %v6315_v61, %v4877_v60 }
  0x56   : > { %1829 = vmatpush.bf16.msrb.mxu3 %v6422_v15  ;;  %v6347_v63 = vld [vmem:[%s7008_s25 + $0x29c] sm:$0xf0] }
  0x57   : > { %1741 = vmatpush.bf16.msrb.mxu2 %v6413_v22  ;;  %1652 = vmatpush.bf16.msrb.mxu1 %v6405_v24  ;;  %v5133_v1 = vld [vmem:[%s7008_s25 + $0x380] sm:$0xf]  ;;  %v5006_v4 = vor.u32 %v6347_v63, %v5005_v62  ;;  %v4765_v63 = vld [vmem:[%s7008_s25 + $0x90] sm:$0xf] }
  0x58   : > { %1570 = vmatmul.bf16.vlgmr.msra.gmra.mxu0 %v4686_v25  ;;  %v6379_v2 = vld [vmem:[%s7008_s25 + $0x39c] sm:$0xf0] }
  0x59   : > { %1918 = vmatpush.bf16.msrb.mxu0 %v6430_v29  ;;  %v5134_v5 = vor.u32 %v6379_v2, %v5133_v1  ;;  %v4749_v6 = vld [vmem:[%s7008_s25 + $0x80] sm:$0xf]  ;;  %v4693_v29 = vld [vmem:[%s7008_s25 + $0x8] sm:$0xf] }
  0x5a   : > { %1830 = vmatpush.bf16.msrb.mxu3 %v6421_v23  ;;  %v6283_v7 = vld [vmem:[%s7008_s25 + $0x9c] sm:$0xf0]  ;;  %v6444_v2 = vld [vmem:[%s8250_s0 + $0x1a8] sm:$0xff] }
  0x5b   : > { %1742 = vmatpush.bf16.msrb.mxu2 %v6412_v26  ;;  %1653 = vmatpush.bf16.msrb.mxu1 %v6404_v28  ;;  %v4750_v9 = vor.u32 %v6283_v7, %v4749_v6  ;;  %v6423_v14 = vld [vmem:[%s8250_s0 + $0x100] sm:$0xff]  ;;  %v4789_v7 = vld [vmem:[%s7008_s25 + $0xc8] sm:$0xf] }
  0x5c   : > { %v4909_v15 = vld [vmem:[%s7008_s25 + $0x1c0] sm:$0xf]  ;;  %v4687_v28 = vld [vmem:[%s7008_s25 + $0x20] sm:$0xf0] }
  0x5d   : > { %1919 = vmatpush.bf16.msrb.mxu0 %v6429_v31  ;;  %v6323_v16 = vld [vmem:[%s7008_s25 + $0x1dc] sm:$0xf0]  ;;  %v6264_v31 = vld [vmem:[%s7008_s25 + $0xc] sm:$0xf]  ;;  %v4783_v6 = vld [vmem:[%s7008_s25 + $0xe0] sm:$0xf0] }
  0x5e   : > { %1831 = vmatpush.bf16.msrb.mxu3 %v6420_v27  ;;  %v5037_v17 = vld [vmem:[%s7008_s25 + $0x2c0] sm:$0xf]  ;;  %v4910_v21 = vor.u32 %v6323_v16, %v4909_v15  ;;  %v6263_v27 = vld [vmem:[%s7008_s25 + $0x4] sm:$0xf]  ;;  %v6293_v15 = vld [vmem:[%s7008_s25 + $0xec] sm:$0xf0] }
  0x5f   : > { %1743 = vmatpush.bf16.msrb.mxu2 %v6411_v30  ;;  %1654 = vmatpush.bf16.msrb.mxu1 %v6403_v33  ;;  %v6355_v18 = vld [vmem:[%s7008_s25 + $0x2dc] sm:$0xf0]  ;;  %v6268_v30 = vld [vmem:[%s7008_s25 + $0x24] sm:$0xf0]  ;;  %v4690_v33 = vor.u32 %v6263_v27, %v4687_v28  ;;  %v4829_v28 = vld [vmem:[%s7008_s25 + $0x110] sm:$0xf] }
  0x60   : > { %v5165_v19 = vld [vmem:[%s7008_s25 + $0x3c0] sm:$0xf]  ;;  %v5038_v22 = vor.u32 %v6355_v18, %v5037_v17  ;;  %v4694_v34 = vor.u32 %v6268_v30, %v4693_v29  ;;  %v6295_v17 = vld [vmem:[%s7008_s25 + $0x104] sm:$0xf]  ;;  %v6301_v29 = vld [vmem:[%s7008_s25 + $0x12c] sm:$0xf0] }
  0x61   : > { %1920 = vmatpush.bf16.msrb.mxu0 %v6428_v52  ;;  %v6387_v20 = vld [vmem:[%s7008_s25 + $0x3dc] sm:$0xf0]  ;;  %v6277_v52 = vld [vmem:[%s7008_s25 + $0x6c] sm:$0xf0]  ;;  %v4815_v18 = vld [vmem:[%s7008_s25 + $0x120] sm:$0xf0] }
  0x62   : > { %1832 = vmatpush.bf16.msrb.mxu3 %v6419_v32  ;;  %1595 = vmatmul.bf16.gmra.mxu1 %v4846_v43  ;;  %v5166_v23 = vor.u32 %v6387_v20, %v5165_v19  ;;  %v4781_v24 = vld [vmem:[%s7008_s25 + $0xc0] sm:$0xf]  ;;  %v4695_v32 = vld [vmem:[%s7008_s25 + $0x28] sm:$0xf0]  ;;  %v4719_v43 = vld [vmem:[%s7008_s25 + $0x60] sm:$0xf0] }
  0x63   : > { %1744 = vmatpush.bf16.msrb.mxu2 %v6410_v40  ;;  %1655 = vmatpush.bf16.msrb.mxu1 %v6402_v42  ;;  %v6291_v25 = vld [vmem:[%s7008_s25 + $0xdc] sm:$0xf0]  ;;  %v4698_v35 = vor.u32 %v6264_v31, %v4695_v32  ;;  %v6453_v40 = vld [vmem:[%s8250_s0 + $0x1f0] sm:$0xff]  ;;  %v6271_v42 = vld [vmem:[%s7008_s25 + $0x44] sm:$0xf]  ;;  %v4830_v31 = vor.u32 %v6301_v29, %v4829_v28 }
  0x64   : > { %1615 = vmatmul.bf16.gmra.mxu2 %v4974_v44  ;;  %v4782_v26 = vor.u32 %v6291_v25, %v4781_v24  ;;  %v4725_v44 = vld [vmem:[%s7008_s25 + $0x48] sm:$0xf]  ;;  %v4818_v24 = vor.u32 %v6295_v17, %v4815_v18 }
  0x65   : > { %1635 = vmatmul.bf16.gmra.mxu3 %v5102_v45  ;;  %1921 = vmatpush.bf16.msrb.mxu0 %v6427_v56  ;;  %v6276_v45 = vld [vmem:[%s7008_s25 + $0x64] sm:$0xf0] }
  0x66   : > { %1833 = vmatpush.bf16.msrb.mxu3 %v6418_v41  ;;  %v6437_v41 = vld [vmem:[%s8250_s0 + $0x170] sm:$0xff]  ;;  %v4757_v56 = vld [vmem:[%s7008_s25 + $0x88] sm:$0xf] }
  0x67   : > { %1745 = vmatpush.bf16.msrb.mxu2 %v6409_v48  ;;  %1656 = vmatpush.bf16.msrb.mxu1 %v6401_v50  ;;  %v4722_v48 = vor.u32 %v6271_v42, %v4719_v43  ;;  %v4730_v50 = vor.u32 %v6272_v46, %v4727_v47  ;;  %v4821_v19 = vld [vmem:[%s7008_s25 + $0x108] sm:$0xf]  ;;  %v6303_v42 = vld [vmem:[%s7008_s25 + $0x144] sm:$0xf]  ;;  %v6304_v47 = vld [vmem:[%s7008_s25 + $0x14c] sm:$0xf] }
  0x68   : > { %1575 = vmatmul.bf16.gmra.mxu0 %v4718_v51  ;;  %v4733_v51 = vld [vmem:[%s7008_s25 + $0x50] sm:$0xf]  ;;  %v6300_v20 = vld [vmem:[%s7008_s25 + $0x124] sm:$0xf0] }
  0x69   : > { %1922 = vmatpush.bf16.msrb.mxu0 %v6426_v0  ;;  %v6285_v0 = vld [vmem:[%s7008_s25 + $0xac] sm:$0xf0]  ;;  %v4822_v25 = vor.u32 %v6300_v20, %v4821_v19  ;;  %v6308_v46 = vld [vmem:[%s7008_s25 + $0x164] sm:$0xf0] }
  0x6a   : > { %1834 = vmatpush.bf16.msrb.mxu3 %v6417_v49  ;;  %v4726_v49 = vor.u32 %v6276_v45, %v4725_v44  ;;  %v4766_v1 = vor.u32 %v6285_v0, %v4765_v63  ;;  %v4847_v44 = vld [vmem:[%s7008_s25 + $0x160] sm:$0xf0]  ;;  %v4853_v45 = vld [vmem:[%s7008_s25 + $0x148] sm:$0xf]  ;;  %v4893_v19 = vld [vmem:[%s7008_s25 + $0x190] sm:$0xf] }
  0x6b   : > { %1746 = vmatpush.bf16.msrb.mxu2 %v6408_v53  ;;  %1657 = vmatpush.bf16.msrb.mxu1 %v6400_v55  ;;  %v4734_v53 = vor.u32 %v6277_v52, %v4733_v51  ;;  %v4751_v55 = vld [vmem:[%s7008_s25 + $0xa0] sm:$0xf0]  ;;  %v4850_v52 = vor.u32 %v6303_v42, %v4847_v44  ;;  %v6317_v20 = vld [vmem:[%s7008_s25 + $0x1ac] sm:$0xf0]  ;;  %v4917_v42 = vld [vmem:[%s7008_s25 + $0x1c8] sm:$0xf] }
  0x6c   : > { %v6324_v44 = vld [vmem:[%s7008_s25 + $0x1e4] sm:$0xf0] }
  0x6d   : > { %1923 = vmatpush.bf16.msrb.mxu0 %v6425_v8  ;;  %v6292_v8 = vld [vmem:[%s7008_s25 + $0xe4] sm:$0xf0] }
  0x6e   : > { %1835 = vmatpush.bf16.msrb.mxu3 %v6416_v54  ;;  %v6279_v54 = vld [vmem:[%s7008_s25 + $0x84] sm:$0xf] }
  0x6f   : > { %1747 = vmatpush.bf16.msrb.mxu2 %v6407_v57  ;;  %1658 = vmatpush.bf16.msrb.mxu1 %v6399_v59  ;;  %v6284_v57 = vld [vmem:[%s7008_s25 + $0xa4] sm:$0xf0]  ;;  %v4759_v59 = vld [vmem:[%s7008_s25 + $0xa8] sm:$0xf0]  ;;  %v4754_v60 = vor.u32 %v6279_v54, %v4751_v55 }
  0x70   : > { %v4758_v61 = vor.u32 %v6284_v57, %v4757_v56  ;;  %v4861_v57 = vld [vmem:[%s7008_s25 + $0x150] sm:$0xf] }
  0x71   : > { %1924 = vmatpush.bf16.msrb.mxu0 %v6424_v12  ;;  %v4790_v12 = vor.u32 %v6292_v8, %v4789_v7  ;;  %v4885_v7 = vld [vmem:[%s7008_s25 + $0x188] sm:$0xf] }
  0x72   : > { %1836 = vmatpush.bf16.msrb.mxu3 %v6415_v58  ;;  %1600 = vmatmul.bf16.gmra.mxu1 %v4878_v3  ;;  %v6280_v58 = vld [vmem:[%s7008_s25 + $0x8c] sm:$0xf]  ;;  %v6316_v8 = vld [vmem:[%s7008_s25 + $0x1a4] sm:$0xf0] }
  0x73   : > { %2096 = vmatpush.bf16.msra.mxu2 %v6446_v10  ;;  %2007 = vmatpush.bf16.msra.mxu1 %v6438_v13  ;;  %v4762_v62 = vor.u32 %v6280_v58, %v4759_v59  ;;  %v6452_v3 = vld [vmem:[%s8250_s0 + $0x1e8] sm:$0xff]  ;;  %v6309_v58 = vld [vmem:[%s7008_s25 + $0x16c] sm:$0xf0] }
  0x74   : > { %1620 = vmatmul.bf16.gmra.mxu2 %v5006_v4  ;;  %v6436_v4 = vld [vmem:[%s8250_s0 + $0x168] sm:$0xff] }
  0x75   : > { %1640 = vmatmul.bf16.gmra.mxu3 %v5134_v5  ;;  %1925 = vmatpush.bf16.msrb.mxu0 %v6423_v14  ;;  %v6287_v5 = vld [vmem:[%s7008_s25 + $0xc4] sm:$0xf]  ;;  %v4791_v10 = vld [vmem:[%s7008_s25 + $0xe8] sm:$0xf0]  ;;  %v4797_v14 = vld [vmem:[%s7008_s25 + $0xd0] sm:$0xf] }
  0x76   : > { %2185 = vmatpush.bf16.msra.mxu3 %v6454_v11  ;;  %v4786_v11 = vor.u32 %v6287_v5, %v4783_v6  ;;  %v4798_v16 = vor.u32 %v6293_v15, %v4797_v14  ;;  %v4879_v6 = vld [vmem:[%s7008_s25 + $0x1a0] sm:$0xf0]  ;;  %v4886_v15 = vor.u32 %v6316_v8, %v4885_v7 }
  0x77   : > { %2097 = vmatpush.bf16.msra.mxu2 %v6445_v39  ;;  %2008 = vmatpush.bf16.msra.mxu1 %v6437_v41 }
  0x78   : > { %1580 = vmatmul.bf16.gmra.mxu0 %v4750_v9  ;;  %v6288_v9 = vld [vmem:[%s7008_s25 + $0xcc] sm:$0xf] }
  0x79   : > { %v4794_v13 = vor.u32 %v6288_v9, %v4791_v10  ;;  %v6312_v9 = vld [vmem:[%s7008_s25 + $0x18c] sm:$0xf] }
  0x7a   : > { %2186 = vmatpush.bf16.msra.mxu3 %v6453_v40  ;;  %v6435_v40 = vld [vmem:[%s8250_s0 + $0x160] sm:$0xff]  ;;  %v4887_v10 = vld [vmem:[%s7008_s25 + $0x1a8] sm:$0xf0] }
  0x7b   : > { %2098 = vmatpush.bf16.msra.mxu2 %v6444_v2  ;;  %2009 = vmatpush.bf16.msra.mxu1 %v6436_v4  ;;  %v6311_v4 = vld [vmem:[%s7008_s25 + $0x184] sm:$0xf]  ;;  %v4890_v18 = vor.u32 %v6312_v9, %v4887_v10  ;;  %v6462_v10 = vld [vmem:[%s8252_s2 + $0x38] sm:$0xff] }
  0x7c   : > { %v4882_v14 = vor.u32 %v6311_v4, %v4879_v6  ;;  %2386 = vmatpush.bf16.msra.mxu0 %v6462_v10  ;;  %v4981_v10 = vld [vmem:[%s7008_s25 + $0x248] sm:$0xf] }
  0x7e   : > { %2187 = vmatpush.bf16.msra.mxu3 %v6452_v3 }
  0x7f   : > { %2010 = vmatpush.bf16.msra.mxu1 %v6435_v40  ;;  %v4911_v40 = vld [vmem:[%s7008_s25 + $0x1e0] sm:$0xf0] }
  0x82   : > { %1605 = vmatmul.bf16.gmra.mxu1 %v4910_v21  ;;  %v7270_v21 = vld [vmem:[%s8251_s1] ss:$0 sm:$0xff] }
  0x84   : > { %1625 = vmatmul.bf16.gmra.mxu2 %v5038_v22  ;;  %v6296_v22 = vld [vmem:[%s7008_s25 + $0x10c] sm:$0xf] }
  0x85   : > { %1645 = vmatmul.bf16.gmra.mxu3 %v5166_v23  ;;  %v4823_v23 = vld [vmem:[%s7008_s25 + $0x128] sm:$0xf0] }
  0x86   : > { %v4826_v27 = vor.u32 %v6296_v22, %v4823_v23  ;;  %v4894_v23 = vor.u32 %v6317_v20, %v4893_v19  ;;  %v6328_v19 = vld [vmem:[%s7008_s25 + $0x20c] sm:$0xf] }
  0x87   : > { %v4951_v20 = vld [vmem:[%s7008_s25 + $0x228] sm:$0xf0] }
  0x88   : > { %1585 = vmatmul.bf16.gmra.mxu0 %v4782_v26 }
  0x92   : > { %1659 = vmatmul.bf16.vlgmr.msrb.gmra.mxu1 %v4690_v33  ;;  %v6443_v33 = vld [vmem:[%s8250_s0 + $0x1a0] sm:$0xff] }
  0x93   : > { %2099 = vmatpush.bf16.msra.mxu2 %v6443_v33 }
  0x94   : > { %1748 = vmatmul.bf16.vlgmr.msrb.gmra.mxu2 %v4694_v34  ;;  %v6451_v34 = vld [vmem:[%s8250_s0 + $0x1e0] sm:$0xff] }
  0x95   : > { %1837 = vmatmul.bf16.vlgmr.msrb.gmra.mxu3 %v4698_v35 }
  0x96   : > { %2188 = vmatpush.bf16.msra.mxu3 %v6451_v34 }
  0x98   : > { %1926 = vmatmul.bf16.vlgmr.msrb.gmra.mxu0 %v4702_v38 }
  0xa2   : > { %1664 = vmatmul.bf16.gmra.mxu1 %v4722_v48  ;;  %v4855_v48 = vld [vmem:[%s7008_s25 + $0x168] sm:$0xf0] }
  0xa3   : > { %v4858_v56 = vor.u32 %v6304_v47, %v4855_v48 }
  0xa4   : > { %1753 = vmatmul.bf16.gmra.mxu2 %v4726_v49 }
  0xa5   : > { %1842 = vmatmul.bf16.gmra.mxu3 %v4730_v50 }
  0xa8   : > { %1931 = vmatmul.bf16.gmra.mxu0 %v4734_v53  ;;  %v4854_v53 = vor.u32 %v6308_v46, %v4853_v45  ;;  %v6320_v45 = vld [vmem:[%s7008_s25 + $0x1cc] sm:$0xf] }
  0xa9   : > { %v4919_v46 = vld [vmem:[%s7008_s25 + $0x1e8] sm:$0xf0] }
  0xb2   : > { %1669 = vmatmul.bf16.gmra.mxu1 %v4754_v60  ;;  %v4862_v60 = vor.u32 %v6309_v58, %v4861_v57  ;;  %v4925_v57 = vld [vmem:[%s7008_s25 + $0x1d0] sm:$0xf] }
  0xb3   : > { %v6325_v58 = vld [vmem:[%s7008_s25 + $0x1ec] sm:$0xf0] }
  0xb4   : > { %1758 = vmatmul.bf16.gmra.mxu2 %v4758_v61 }
  0xb5   : > { %1847 = vmatmul.bf16.gmra.mxu3 %v4762_v62 }
  0xb8   : > { %1936 = vmatmul.bf16.gmra.mxu0 %v4766_v1 }
  0xc2   : > { %1674 = vmatmul.bf16.gmra.mxu1 %v4786_v11 }
  0xc4   : > { %1763 = vmatmul.bf16.gmra.mxu2 %v4790_v12 }
  0xc5   : > { %1852 = vmatmul.bf16.gmra.mxu3 %v4794_v13 }
  0xc8   : > { %1941 = vmatmul.bf16.gmra.mxu0 %v4798_v16 }
  0xcf   : > { %v1591_v26 = vpop.f32.mrf.mxu1 }
  0xd0   : > { %v7277_v30 = vadd.f32 %v7270_v21, %v1591_v26  ;;  %v6450_v26 = vld [vmem:[%s8250_s0 + $0x1d8] sm:$0xff] }
  0xd1   : > { %2189 = vmatpush.bf16.msra.mxu3 %v6450_v26 }
  0xd2   : > { %1679 = vmatmul.bf16.gmra.mxu1 %v4818_v24 }
  0xd4   : > { %1768 = vmatmul.bf16.gmra.mxu2 %v4822_v25  ;;  %v6442_v25 = vld [vmem:[%s8250_s0 + $0x198] sm:$0xff] }
  0xd5   : > { %1857 = vmatmul.bf16.gmra.mxu3 %v4826_v27  ;;  %v7279_v32 = vpop.f32.mrf.mxu0  ;;  %2100 = vmatpush.bf16.msra.mxu2 %v6442_v25 }
  0xd7   : > { %v1611_v35 = vpop.f32.mrf.mxu2  ;;  %v1593_v39 = vpop.f32.mrf.mxu1 }
  0xd8   : > { %v7288_v36 = vadd.f32 %v7270_v21, %v1611_v35  ;;  %v1631_v37 = vpop.f32.mrf.mxu3  ;;  %1946 = vmatmul.bf16.gmra.mxu0 %v4830_v31  ;;  %v7297_v41 = vadd.f32 %v7270_v21, %v1593_v39  ;;  %v6434_v35 = vld [vmem:[%s8250_s0 + $0x158] sm:$0xff] }
  0xd9   : > { %v7291_v38 = vadd.f32 %v7270_v21, %v1631_v37  ;;  %v6319_v37 = vld [vmem:[%s7008_s25 + $0x1c4] sm:$0xf]  ;;  %2011 = vmatpush.bf16.msra.mxu1 %v6434_v35 }
  0xdd   : > { %v7300_v43 = vpop.f32.mrf.mxu0 }
  0xdf   : > { %v1613_v49 = vpop.f32.mrf.mxu2  ;;  %v1596_v55 = vpop.f32.mrf.mxu1 }
  0xe0   : > { %v7308_v50 = vadd.f32 %v7270_v21, %v1613_v49  ;;  %v1633_v51 = vpop.f32.mrf.mxu3  ;;  %v7316_v59 = vadd.f32 %v7270_v21, %v1596_v55 }
  0xe1   : > { %v7311_v54 = vadd.f32 %v7270_v21, %v1633_v51  ;;  %v4914_v51 = vor.u32 %v6319_v37, %v4911_v40  ;;  %v4954_v37 = vor.u32 %v6328_v19, %v4951_v20  ;;  %v4957_v40 = vld [vmem:[%s7008_s25 + $0x210] sm:$0xf] }
  0xe2   : > { %1684 = vmatmul.bf16.gmra.mxu1 %v4850_v52  ;;  %v4918_v52 = vor.u32 %v6324_v44, %v4917_v42  ;;  %v6333_v42 = vld [vmem:[%s7008_s25 + $0x22c] sm:$0xf0] }
  0xe4   : > { %1773 = vmatmul.bf16.gmra.mxu2 %v4854_v53 }
  0xe5   : > { %1862 = vmatmul.bf16.gmra.mxu3 %v4858_v56  ;;  %v7318_v61 = vpop.f32.mrf.mxu0  ;;  %v4922_v56 = vor.u32 %v6320_v45, %v4919_v46  ;;  %v6441_v46 = vld [vmem:[%s8250_s0 + $0x190] sm:$0xff] }
  0xe6   : > { %2101 = vmatpush.bf16.msra.mxu2 %v6441_v46 }
  0xe7   : > { %v1616_v62 = vpop.f32.mrf.mxu2  ;;  %v1598_v2 = vpop.f32.mrf.mxu1 }
  0xe8   : > { %v7321_v63 = vadd.f32 %v7270_v21, %v1616_v62  ;;  %v1636_v0 = vpop.f32.mrf.mxu3  ;;  %1951 = vmatmul.bf16.gmra.mxu0 %v4862_v60  ;;  %v7327_v3 = vadd.f32 %v7270_v21, %v1598_v2  ;;  %v4926_v62 = vor.u32 %v6325_v58, %v4925_v57 }
  0xe9   : > { %v7324_v1 = vadd.f32 %v7270_v21, %v1636_v0 }
  0xed   : > { %v7330_v5 = vpop.f32.mrf.mxu0 }
  0xef   : > { %v1618_v11 = vpop.f32.mrf.mxu2  ;;  %v1601_v17 = vpop.f32.mrf.mxu1 }
  0xf0   : > { %v7338_v12 = vadd.f32 %v7270_v21, %v1618_v11  ;;  %v1638_v13 = vpop.f32.mrf.mxu3  ;;  %v7346_v22 = vadd.f32 %v7270_v21, %v1601_v17  ;;  %v6327_v11 = vld [vmem:[%s7008_s25 + $0x204] sm:$0xf]  ;;  %v6332_v17 = vld [vmem:[%s7008_s25 + $0x224] sm:$0xf0] }
  0xf1   : > { %v7341_v16 = vadd.f32 %v7270_v21, %v1638_v13 }
  0xf2   : > { %1689 = vmatmul.bf16.gmra.mxu1 %v4882_v14  ;;  %v4943_v14 = vld [vmem:[%s7008_s25 + $0x220] sm:$0xf0] }
  0xf4   : > { %1778 = vmatmul.bf16.gmra.mxu2 %v4886_v15  ;;  %v4949_v15 = vld [vmem:[%s7008_s25 + $0x208] sm:$0xf] }
  0xf5   : > { %1867 = vmatmul.bf16.gmra.mxu3 %v4890_v18  ;;  %v7348_v24 = vpop.f32.mrf.mxu0  ;;  %v1572_v18 = vadd.f32 %v7270_v21, %v7279_v32  ;;  %v4958_v32 = vor.u32 %v6333_v42, %v4957_v40 }
  0xf7   : > { %v1621_v27 = vpop.f32.mrf.mxu2  ;;  %v1603_v33 = vpop.f32.mrf.mxu1 }
  0xf8   : > { %v7357_v28 = vadd.f32 %v7270_v21, %v1621_v27  ;;  %v1641_v29 = vpop.f32.mrf.mxu3  ;;  %1956 = vmatmul.bf16.gmra.mxu0 %v4894_v23  ;;  %v7363_v34 = vadd.f32 %v7270_v21, %v1603_v33  ;;  %v4946_v27 = vor.u32 %v6327_v11, %v4943_v14  ;;  %v6340_v11 = vld [vmem:[%s7008_s25 + $0x264] sm:$0xf0]  ;;  %v1577_v14 = vadd.f32 %v7270_v21, %v7318_v61 }
  0xf9   : > { %v7360_v31 = vadd.f32 %v7270_v21, %v1641_v29  ;;  %v4950_v29 = vor.u32 %v6332_v17, %v4949_v15  ;;  %v6336_v15 = vld [vmem:[%s7008_s25 + $0x24c] sm:$0xf] }
  0xfa   : > { %v4983_v17 = vld [vmem:[%s7008_s25 + $0x268] sm:$0xf0] }
  0xfd   : > { %v7369_v39 = vpop.f32.mrf.mxu0 }
  0xff   : > { %v1623_v47 = vpop.f32.mrf.mxu2  ;;  %v1606_v55 = vpop.f32.mrf.mxu1 }
 0x100   : > { %v7377_v48 = vadd.f32 %v7270_v21, %v1623_v47  ;;  %v1643_v49 = vpop.f32.mrf.mxu3  ;;  %v7385_v60 = vadd.f32 %v7270_v21, %v1606_v55  ;;  %v6449_v47 = vld [vmem:[%s8250_s0 + $0x1d0] sm:$0xff] }
 0x101   : > { %v7380_v53 = vadd.f32 %v7270_v21, %v1643_v49  ;;  %v1574_v49 = vadd.f32 %v7270_v21, %v7300_v43  ;;  %2190 = vmatpush.bf16.msra.mxu3 %v6449_v47  ;;  %v6335_v43 = vld [vmem:[%s7008_s25 + $0x244] sm:$0xf] }
 0x102   : > { %1694 = vmatmul.bf16.gmra.mxu1 %v4914_v51 }
 0x104   : > { %1783 = vmatmul.bf16.gmra.mxu2 %v4918_v52 }
 0x105   : > { %1872 = vmatmul.bf16.gmra.mxu3 %v4922_v56  ;;  %v7387_v0 = vpop.f32.mrf.mxu0 }
 0x107   : > { %v1626_v2 = vpop.f32.mrf.mxu2  ;;  %v1608_v8 = vpop.f32.mrf.mxu1 }
 0x108   : > { %v7390_v4 = vadd.f32 %v7270_v21, %v1626_v2  ;;  %v1646_v6 = vpop.f32.mrf.mxu3  ;;  %1961 = vmatmul.bf16.gmra.mxu0 %v4926_v62  ;;  %v7396_v9 = vadd.f32 %v7270_v21, %v1608_v8  ;;  %v6433_v62 = vld [vmem:[%s8250_s0 + $0x150] sm:$0xff]  ;;  %v4975_v8 = vld [vmem:[%s7008_s25 + $0x260] sm:$0xf0] }
 0x109   : > { %v7393_v7 = vadd.f32 %v7270_v21, %v1646_v6  ;;  %2012 = vmatpush.bf16.msra.mxu1 %v6433_v62  ;;  %v5007_v62 = vld [vmem:[%s7008_s25 + $0x2a0] sm:$0xf0] }
 0x10d   : > { %v7402_v13 = vpop.f32.mrf.mxu0 }
 0x10f   : > { %v1628_v23 = vpop.f32.mrf.mxu2  ;;  %v1660_v35 = vpop.f32.mrf.mxu1 }
 0x110   : > { %v7412_v25 = vadd.f32 %v7270_v21, %v1628_v23  ;;  %v1648_v26 = vpop.f32.mrf.mxu3  ;;  %v1661_v44 = vadd.f32 %v1660_v35, %v1572_v18  ;;  %v4978_v23 = vor.u32 %v6335_v43, %v4975_v8  ;;  %v4989_v35 = vld [vmem:[%s7008_s25 + $0x250] sm:$0xf]  ;;  %v5013_v43 = vld [vmem:[%s7008_s25 + $0x288] sm:$0xf]  ;;  %v1582_v8 = vadd.f32 %v7270_v21, %v7348_v24 }
 0x111   : > { %v7415_v33 = vadd.f32 %v7270_v21, %v1648_v26  ;;  %v4982_v26 = vor.u32 %v6340_v11, %v4981_v10  ;;  %v6344_v10 = vld [vmem:[%s7008_s25 + $0x28c] sm:$0xf] }
 0x112   : > { %1699 = vmatmul.bf16.gmra.mxu1 %v4946_v27  ;;  %v5015_v11 = vld [vmem:[%s7008_s25 + $0x2a8] sm:$0xf0] }
 0x114   : > { %1788 = vmatmul.bf16.gmra.mxu2 %v4950_v29  ;;  %v4986_v29 = vor.u32 %v6336_v15, %v4983_v17 }
 0x115   : > { %1877 = vmatmul.bf16.gmra.mxu3 %v4954_v37  ;;  %v1927_v45 = vpop.f32.mrf.mxu0  ;;  %v6341_v37 = vld [vmem:[%s7008_s25 + $0x26c] sm:$0xf0] }
 0x117   : > { %v1749_v51 = vpop.f32.mrf.mxu2  ;;  %v1662_v56 = vpop.f32.mrf.mxu1 }
 0x118   : > { %v1750_v52 = vadd.f32 %v1749_v51, %v1661_v44  ;;  %v1838_v55 = vpop.f32.mrf.mxu3  ;;  %1966 = vmatmul.bf16.gmra.mxu0 %v4958_v32  ;;  %v1663_v58 = vadd.f32 %v1662_v56, %v1574_v49  ;;  %v4990_v32 = vor.u32 %v6341_v37, %v4989_v35  ;;  %v6461_v56 = vld [vmem:[%s8252_s2 + $0x30] sm:$0xff] }
 0x119   : > { %2387 = vmatpush.bf16.msra.mxu0 %v6461_v56 }
 0x11a   : > { %v1839_v57 = vadd.f32 %v1838_v55, %v1750_v52 }
 0x11c   : > { %v7430_v2 = vadd.f32 %v1927_v45, %v1839_v57  ;;  %v1579_v45 = vadd.f32 %v7270_v21, %v7330_v5 }
 0x11d   : > { %v1929_v6 = vpop.f32.mrf.mxu0 }
 0x11f   : > { %v1751_v18 = vpop.f32.mrf.mxu2  ;;  %v1665_v27 = vpop.f32.mrf.mxu1 }
 0x120   : > { %v1752_v19 = vadd.f32 %v1751_v18, %v1663_v58  ;;  %v1840_v20 = vpop.f32.mrf.mxu3  ;;  %v1666_v42 = vadd.f32 %v1665_v27, %v1577_v14  ;;  %v6343_v58 = vld [vmem:[%s7008_s25 + $0x284] sm:$0xf]  ;;  %v6349_v27 = vld [vmem:[%s7008_s25 + $0x2ac] sm:$0xf0] }
 0x121   : > { %v5010_v18 = vor.u32 %v6343_v58, %v5007_v62  ;;  %v5045_v62 = vld [vmem:[%s7008_s25 + $0x2c8] sm:$0xf] }
 0x122   : > { %v1841_v40 = vadd.f32 %v1840_v20, %v1752_v19  ;;  %1704 = vmatmul.bf16.gmra.mxu1 %v4978_v23  ;;  %v5018_v23 = vor.u32 %v6344_v10, %v5015_v11  ;;  %v5047_v10 = vld [vmem:[%s7008_s25 + $0x2e8] sm:$0xf0] }
 0x124   : > { %v7442_v44 = vadd.f32 %v1929_v6, %v1841_v40  ;;  %1793 = vmatmul.bf16.gmra.mxu2 %v4982_v26  ;;  %v6348_v6 = vld [vmem:[%s7008_s25 + $0x2a4] sm:$0xf0]  ;;  %v5021_v26 = vld [vmem:[%s7008_s25 + $0x290] sm:$0xf] }
 0x125   : > { %1882 = vmatmul.bf16.gmra.mxu3 %v4986_v29  ;;  %v1932_v61 = vpop.f32.mrf.mxu0  ;;  %v5014_v19 = vor.u32 %v6348_v6, %v5013_v43  ;;  %v5022_v40 = vor.u32 %v6349_v27, %v5021_v26  ;;  %v6356_v43 = vld [vmem:[%s7008_s25 + $0x2e4] sm:$0xf0]  ;;  %v1587_v6 = vadd.f32 %v7270_v21, %v7387_v0  ;;  %v6357_v26 = vld [vmem:[%s7008_s25 + $0x2ec] sm:$0xf0] }
 0x127   : > { %v1754_v46 = vpop.f32.mrf.mxu2  ;;  %v1667_v51 = vpop.f32.mrf.mxu1 }
 0x128   : > { %v1755_v47 = vadd.f32 %v1754_v46, %v1666_v42  ;;  %v1843_v49 = vpop.f32.mrf.mxu3  ;;  %1971 = vmatmul.bf16.gmra.mxu0 %v4990_v32  ;;  %v1668_v55 = vadd.f32 %v1667_v51, %v1579_v45  ;;  %v6440_v42 = vld [vmem:[%s8250_s0 + $0x188] sm:$0xff] }
 0x129   : > { %v6448_v32 = vld [vmem:[%s8250_s0 + $0x1c8] sm:$0xff]  ;;  %2102 = vmatpush.bf16.msra.mxu2 %v6440_v42 }
 0x12a   : > { %v1844_v52 = vadd.f32 %v1843_v49, %v1755_v47  ;;  %2191 = vmatpush.bf16.msra.mxu3 %v6448_v32 }
 0x12c   : > { %v7449_v57 = vadd.f32 %v1932_v61, %v1844_v52  ;;  %v1584_v61 = vadd.f32 %v7270_v21, %v7369_v39  ;;  %v6351_v39 = vld [vmem:[%s7008_s25 + $0x2c4] sm:$0xf] }
 0x12d   : > { %v1934_v5 = vpop.f32.mrf.mxu0 }
 0x12f   : > { %v1756_v14 = vpop.f32.mrf.mxu2  ;;  %v1670_v20 = vpop.f32.mrf.mxu1 }
 0x130   : > { %v1757_v15 = vadd.f32 %v1756_v14, %v1668_v55  ;;  %v1845_v17 = vpop.f32.mrf.mxu3  ;;  %v1671_v35 = vadd.f32 %v1670_v20, %v1582_v8  ;;  %v6432_v55 = vld [vmem:[%s8250_s0 + $0x148] sm:$0xff] }
 0x131   : > { %2013 = vmatpush.bf16.msra.mxu1 %v6432_v55  ;;  %v6352_v8 = vld [vmem:[%s7008_s25 + $0x2cc] sm:$0xf]  ;;  %v5077_v55 = vld [vmem:[%s7008_s25 + $0x308] sm:$0xf] }
 0x132   : > { %v1846_v29 = vadd.f32 %v1845_v17, %v1757_v15  ;;  %1709 = vmatmul.bf16.gmra.mxu1 %v5010_v18  ;;  %v5046_v18 = vor.u32 %v6356_v43, %v5045_v62  ;;  %v5050_v20 = vor.u32 %v6352_v8, %v5047_v10 }
 0x134   : > { %v7461_v37 = vadd.f32 %v1934_v5, %v1846_v29  ;;  %1798 = vmatmul.bf16.gmra.mxu2 %v5014_v19  ;;  %v5039_v5 = vld [vmem:[%s7008_s25 + $0x2e0] sm:$0xf0] }
 0x135   : > { %1887 = vmatmul.bf16.gmra.mxu3 %v5018_v23  ;;  %v1937_v24 = vpop.f32.mrf.mxu0  ;;  %v5042_v17 = vor.u32 %v6351_v39, %v5039_v5  ;;  %v5053_v23 = vld [vmem:[%s7008_s25 + $0x2d0] sm:$0xf]  ;;  %v6364_v39 = vld [vmem:[%s7008_s25 + $0x324] sm:$0xf0]  ;;  %v5079_v5 = vld [vmem:[%s7008_s25 + $0x328] sm:$0xf0] }
 0x136   : > { %v5078_v10 = vor.u32 %v6364_v39, %v5077_v55  ;;  %v5111_v55 = vld [vmem:[%s7008_s25 + $0x368] sm:$0xf0] }
 0x137   : > { %v1759_v45 = vpop.f32.mrf.mxu2  ;;  %v1672_v49 = vpop.f32.mrf.mxu1 }
 0x138   : > { %v1760_v46 = vadd.f32 %v1759_v45, %v1671_v35  ;;  %v1848_v47 = vpop.f32.mrf.mxu3  ;;  %1976 = vmatmul.bf16.gmra.mxu0 %v5022_v40  ;;  %v1673_v52 = vadd.f32 %v1672_v49, %v1584_v61  ;;  %v5054_v40 = vor.u32 %v6357_v26, %v5053_v23  ;;  %v6460_v49 = vld [vmem:[%s8252_s2 + $0x28] sm:$0xff] }
 0x139   : > { %2388 = vmatpush.bf16.msra.mxu0 %v6460_v49  ;;  %v5103_v49 = vld [vmem:[%s7008_s25 + $0x360] sm:$0xf0] }
 0x13a   : > { %v1849_v51 = vadd.f32 %v1848_v47, %v1760_v46 }
 0x13c   : > { %v7474_v56 = vadd.f32 %v1937_v24, %v1849_v51  ;;  %v1589_v24 = vadd.f32 %v7270_v21, %v7402_v13  ;;  %v5071_v13 = vld [vmem:[%s7008_s25 + $0x320] sm:$0xf0] }
 0x13d   : > { %v1939_v58 = vpop.f32.mrf.mxu0 }
 0x13f   : > { %v1761_v11 = vpop.f32.mrf.mxu2  ;;  %v1675_v19 = vpop.f32.mrf.mxu1 }
 0x140   : > { %v1762_v14 = vadd.f32 %v1761_v11, %v1673_v52  ;;  %v1850_v15 = vpop.f32.mrf.mxu3  ;;  %v1676_v29 = vadd.f32 %v1675_v19, %v1587_v6  ;;  %v6359_v52 = vld [vmem:[%s7008_s25 + $0x304] sm:$0xf] }
 0x141   : > { %v5074_v8 = vor.u32 %v6359_v52, %v5071_v13  ;;  %v5109_v52 = vld [vmem:[%s7008_s25 + $0x348] sm:$0xf]  ;;  %v6368_v13 = vld [vmem:[%s7008_s25 + $0x34c] sm:$0xf] }
 0x142   : > { %v1851_v27 = vadd.f32 %v1850_v15, %v1762_v14  ;;  %1714 = vmatmul.bf16.gmra.mxu1 %v5042_v17  ;;  %v5085_v15 = vld [vmem:[%s7008_s25 + $0x310] sm:$0xf] }
 0x143   : > { %v6365_v17 = vld [vmem:[%s7008_s25 + $0x32c] sm:$0xf0] }
 0x144   : > { %v7486_v35 = vadd.f32 %v1939_v58, %v1851_v27  ;;  %1803 = vmatmul.bf16.gmra.mxu2 %v5046_v18  ;;  %v6360_v58 = vld [vmem:[%s7008_s25 + $0x30c] sm:$0xf]  ;;  %v5086_v23 = vor.u32 %v6365_v17, %v5085_v15  ;;  %v6439_v27 = vld [vmem:[%s8250_s0 + $0x180] sm:$0xff] }
 0x145   : > { %1892 = vmatmul.bf16.gmra.mxu3 %v5050_v20  ;;  %v1942_v0 = vpop.f32.mrf.mxu0  ;;  %v5082_v14 = vor.u32 %v6360_v58, %v5079_v5  ;;  %2103 = vmatpush.bf16.msra.mxu2 %v6439_v27 }
 0x147   : > { %v1764_v42 = vpop.f32.mrf.mxu2  ;;  %v1677_v45 = vpop.f32.mrf.mxu1 }
 0x148   : > { %v1765_v32 = vadd.f32 %v1764_v42, %v1676_v29  ;;  %v1853_v61 = vpop.f32.mrf.mxu3  ;;  %1981 = vmatmul.bf16.gmra.mxu0 %v5054_v40  ;;  %v1678_v47 = vadd.f32 %v1677_v45, %v1589_v24  ;;  %v6447_v29 = vld [vmem:[%s8250_s0 + $0x1c0] sm:$0xff] }
 0x149   : > { %2192 = vmatpush.bf16.msra.mxu3 %v6447_v29 }
 0x14a   : > { %v1854_v46 = vadd.f32 %v1853_v61, %v1765_v32  ;;  %v6431_v61 = vld [vmem:[%s8250_s0 + $0x140] sm:$0xff] }
 0x14b   : > { %2014 = vmatpush.bf16.msra.mxu1 %v6431_v61  ;;  %v6376_v61 = vld [vmem:[%s7008_s25 + $0x38c] sm:$0xf] }
 0x14c   : > { %v7493_v51 = vadd.f32 %v1942_v0, %v1854_v46  ;;  %v6367_v46 = vld [vmem:[%s7008_s25 + $0x344] sm:$0xf] }
 0x14d   : > { %v1944_v21 = vpop.f32.mrf.mxu0  ;;  %v5106_v5 = vor.u32 %v6367_v46, %v5103_v49  ;;  %v5143_v46 = vld [vmem:[%s7008_s25 + $0x3a8] sm:$0xf0] }
 0x14f   : > { %v1766_v62 = vpop.f32.mrf.mxu2  ;;  %v1680_v11 = vpop.f32.mrf.mxu1 }
 0x150   : > { %v1767_v43 = vadd.f32 %v1766_v62, %v1678_v47  ;;  %v1855_v6 = vpop.f32.mrf.mxu3  ;;  %v1681_v19 = vadd.f32 %v1680_v11, %v7277_v30 }
 0x152   : > { %v1856_v18 = vadd.f32 %v1855_v6, %v1767_v43  ;;  %1719 = vmatmul.bf16.gmra.mxu1 %v5074_v8  ;;  %v5114_v6 = vor.u32 %v6368_v13, %v5111_v55  ;;  %v5117_v8 = vld [vmem:[%s7008_s25 + $0x350] sm:$0xf] }
 0x154   : > { %v7504_v20 = vadd.f32 %v1944_v21, %v1856_v18  ;;  %1808 = vmatmul.bf16.gmra.mxu2 %v5078_v10  ;;  %v6372_v21 = vld [vmem:[%s7008_s25 + $0x364] sm:$0xf0]  ;;  %v6373_v10 = vld [vmem:[%s7008_s25 + $0x36c] sm:$0xf0] }
 0x155   : > { %1897 = vmatmul.bf16.gmra.mxu3 %v5082_v14  ;;  %v1947_v26 = vpop.f32.mrf.mxu0  ;;  %v5110_v62 = vor.u32 %v6372_v21, %v5109_v52  ;;  %v5118_v15 = vor.u32 %v6373_v10, %v5117_v8 }
 0x157   : > { %v1769_v40 = vpop.f32.mrf.mxu2  ;;  %v1682_v24 = vpop.f32.mrf.mxu1 }
 0x158   : > { %v1770_v30 = vadd.f32 %v1769_v40, %v1681_v19  ;;  %v1858_v0 = vpop.f32.mrf.mxu3  ;;  %1986 = vmatmul.bf16.gmra.mxu0 %v5086_v23  ;;  %v1683_v32 = vadd.f32 %v1682_v24, %v7297_v41  ;;  %v5135_v24 = vld [vmem:[%s7008_s25 + $0x3a0] sm:$0xf0] }
 0x15a   : > { %v1859_v42 = vadd.f32 %v1858_v0, %v1770_v30  ;;  %v6375_v30 = vld [vmem:[%s7008_s25 + $0x384] sm:$0xf] }
 0x15b   : > { %v5138_v21 = vor.u32 %v6375_v30, %v5135_v24  ;;  %v5175_v30 = vld [vmem:[%s7008_s25 + $0x3e8] sm:$0xf0] }
 0x15c   : > { %v7516_v45 = vadd.f32 %v1947_v26, %v1859_v42  ;;  %v5141_v42 = vld [vmem:[%s7008_s25 + $0x388] sm:$0xf] }
 0x15d   : > { %v7519_v47 = vpop.f32.mrf.mxu0 }
 0x15f   : > { %v1771_v39 = vpop.f32.mrf.mxu2  ;;  %v1685_v43 = vpop.f32.mrf.mxu1 }
 0x160   : > { %v1772_v58 = vadd.f32 %v1771_v39, %v1683_v32  ;;  %v1860_v41 = vpop.f32.mrf.mxu3  ;;  %v1686_v14 = vadd.f32 %v1685_v43, %v7316_v59  ;;  %v6459_v59 = vld [vmem:[%s8252_s2 + $0x20] sm:$0xff]  ;;  %v6380_v32 = vld [vmem:[%s7008_s25 + $0x3a4] sm:$0xf0]  ;;  %v5146_v39 = vor.u32 %v6376_v61, %v5143_v46 }
 0x161   : > { %2389 = vmatpush.bf16.msra.mxu0 %v6459_v59  ;;  %v5142_v13 = vor.u32 %v6380_v32, %v5141_v42  ;;  %v6384_v59 = vld [vmem:[%s7008_s25 + $0x3cc] sm:$0xf] }
 0x162   : > { %v7528_v11 = vadd.f32 %v1860_v41, %v1772_v58  ;;  %1724 = vmatmul.bf16.gmra.mxu1 %v5106_v5  ;;  %v5149_v58 = vld [vmem:[%s7008_s25 + $0x390] sm:$0xf] }
 0x163   : > { %v6381_v41 = vld [vmem:[%s7008_s25 + $0x3ac] sm:$0xf0] }
 0x164   : > { %1813 = vmatmul.bf16.gmra.mxu2 %v5110_v62  ;;  %v5150_v43 = vor.u32 %v6381_v41, %v5149_v58 }
 0x165   : > { %1902 = vmatmul.bf16.gmra.mxu3 %v5114_v6  ;;  %v1952_v17 = vpop.f32.mrf.mxu0 }
 0x167   : > { %v1774_v18 = vpop.f32.mrf.mxu2  ;;  %v1687_v26 = vpop.f32.mrf.mxu1 }
 0x168   : > { %v1775_v19 = vadd.f32 %v1774_v18, %v1686_v14  ;;  %v1863_v23 = vpop.f32.mrf.mxu3  ;;  %1991 = vmatmul.bf16.gmra.mxu0 %v5118_v15  ;;  %v1688_v29 = vadd.f32 %v1687_v26, %v7327_v3  ;;  %v5167_v26 = vld [vmem:[%s7008_s25 + $0x3e0] sm:$0xf0] }
 0x16a   : > { %v1864_v27 = vadd.f32 %v1863_v23, %v1775_v19  ;;  %v6383_v19 = vld [vmem:[%s7008_s25 + $0x3c4] sm:$0xf] }
 0x16b   : > { %v5170_v61 = vor.u32 %v6383_v19, %v5167_v26  ;;  %v6270_v19 = vld [vmem:[%s7008_s25 + $0x34] sm:$0xf0]  ;;  %v6266_v26 = vld [vmem:[%s7008_s25 + $0x1c] sm:$0xf] }
 0x16c   : > { %v7535_v40 = vadd.f32 %v1952_v17, %v1864_v27  ;;  %v5173_v27 = vld [vmem:[%s7008_s25 + $0x3c8] sm:$0xf] }
 0x16d   : > { %v7538_v0 = vpop.f32.mrf.mxu0 }
 0x16f   : > { %v1776_v49 = vpop.f32.mrf.mxu2  ;;  %v1690_v55 = vpop.f32.mrf.mxu1 }
 0x170   : > { %v1777_v52 = vadd.f32 %v1776_v49, %v1688_v29  ;;  %v1865_v3 = vpop.f32.mrf.mxu3  ;;  %v1691_v62 = vadd.f32 %v1690_v55, %v7346_v22  ;;  %v6388_v29 = vld [vmem:[%s7008_s25 + $0x3e4] sm:$0xf0] }
 0x171   : > { %v5174_v46 = vor.u32 %v6388_v29, %v5173_v27  ;;  %v4711_v27 = vld [vmem:[%s7008_s25 + $0x38] sm:$0xf0] }
 0x172   : > { %v7547_v5 = vadd.f32 %v1865_v3, %v1777_v52  ;;  %1729 = vmatmul.bf16.gmra.mxu1 %v5138_v21  ;;  %v5178_v52 = vor.u32 %v6384_v59, %v5175_v30  ;;  %v6389_v3 = vld [vmem:[%s7008_s25 + $0x3ec] sm:$0xf0] }
 0x174   : > { %1818 = vmatmul.bf16.gmra.mxu2 %v5142_v13 }
 0x175   : > { %1907 = vmatmul.bf16.gmra.mxu3 %v5146_v39  ;;  %v1957_v6 = vpop.f32.mrf.mxu0 }
 0x177   : > { %v1779_v8 = vpop.f32.mrf.mxu2  ;;  %v1692_v15 = vpop.f32.mrf.mxu1 }
 0x178   : > { %v1780_v10 = vadd.f32 %v1779_v8, %v1691_v62  ;;  %v1868_v14 = vpop.f32.mrf.mxu3  ;;  %1996 = vmatmul.bf16.gmra.mxu0 %v5150_v43  ;;  %v1693_v18 = vadd.f32 %v1692_v15, %v7363_v34  ;;  %v5181_v34 = vld [vmem:[%s7008_s25 + $0x3d0] sm:$0xf] }
 0x179   : > { %v5182_v55 = vor.u32 %v6389_v3, %v5181_v34 }
 0x17a   : > { %v1869_v17 = vadd.f32 %v1868_v14, %v1780_v10  ;;  %v6265_v14 = vld [vmem:[%s7008_s25 + $0x14] sm:$0xf] }
 0x17c   : > { %v7551_v22 = vadd.f32 %v1957_v6, %v1869_v17  ;;  %v4703_v17 = vld [vmem:[%s7008_s25 + $0x30] sm:$0xf0] }
 0x17d   : > { %v7554_v23 = vpop.f32.mrf.mxu0 }
 0x17f   : > { %v1781_v24 = vpop.f32.mrf.mxu2  ;;  %v1695_v49 = vpop.f32.mrf.mxu1 }
 0x180   : > { %v1782_v42 = vadd.f32 %v1781_v24, %v1693_v18  ;;  %v1870_v32 = vpop.f32.mrf.mxu3  ;;  %v1696_v13 = vadd.f32 %v1695_v49, %v7385_v60  ;;  %v6458_v60 = vld [vmem:[%s8252_s2 + $0x18] sm:$0xff]  ;;  %v4706_v24 = vor.u32 %v6265_v14, %v4703_v17 }
 0x181   : > { %2390 = vmatpush.bf16.msra.mxu0 %v6458_v60  ;;  %v4709_v18 = vld [vmem:[%s7008_s25 + $0x18] sm:$0xf]  ;;  %v4743_v60 = vld [vmem:[%s7008_s25 + $0x78] sm:$0xf0] }
 0x182   : > { %v7563_v21 = vadd.f32 %v1870_v32, %v1782_v42  ;;  %1734 = vmatmul.bf16.gmra.mxu1 %v5170_v61  ;;  %v4714_v32 = vor.u32 %v6266_v26, %v4711_v27 }
 0x184   : > { %1823 = vmatmul.bf16.gmra.mxu2 %v5174_v46 }
 0x185   : > { %1912 = vmatmul.bf16.gmra.mxu3 %v5178_v52  ;;  %v1962_v39 = vpop.f32.mrf.mxu0 }
 0x187   : > { %v1784_v58 = vpop.f32.mrf.mxu2  ;;  %v1697_v43 = vpop.f32.mrf.mxu1 }
 0x188   : > { %v1785_v41 = vadd.f32 %v1784_v58, %v1696_v13  ;;  %v1873_v62 = vpop.f32.mrf.mxu3  ;;  %2001 = vmatmul.bf16.gmra.mxu0 %v5182_v55  ;;  %v1698_v8 = vadd.f32 %v1697_v43, %v7396_v9  ;;  %v4710_v9 = vor.u32 %v6270_v19, %v4709_v18  ;;  %v4741_v43 = vld [vmem:[%s7008_s25 + $0x58] sm:$0xf] }
 0x18a   : > { %v1874_v6 = vadd.f32 %v1873_v62, %v1785_v41  ;;  %v6273_v41 = vld [vmem:[%s7008_s25 + $0x54] sm:$0xf] }
 0x18c   : > { %v7570_v10 = vadd.f32 %v1962_v39, %v1874_v6  ;;  %v6278_v6 = vld [vmem:[%s7008_s25 + $0x74] sm:$0xf0] }
 0x18d   : > { %v7573_v15 = vpop.f32.mrf.mxu0  ;;  %v4742_v26 = vor.u32 %v6278_v6, %v4741_v43 }
 0x18f   : > { %v1786_v29 = vpop.f32.mrf.mxu2  ;;  %v1700_v42 = vpop.f32.mrf.mxu1 }
 0x190   : > { %v1787_v59 = vadd.f32 %v1786_v29, %v1698_v8  ;;  %v1875_v30 = vpop.f32.mrf.mxu3  ;;  %v1701_v46 = vadd.f32 %v1700_v42, %v7288_v36  ;;  %v4735_v36 = vld [vmem:[%s7008_s25 + $0x70] sm:$0xf0]  ;;  %v6274_v8 = vld [vmem:[%s7008_s25 + $0x5c] sm:$0xf] }
 0x191   : > { %v4738_v19 = vor.u32 %v6273_v41, %v4735_v36  ;;  %v4746_v29 = vor.u32 %v6274_v8, %v4743_v60  ;;  %v6282_v41 = vld [vmem:[%s7008_s25 + $0x9c] sm:$0xf] }
 0x192   : > { %v7580_v61 = vadd.f32 %v1875_v30, %v1787_v59  ;;  %2015 = vmatmul.bf16.vlgmr.msra.gmra.mxu1 %v4706_v24  ;;  %v4775_v36 = vld [vmem:[%s7008_s25 + $0xb8] sm:$0xf0] }
 0x194   : > { %2104 = vmatmul.bf16.vlgmr.msra.gmra.mxu2 %v4710_v9 }
 0x195   : > { %2193 = vmatmul.bf16.vlgmr.msra.gmra.mxu3 %v4714_v32  ;;  %v1967_v49 = vpop.f32.mrf.mxu0 }
 0x197   : > { %v1789_v52 = vpop.f32.mrf.mxu2  ;;  %v1702_v13 = vpop.f32.mrf.mxu1 }
 0x198   : > { %v1790_v34 = vadd.f32 %v1789_v52, %v1701_v46  ;;  %v1878_v3 = vpop.f32.mrf.mxu3  ;;  %v1703_v39 = vadd.f32 %v1702_v13, %v7308_v50  ;;  %v4767_v13 = vld [vmem:[%s7008_s25 + $0xb0] sm:$0xf0] }
 0x19a   : > { %v1879_v55 = vadd.f32 %v1878_v3, %v1790_v34  ;;  %v6281_v34 = vld [vmem:[%s7008_s25 + $0x94] sm:$0xf] }
 0x19b   : > { %v4770_v60 = vor.u32 %v6281_v34, %v4767_v13  ;;  %v6290_v34 = vld [vmem:[%s7008_s25 + $0xdc] sm:$0xf] }
 0x19c   : > { %v7584_v58 = vadd.f32 %v1967_v49, %v1879_v55  ;;  %v4773_v55 = vld [vmem:[%s7008_s25 + $0x98] sm:$0xf]  ;;  %v4807_v13 = vld [vmem:[%s7008_s25 + $0xf8] sm:$0xf0] }
 0x19d   : > { %v7587_v62 = vpop.f32.mrf.mxu0 }
 0x19f   : > { %v1791_v14 = vpop.f32.mrf.mxu2  ;;  %v1705_v27 = vpop.f32.mrf.mxu1 }
 0x1a0   : > { %v1792_v17 = vadd.f32 %v1791_v14, %v1703_v39  ;;  %v1880_v18 = vpop.f32.mrf.mxu3  ;;  %v1706_v50 = vadd.f32 %v1705_v27, %v7321_v63  ;;  %v6457_v63 = vld [vmem:[%s8252_s2 + $0x10] sm:$0xff]  ;;  %v6286_v39 = vld [vmem:[%s7008_s25 + $0xb4] sm:$0xf0] }
 0x1a1   : > { %2391 = vmatpush.bf16.msra.mxu0 %v6457_v63  ;;  %v6294_v63 = vld [vmem:[%s7008_s25 + $0xf4] sm:$0xf0] }
 0x1a2   : > { %v7594_v59 = vadd.f32 %v1880_v18, %v1792_v17  ;;  %2020 = vmatmul.bf16.gmra.mxu1 %v4738_v19  ;;  %v4778_v17 = vor.u32 %v6282_v41, %v4775_v36 }
 0x1a4   : > { %2109 = vmatmul.bf16.gmra.mxu2 %v4742_v26 }
 0x1a5   : > { %2198 = vmatmul.bf16.gmra.mxu3 %v4746_v29  ;;  %v1972_v30 = vpop.f32.mrf.mxu0 }
 0x1a7   : > { %v1794_v24 = vpop.f32.mrf.mxu2  ;;  %v1707_v32 = vpop.f32.mrf.mxu1 }
 0x1a8   : > { %v1795_v9 = vadd.f32 %v1794_v24, %v1706_v50  ;;  %v1883_v42 = vpop.f32.mrf.mxu3  ;;  %v1708_v49 = vadd.f32 %v1707_v32, %v7338_v12  ;;  %v4774_v12 = vor.u32 %v6286_v39, %v4773_v55  ;;  %v6289_v32 = vld [vmem:[%s7008_s25 + $0xd4] sm:$0xf] }
 0x1aa   : > { %v1884_v46 = vadd.f32 %v1883_v42, %v1795_v9 }
 0x1ac   : > { %v7601_v52 = vadd.f32 %v1972_v30, %v1884_v46 }
 0x1ad   : > { %v7604_v3 = vpop.f32.mrf.mxu0 }
 0x1af   : > { %v1796_v43 = vpop.f32.mrf.mxu2  ;;  %v1710_v14 = vpop.f32.mrf.mxu1 }
 0x1b0   : > { %v1797_v6 = vadd.f32 %v1796_v43, %v1708_v49  ;;  %v1885_v8 = vpop.f32.mrf.mxu3  ;;  %v1711_v19 = vadd.f32 %v1710_v14, %v7357_v28  ;;  %v4799_v28 = vld [vmem:[%s7008_s25 + $0xf0] sm:$0xf0]  ;;  %v4805_v49 = vld [vmem:[%s7008_s25 + $0xd8] sm:$0xf] }
 0x1b1   : > { %v4802_v36 = vor.u32 %v6289_v32, %v4799_v28  ;;  %v4806_v43 = vor.u32 %v6294_v63, %v4805_v49  ;;  %v4837_v32 = vld [vmem:[%s7008_s25 + $0x118] sm:$0xf]  ;;  %v6298_v49 = vld [vmem:[%s7008_s25 + $0x11c] sm:$0xf] }
 0x1b2   : > { %v7611_v18 = vadd.f32 %v1885_v8, %v1797_v6  ;;  %2025 = vmatmul.bf16.gmra.mxu1 %v4770_v60  ;;  %v4810_v8 = vor.u32 %v6290_v34, %v4807_v13  ;;  %v6302_v28 = vld [vmem:[%s7008_s25 + $0x134] sm:$0xf0]  ;;  %v4839_v63 = vld [vmem:[%s7008_s25 + $0x138] sm:$0xf0] }
 0x1b4   : > { %2114 = vmatmul.bf16.gmra.mxu2 %v4774_v12 }
 0x1b5   : > { %2203 = vmatmul.bf16.gmra.mxu3 %v4778_v17  ;;  %v1977_v26 = vpop.f32.mrf.mxu0 }
 0x1b7   : > { %v1799_v27 = vpop.f32.mrf.mxu2  ;;  %v1712_v30 = vpop.f32.mrf.mxu1 }
 0x1b8   : > { %v1800_v29 = vadd.f32 %v1799_v27, %v1711_v19  ;;  %v1888_v50 = vpop.f32.mrf.mxu3  ;;  %v1713_v9 = vadd.f32 %v1712_v30, %v7377_v48  ;;  %v6297_v30 = vld [vmem:[%s7008_s25 + $0x114] sm:$0xf] }
 0x1ba   : > { %v1889_v24 = vadd.f32 %v1888_v50, %v1800_v29 }
 0x1bc   : > { %v7615_v42 = vadd.f32 %v1977_v26, %v1889_v24 }
 0x1bd   : > { %v7618_v46 = vpop.f32.mrf.mxu0 }
 0x1bf   : > { %v1801_v55 = vpop.f32.mrf.mxu2  ;;  %v1715_v6 = vpop.f32.mrf.mxu1 }
 0x1c0   : > { %v1802_v39 = vadd.f32 %v1801_v55, %v1713_v9  ;;  %v1890_v41 = vpop.f32.mrf.mxu3  ;;  %v1716_v48 = vadd.f32 %v1715_v6, %v7390_v4  ;;  %v6456_v4 = vld [vmem:[%s8252_s2 + $0x8] sm:$0xff]  ;;  %v4831_v9 = vld [vmem:[%s7008_s25 + $0x130] sm:$0xf0] }
 0x1c1   : > { %2392 = vmatpush.bf16.msra.mxu0 %v6456_v4 }
 0x1c2   : > { %v7625_v60 = vadd.f32 %v1890_v41, %v1802_v39  ;;  %2030 = vmatmul.bf16.gmra.mxu1 %v4802_v36  ;;  %v4834_v39 = vor.u32 %v6297_v30, %v4831_v9  ;;  %v4842_v36 = vor.u32 %v6298_v49, %v4839_v63  ;;  %v4869_v30 = vld [vmem:[%s7008_s25 + $0x158] sm:$0xf] }
 0x1c3   : > { %v6310_v9 = vld [vmem:[%s7008_s25 + $0x174] sm:$0xf0] }
 0x1c4   : > { %2119 = vmatmul.bf16.gmra.mxu2 %v4806_v43 }
 0x1c5   : > { %2208 = vmatmul.bf16.gmra.mxu3 %v4810_v8  ;;  %v1982_v12 = vpop.f32.mrf.mxu0 }
 0x1c7   : > { %v1804_v14 = vpop.f32.mrf.mxu2  ;;  %v1717_v26 = vpop.f32.mrf.mxu1 }
 0x1c8   : > { %v1805_v17 = vadd.f32 %v1804_v14, %v1716_v48  ;;  %v1893_v19 = vpop.f32.mrf.mxu3  ;;  %v1718_v29 = vadd.f32 %v1717_v26, %v7412_v25  ;;  %v4838_v25 = vor.u32 %v6302_v28, %v4837_v32  ;;  %v6306_v32 = vld [vmem:[%s7008_s25 + $0x15c] sm:$0xf] }
 0x1c9   : > { %v4871_v28 = vld [vmem:[%s7008_s25 + $0x178] sm:$0xf0] }
 0x1ca   : > { %v1894_v27 = vadd.f32 %v1893_v19, %v1805_v17 }
 0x1cc   : > { %v7632_v50 = vadd.f32 %v1982_v12, %v1894_v27 }
 0x1cd   : > { %v7635_v24 = vpop.f32.mrf.mxu0 }
 0x1cf   : > { %v1806_v34 = vpop.f32.mrf.mxu2  ;;  %v1720_v41 = vpop.f32.mrf.mxu1 }
 0x1d0   : > { %v1807_v13 = vadd.f32 %v1806_v34, %v1718_v29  ;;  %v1895_v55 = vpop.f32.mrf.mxu3  ;;  %v1721_v6 = vadd.f32 %v1720_v41, %v7291_v38  ;;  %v6305_v29 = vld [vmem:[%s7008_s25 + $0x154] sm:$0xf] }
 0x1d1   : > { %v4863_v38 = vld [vmem:[%s7008_s25 + $0x170] sm:$0xf0] }
 0x1d2   : > { %v7642_v43 = vadd.f32 %v1895_v55, %v1807_v13  ;;  %2035 = vmatmul.bf16.gmra.mxu1 %v4834_v39  ;;  %v4866_v13 = vor.u32 %v6305_v29, %v4863_v38  ;;  %v4870_v55 = vor.u32 %v6310_v9, %v4869_v30  ;;  %v4895_v38 = vld [vmem:[%s7008_s25 + $0x1b0] sm:$0xf0]  ;;  %v4901_v30 = vld [vmem:[%s7008_s25 + $0x198] sm:$0xf] }
 0x1d3   : > { %v6318_v9 = vld [vmem:[%s7008_s25 + $0x1b4] sm:$0xf0] }
 0x1d4   : > { %2124 = vmatmul.bf16.gmra.mxu2 %v4838_v25  ;;  %v4874_v25 = vor.u32 %v6306_v32, %v4871_v28  ;;  %v6314_v32 = vld [vmem:[%s7008_s25 + $0x19c] sm:$0xf] }
 0x1d5   : > { %2213 = vmatmul.bf16.gmra.mxu3 %v4842_v36  ;;  %v1987_v8 = vpop.f32.mrf.mxu0  ;;  %v4903_v28 = vld [vmem:[%s7008_s25 + $0x1b8] sm:$0xf0] }
 0x1d7   : > { %v1809_v48 = vpop.f32.mrf.mxu2  ;;  %v1722_v17 = vpop.f32.mrf.mxu1 }
 0x1d8   : > { %v1810_v12 = vadd.f32 %v1809_v48, %v1721_v6  ;;  %v1898_v14 = vpop.f32.mrf.mxu3  ;;  %v1723_v26 = vadd.f32 %v1722_v17, %v7311_v54 }
 0x1da   : > { %v1899_v19 = vadd.f32 %v1898_v14, %v1810_v12 }
 0x1dc   : > { %v7646_v27 = vadd.f32 %v1987_v8, %v1899_v19 }
 0x1dd   : > { %v7649_v4 = vpop.f32.mrf.mxu0 }
 0x1df   : > { %v1811_v49 = vpop.f32.mrf.mxu2  ;;  %v1725_v39 = vpop.f32.mrf.mxu1 }
 0x1e0   : > { %v1812_v63 = vadd.f32 %v1811_v49, %v1723_v26  ;;  %v1900_v34 = vpop.f32.mrf.mxu3  ;;  %v1726_v54 = vadd.f32 %v1725_v39, %v7324_v1  ;;  %v6455_v1 = vld [vmem:[%s8252_s2] sm:$0xff]  ;;  %v6313_v26 = vld [vmem:[%s7008_s25 + $0x194] sm:$0xf]  ;;  %v4906_v39 = vor.u32 %v6314_v32, %v4903_v28  ;;  %v4935_v32 = vld [vmem:[%s7008_s25 + $0x1f8] sm:$0xf0] }
 0x1e1   : > { %2393 = vmatpush.bf16.msra.mxu0 %v6455_v1 }
 0x1e2   : > { %v7656_v41 = vadd.f32 %v1900_v34, %v1812_v63  ;;  %2040 = vmatmul.bf16.gmra.mxu1 %v4866_v13  ;;  %v4898_v13 = vor.u32 %v6313_v26, %v4895_v38  ;;  %v6321_v26 = vld [vmem:[%s7008_s25 + $0x1d4] sm:$0xf] }
 0x1e3   : > { %v4927_v38 = vld [vmem:[%s7008_s25 + $0x1f0] sm:$0xf0] }
 0x1e4   : > { %2129 = vmatmul.bf16.gmra.mxu2 %v4870_v55 }
 0x1e5   : > { %2218 = vmatmul.bf16.gmra.mxu3 %v4874_v25  ;;  %v1992_v36 = vpop.f32.mrf.mxu0 }
 0x1e7   : > { %v1814_v6 = vpop.f32.mrf.mxu2  ;;  %v1727_v12 = vpop.f32.mrf.mxu1 }
 0x1e8   : > { %v1815_v8 = vadd.f32 %v1814_v6, %v1726_v54  ;;  %v1903_v48 = vpop.f32.mrf.mxu3  ;;  %v1728_v17 = vadd.f32 %v1727_v12, %v7341_v16  ;;  %v4902_v16 = vor.u32 %v6318_v9, %v4901_v30  ;;  %v4933_v30 = vld [vmem:[%s7008_s25 + $0x1d8] sm:$0xf] }
 0x1e9   : > { %v6326_v9 = vld [vmem:[%s7008_s25 + $0x1f4] sm:$0xf0] }
 0x1ea   : > { %v1904_v14 = vadd.f32 %v1903_v48, %v1815_v8 }
 0x1ec   : > { %v7663_v19 = vadd.f32 %v1992_v36, %v1904_v14 }
 0x1ed   : > { %v7666_v29 = vpop.f32.mrf.mxu0 }
 0x1ef   : > { %v1816_v49 = vpop.f32.mrf.mxu2  ;;  %v1730_v55 = vpop.f32.mrf.mxu1 }
 0x1f0   : > { %v1817_v63 = vadd.f32 %v1816_v49, %v1728_v17  ;;  %v1905_v34 = vpop.f32.mrf.mxu3  ;;  %v1731_v54 = vadd.f32 %v1730_v55, %v7360_v31  ;;  %v6322_v31 = vld [vmem:[%s7008_s25 + $0x1dc] sm:$0xf] }
 0x1f2   : > { %v7673_v25 = vadd.f32 %v1905_v34, %v1817_v63  ;;  %2045 = vmatmul.bf16.gmra.mxu1 %v4898_v13  ;;  %v4930_v13 = vor.u32 %v6321_v26, %v4927_v38  ;;  %v6329_v38 = vld [vmem:[%s7008_s25 + $0x214] sm:$0xf] }
 0x1f4   : > { %2134 = vmatmul.bf16.gmra.mxu2 %v4902_v16  ;;  %v4934_v16 = vor.u32 %v6326_v9, %v4933_v30  ;;  %v4959_v30 = vld [vmem:[%s7008_s25 + $0x230] sm:$0xf0]  ;;  %v4965_v9 = vld [vmem:[%s7008_s25 + $0x218] sm:$0xf] }
 0x1f5   : > { %2223 = vmatmul.bf16.gmra.mxu3 %v4906_v39  ;;  %v1997_v36 = vpop.f32.mrf.mxu0  ;;  %v4938_v39 = vor.u32 %v6322_v31, %v4935_v32  ;;  %v6334_v31 = vld [vmem:[%s7008_s25 + $0x234] sm:$0xf0]  ;;  %v4967_v32 = vld [vmem:[%s7008_s25 + $0x238] sm:$0xf0] }
 0x1f7   : > { %v1819_v6 = vpop.f32.mrf.mxu2  ;;  %v1732_v12 = vpop.f32.mrf.mxu1 }
 0x1f8   : > { %v1820_v8 = vadd.f32 %v1819_v6, %v1731_v54  ;;  %v1908_v48 = vpop.f32.mrf.mxu3  ;;  %v1733_v17 = vadd.f32 %v1732_v12, %v7380_v53 }
 0x1fa   : > { %v1909_v14 = vadd.f32 %v1908_v48, %v1820_v8 }
 0x1fc   : > { %v7677_v1 = vadd.f32 %v1997_v36, %v1909_v14 }
 0x1fd   : > { %v7685_v49 = vpop.f32.mrf.mxu0 }
 0x1ff   : > { %v1821_v28 = vpop.f32.mrf.mxu2  ;;  %v1735_v55 = vpop.f32.mrf.mxu1 }
 0x200   : > { %v1822_v63 = vadd.f32 %v1821_v28, %v1733_v17  ;;  %v1910_v34 = vpop.f32.mrf.mxu3  ;;  %v1736_v54 = vadd.f32 %v1735_v55, %v7393_v7  ;;  %v6330_v7 = vld [vmem:[%s7008_s25 + $0x21c] sm:$0xf] }
 0x202   : > { %v7687_v53 = vadd.f32 %v1910_v34, %v1822_v63  ;;  %2050 = vmatmul.bf16.gmra.mxu1 %v4930_v13  ;;  %v4962_v13 = vor.u32 %v6329_v38, %v4959_v30  ;;  %v6342_v38 = vld [vmem:[%s7008_s25 + $0x274] sm:$0xf0] }
 0x204   : > { %2139 = vmatmul.bf16.gmra.mxu2 %v4934_v16  ;;  %v4966_v16 = vor.u32 %v6334_v31, %v4965_v9  ;;  %v6338_v9 = vld [vmem:[%s7008_s25 + $0x25c] sm:$0xf] }
 0x205   : > { %2228 = vmatmul.bf16.gmra.mxu3 %v4938_v39  ;;  %v2002_v12 = vpop.f32.mrf.mxu0  ;;  %v4999_v31 = vld [vmem:[%s7008_s25 + $0x278] sm:$0xf0] }
 0x207   : > { %v1824_v36 = vpop.f32.mrf.mxu2  ;;  %v1737_v48 = vpop.f32.mrf.mxu1 }
 0x208   : > { %v1825_v6 = vadd.f32 %v1824_v36, %v1736_v54  ;;  %v1913_v8 = vpop.f32.mrf.mxu3  ;;  %v1738_v17 = vadd.f32 %v1737_v48, %v7415_v33  ;;  %v4970_v33 = vor.u32 %v6330_v7, %v4967_v32 }
 0x20a   : > { %v1914_v14 = vadd.f32 %v1913_v8, %v1825_v6 }
 0x20c   : > { %v7691_v26 = vadd.f32 %v2002_v12, %v1914_v14  ;;  %v6337_v12 = vld [vmem:[%s7008_s25 + $0x254] sm:$0xf] }
 0x20d   : > { %v4991_v14 = vld [vmem:[%s7008_s25 + $0x270] sm:$0xf0] }
 0x20f   : > { %v1826_v28 = vpop.f32.mrf.mxu2  ;;  %v2016_v55 = vpop.f32.mrf.mxu1 }
 0x210   : > { %v1827_v63 = vadd.f32 %v1826_v28, %v1738_v17  ;;  %v1915_v34 = vpop.f32.mrf.mxu3  ;;  %v2017_v8 = vadd.f32 %v2016_v55, %v7430_v2  ;;  %v4997_v17 = vld [vmem:[%s7008_s25 + $0x258] sm:$0xf] }
 0x212   : > { %v7699_v39 = vadd.f32 %v1915_v34, %v1827_v63  ;;  %2055 = vmatmul.bf16.gmra.mxu1 %v4962_v13  ;;  %v4994_v34 = vor.u32 %v6337_v12, %v4991_v14  ;;  %v4998_v13 = vor.u32 %v6342_v38, %v4997_v17  ;;  %v6345_v14 = vld [vmem:[%s7008_s25 + $0x294] sm:$0xf]  ;;  %v5029_v38 = vld [vmem:[%s7008_s25 + $0x298] sm:$0xf] }
 0x213   : > { %v5023_v17 = vld [vmem:[%s7008_s25 + $0x2b0] sm:$0xf0] }
 0x214   : > { %2144 = vmatmul.bf16.gmra.mxu2 %v4966_v16 }
 0x215   : > { %2233 = vmatmul.bf16.gmra.mxu3 %v4970_v33  ;;  %v5002_v33 = vor.u32 %v6338_v9, %v4999_v31  ;;  %v6346_v31 = vld [vmem:[%s7008_s25 + $0x29c] sm:$0xf] }
 0x217   : > { %v2105_v54 = vpop.f32.mrf.mxu2  ;;  %v2018_v6 = vpop.f32.mrf.mxu1 }
 0x218   : > { %v2194_v36 = vpop.f32.mrf.mxu3  ;;  %v2106_v48 = vadd.f32 %v2105_v54, %v2017_v8  ;;  %v2019_v30 = vadd.f32 %v2018_v6, %v7442_v44 }
 0x21a   : > { %v2195_v32 = vadd.f32 %v2194_v36, %v2106_v48 }
 0x21c   : > { %v2274_v55 = vmax.f32 %v2195_v32, 0.0 }
 0x21f   : > { %v2107_v7 = vpop.f32.mrf.mxu2  ;;  %v2021_v16 = vpop.f32.mrf.mxu1 }
 0x220   : > { %v2108_v28 = vadd.f32 %v2107_v7, %v2019_v30  ;;  %v2196_v63 = vpop.f32.mrf.mxu3  ;;  %v2022_v48 = vadd.f32 %v2021_v16, %v7449_v57  ;;  %v6350_v30 = vld [vmem:[%s7008_s25 + $0x2b4] sm:$0xf0]  ;;  %v5031_v7 = vld [vmem:[%s7008_s25 + $0x2b8] sm:$0xf0] }
 0x222   : > { %v2197_v2 = vadd.f32 %v2196_v63, %v2108_v28  ;;  %2060 = vmatmul.bf16.gmra.mxu1 %v4994_v34 }
 0x224   : > { %v2275_v54 = vmax.f32 %v2197_v2, 0.0  ;;  %2149 = vmatmul.bf16.gmra.mxu2 %v4998_v13  ;;  %v5026_v13 = vor.u32 %v6345_v14, %v5023_v17  ;;  %v5055_v14 = vld [vmem:[%s7008_s25 + $0x2f0] sm:$0xf0]  ;;  %v5061_v17 = vld [vmem:[%s7008_s25 + $0x2d8] sm:$0xf] }
 0x225   : > { %2238 = vmatmul.bf16.gmra.mxu3 %v5002_v33  ;;  %v5030_v33 = vor.u32 %v6350_v30, %v5029_v38  ;;  %v6358_v38 = vld [vmem:[%s7008_s25 + $0x2f4] sm:$0xf0] }
 0x226   : > { %v2306_v44 = vpack.c.bf16 %v2275_v54, %v2274_v55  ;;  %v5034_v55 = vor.u32 %v6346_v31, %v5031_v7  ;;  %v5063_v31 = vld [vmem:[%s7008_s25 + $0x2f8] sm:$0xf0] }
 0x227   : > { %v2110_v36 = vpop.f32.mrf.mxu2  ;;  %v2023_v8 = vpop.f32.mrf.mxu1 }
 0x228   : > { %v2199_v6 = vpop.f32.mrf.mxu3  ;;  %2394 = vmatmul.bf16.vlgmr.msra.gmra.mxu0 %v2306_v44  ;;  %v2111_v12 = vadd.f32 %v2110_v36, %v2022_v48  ;;  %v2024_v9 = vadd.f32 %v2023_v8, %v7461_v37 }
 0x22a   : > { %v2200_v28 = vadd.f32 %v2199_v6, %v2111_v12  ;;  %v6353_v12 = vld [vmem:[%s7008_s25 + $0x2d4] sm:$0xf] }
 0x22c   : > { %v2276_v16 = vmax.f32 %v2200_v28, 0.0 }
 0x22f   : > { %v2112_v32 = vpop.f32.mrf.mxu2  ;;  %v2026_v2 = vpop.f32.mrf.mxu1 }
 0x230   : > { %v2113_v63 = vadd.f32 %v2112_v32, %v2024_v9  ;;  %v2201_v34 = vpop.f32.mrf.mxu3  ;;  %v2027_v8 = vadd.f32 %v2026_v2, %v7474_v56  ;;  %v6354_v9 = vld [vmem:[%s7008_s25 + $0x2dc] sm:$0xf] }
 0x232   : > { %v2202_v57 = vadd.f32 %v2201_v34, %v2113_v63  ;;  %2065 = vmatmul.bf16.gmra.mxu1 %v5026_v13  ;;  %v5058_v34 = vor.u32 %v6353_v12, %v5055_v14  ;;  %v5062_v13 = vor.u32 %v6358_v38, %v5061_v17  ;;  %v6366_v12 = vld [vmem:[%s7008_s25 + $0x334] sm:$0xf0]  ;;  %v6362_v17 = vld [vmem:[%s7008_s25 + $0x31c] sm:$0xf] }
 0x233   : > { %v5095_v38 = vld [vmem:[%s7008_s25 + $0x338] sm:$0xf0] }
 0x234   : > { %v2277_v54 = vmax.f32 %v2202_v57, 0.0  ;;  %2154 = vmatmul.bf16.gmra.mxu2 %v5030_v33 }
 0x235   : > { %2243 = vmatmul.bf16.gmra.mxu3 %v5034_v55  ;;  %v5066_v55 = vor.u32 %v6354_v9, %v5063_v31 }
 0x236   : > { %v2307_v37 = vpack.c.bf16 %v2277_v54, %v2276_v16 }
 0x237   : > { %v2115_v44 = vpop.f32.mrf.mxu2  ;;  %v2028_v6 = vpop.f32.mrf.mxu1 }
 0x238   : > { %v2204_v36 = vpop.f32.mrf.mxu3  ;;  %2399 = vmatmul.bf16.gmra.mxu0 %v2307_v37  ;;  %v2116_v48 = vadd.f32 %v2115_v44, %v2027_v8  ;;  %v2029_v30 = vadd.f32 %v2028_v6, %v7486_v35  ;;  %v6361_v6 = vld [vmem:[%s7008_s25 + $0x314] sm:$0xf] }
 0x239   : > { %v5087_v8 = vld [vmem:[%s7008_s25 + $0x330] sm:$0xf0] }
 0x23a   : > { %v2205_v32 = vadd.f32 %v2204_v36, %v2116_v48  ;;  %v5093_v48 = vld [vmem:[%s7008_s25 + $0x318] sm:$0xf] }
 0x23c   : > { %v2278_v2 = vmax.f32 %v2205_v32, 0.0  ;;  %v5090_v32 = vor.u32 %v6361_v6, %v5087_v8  ;;  %v6370_v8 = vld [vmem:[%s7008_s25 + $0x35c] sm:$0xf] }
 0x23f   : > { %v2117_v7 = vpop.f32.mrf.mxu2  ;;  %v2031_v33 = vpop.f32.mrf.mxu1 }
 0x240   : > { %v2118_v28 = vadd.f32 %v2117_v7, %v2029_v30  ;;  %v2206_v63 = vpop.f32.mrf.mxu3  ;;  %v2032_v44 = vadd.f32 %v2031_v33, %v7493_v51 }
 0x242   : > { %v2207_v56 = vadd.f32 %v2206_v63, %v2118_v28  ;;  %2070 = vmatmul.bf16.gmra.mxu1 %v5058_v34  ;;  %v5094_v28 = vor.u32 %v6366_v12, %v5093_v48  ;;  %v5098_v34 = vor.u32 %v6362_v17, %v5095_v38  ;;  %v5127_v48 = vld [vmem:[%s7008_s25 + $0x378] sm:$0xf0] }
 0x244   : > { %v2279_v57 = vmax.f32 %v2207_v56, 0.0  ;;  %2159 = vmatmul.bf16.gmra.mxu2 %v5062_v13 }
 0x245   : > { %2248 = vmatmul.bf16.gmra.mxu3 %v5066_v55 }
 0x246   : > { %v2308_v35 = vpack.c.bf16 %v2279_v57, %v2278_v2 }
 0x247   : > { %v2120_v16 = vpop.f32.mrf.mxu2  ;;  %v2033_v37 = vpop.f32.mrf.mxu1 }
 0x248   : > { %v2209_v54 = vpop.f32.mrf.mxu3  ;;  %2404 = vmatmul.bf16.gmra.mxu0 %v2308_v35  ;;  %v2121_v36 = vadd.f32 %v2120_v16, %v2032_v44  ;;  %v2034_v14 = vadd.f32 %v2033_v37, %v7504_v20  ;;  %v1950_v35 = vadd.f32 %v7519_v47, %v7528_v11  ;;  %v5119_v37 = vld [vmem:[%s7008_s25 + $0x370] sm:$0xf0]  ;;  %v5125_v44 = vld [vmem:[%s7008_s25 + $0x358] sm:$0xf] }
 0x24a   : > { %v2210_v9 = vadd.f32 %v2209_v54, %v2121_v36  ;;  %v6369_v54 = vld [vmem:[%s7008_s25 + $0x354] sm:$0xf]  ;;  %v6374_v36 = vld [vmem:[%s7008_s25 + $0x374] sm:$0xf0] }
 0x24c   : > { %v2280_v13 = vmax.f32 %v2210_v9, 0.0  ;;  %v5126_v9 = vor.u32 %v6374_v36, %v5125_v44 }
 0x24f   : > { %v2122_v30 = vpop.f32.mrf.mxu2  ;;  %v2036_v63 = vpop.f32.mrf.mxu1 }
 0x250   : > { %v2123_v31 = vadd.f32 %v2122_v30, %v2034_v14  ;;  %v2211_v7 = vpop.f32.mrf.mxu3  ;;  %v2037_v57 = vadd.f32 %v2036_v63, %v7516_v45  ;;  %v5122_v30 = vor.u32 %v6369_v54, %v5119_v37  ;;  %v5130_v45 = vor.u32 %v6370_v8, %v5127_v48 }
 0x252   : > { %v2212_v51 = vadd.f32 %v2211_v7, %v2123_v31  ;;  %2075 = vmatmul.bf16.gmra.mxu1 %v5090_v32 }
 0x254   : > { %v2281_v33 = vmax.f32 %v2212_v51, 0.0  ;;  %2164 = vmatmul.bf16.gmra.mxu2 %v5094_v28 }
 0x255   : > { %2253 = vmatmul.bf16.gmra.mxu3 %v5098_v34 }
 0x256   : > { %v2309_v20 = vpack.c.bf16 %v2281_v33, %v2280_v13  ;;  %v1955_v13 = vadd.f32 %v7538_v0, %v7547_v5 }
 0x257   : > { %v2125_v55 = vpop.f32.mrf.mxu2  ;;  %v2038_v2 = vpop.f32.mrf.mxu1 }
 0x258   : > { %v2214_v56 = vpop.f32.mrf.mxu3  ;;  %2409 = vmatmul.bf16.gmra.mxu0 %v2309_v20  ;;  %v2126_v16 = vadd.f32 %v2125_v55, %v2037_v57  ;;  %v2039_v6 = vadd.f32 %v2038_v2, %v1950_v35  ;;  %v6377_v20 = vld [vmem:[%s7008_s25 + $0x394] sm:$0xf]  ;;  %v6382_v2 = vld [vmem:[%s7008_s25 + $0x3b4] sm:$0xf0]  ;;  %v6378_v35 = vld [vmem:[%s7008_s25 + $0x39c] sm:$0xf] }
 0x259   : > { %v5151_v55 = vld [vmem:[%s7008_s25 + $0x3b0] sm:$0xf0] }
 0x25a   : > { %v2215_v14 = vadd.f32 %v2214_v56, %v2126_v16  ;;  %v5157_v56 = vld [vmem:[%s7008_s25 + $0x398] sm:$0xf]  ;;  %v5159_v16 = vld [vmem:[%s7008_s25 + $0x3b8] sm:$0xf0] }
 0x25b   : > { %v5158_v8 = vor.u32 %v6382_v2, %v5157_v56 }
 0x25c   : > { %v2282_v47 = vmax.f32 %v2215_v14, 0.0 }
 0x25f   : > { %v2127_v12 = vpop.f32.mrf.mxu2  ;;  %v2041_v31 = vpop.f32.mrf.mxu1 }
 0x260   : > { %v2128_v17 = vadd.f32 %v2127_v12, %v2039_v6  ;;  %v2216_v38 = vpop.f32.mrf.mxu3  ;;  %v2042_v51 = vadd.f32 %v2041_v31, %v7535_v40  ;;  %v5154_v6 = vor.u32 %v6377_v20, %v5151_v55  ;;  %v5162_v40 = vor.u32 %v6378_v35, %v5159_v16 }
 0x261   : > { %v1960_v31 = vadd.f32 %v7554_v23, %v7563_v21 }
 0x262   : > { %v2217_v7 = vadd.f32 %v2216_v38, %v2128_v17  ;;  %2080 = vmatmul.bf16.gmra.mxu1 %v5122_v30 }
 0x264   : > { %v2283_v11 = vmax.f32 %v2217_v7, 0.0  ;;  %2169 = vmatmul.bf16.gmra.mxu2 %v5126_v9  ;;  %v6385_v7 = vld [vmem:[%s7008_s25 + $0x3d4] sm:$0xf] }
 0x265   : > { %2258 = vmatmul.bf16.gmra.mxu3 %v5130_v45 }
 0x266   : > { %v2310_v32 = vpack.c.bf16 %v2283_v11, %v2282_v47  ;;  %v5183_v47 = vld [vmem:[%s7008_s25 + $0x3f0] sm:$0xf0]  ;;  %v5189_v11 = vld [vmem:[%s7008_s25 + $0x3d8] sm:$0xf] }
 0x267   : > { %v2130_v28 = vpop.f32.mrf.mxu2  ;;  %v2043_v34 = vpop.f32.mrf.mxu1  ;;  %v5186_v55 = vor.u32 %v6385_v7, %v5183_v47 }
 0x268   : > { %v2219_v63 = vpop.f32.mrf.mxu3  ;;  %2414 = vmatmul.bf16.gmra.mxu0 %v2310_v32  ;;  %v2131_v33 = vadd.f32 %v2130_v28, %v2042_v51  ;;  %v2044_v57 = vadd.f32 %v2043_v34, %v1955_v13  ;;  %v6390_v32 = vld [vmem:[%s7008_s25 + $0x3f4] sm:$0xf0]  ;;  %v5191_v34 = vld [vmem:[%s7008_s25 + $0x3f8] sm:$0xf0]  ;;  %v7766_v7 = vpop.f32.mrf.mxu0 }
 0x269   : > { %v5190_v56 = vor.u32 %v6390_v32, %v5189_v11 }
 0x26a   : > { %v2220_v37 = vadd.f32 %v2219_v63, %v2131_v33  ;;  %v6386_v63 = vld [vmem:[%s7008_s25 + $0x3dc] sm:$0xf]  ;;  %s2507_s25 = sshra.s32 %s4670_s11, 3 }
 0x26b   : > { %s5483_s6 = sshll.u32 %s2507_s25, 2 }
 0x26c   : > { %v2284_v0 = vmax.f32 %v2220_v37, 0.0  ;;  %s7773_s12 = scalar_lea.vmem [#allocation3], %s5483_s6 }
 0x26f   : > { %v2132_v54 = vpop.f32.mrf.mxu2  ;;  %v2046_v48 = vpop.f32.mrf.mxu1 }
 0x270   : > { %v2133_v44 = vadd.f32 %v2132_v54, %v2044_v57  ;;  %v2221_v36 = vpop.f32.mrf.mxu3  ;;  %v2047_v9 = vadd.f32 %v2046_v48, %v7551_v22  ;;  %v5194_v57 = vor.u32 %v6386_v63, %v5191_v34 }
 0x272   : > { %v2222_v12 = vadd.f32 %v2221_v36, %v2133_v44  ;;  %2085 = vmatmul.bf16.gmra.mxu1 %v5154_v6  ;;  %v1965_v36 = vadd.f32 %v7573_v15, %v7580_v61  ;;  %v1970_v15 = vadd.f32 %v7587_v62, %v7594_v59 }
 0x274   : > { %v2285_v5 = vmax.f32 %v2222_v12, 0.0  ;;  %2174 = vmatmul.bf16.gmra.mxu2 %v5158_v8 }
 0x275   : > { %2263 = vmatmul.bf16.gmra.mxu3 %v5162_v40 }
 0x276   : > { %v2311_v14 = vpack.c.bf16 %v2285_v5, %v2284_v0 }
 0x277   : > { %v2135_v17 = vpop.f32.mrf.mxu2  ;;  %v2048_v30 = vpop.f32.mrf.mxu1 }
 0x278   : > { %v2224_v38 = vpop.f32.mrf.mxu3  ;;  %2419 = vmatmul.bf16.gmra.mxu0 %v2311_v14  ;;  %v2136_v45 = vadd.f32 %v2135_v17, %v2047_v9  ;;  %v2049_v28 = vadd.f32 %v2048_v30, %v1960_v31 }
 0x27a   : > { %v2225_v13 = vadd.f32 %v2224_v38, %v2136_v45 }
 0x27c   : > { %v2286_v35 = vmax.f32 %v2225_v13, 0.0 }
 0x27f   : > { %v2137_v51 = vpop.f32.mrf.mxu2  ;;  %v2051_v2 = vpop.f32.mrf.mxu1 }
 0x280   : > { %v2138_v33 = vadd.f32 %v2137_v51, %v2049_v28  ;;  %v2226_v20 = vpop.f32.mrf.mxu3  ;;  %v2052_v44 = vadd.f32 %v2051_v2, %v7570_v10  ;;  %v1975_v2 = vadd.f32 %v7604_v3, %v7611_v18 }
 0x282   : > { %v2227_v22 = vadd.f32 %v2226_v20, %v2138_v33  ;;  %2090 = vmatmul.bf16.gmra.mxu1 %v5186_v55 }
 0x284   : > { %v2287_v16 = vmax.f32 %v2227_v22, 0.0  ;;  %2179 = vmatmul.bf16.gmra.mxu2 %v5190_v56 }
 0x285   : > { %2268 = vmatmul.bf16.gmra.mxu3 %v5194_v57 }
 0x286   : > { %v2312_v23 = vpack.c.bf16 %v2287_v16, %v2286_v35 }
 0x287   : > { %v2140_v21 = vpop.f32.mrf.mxu2  ;;  %v2053_v37 = vpop.f32.mrf.mxu1 }
 0x288   : > { %v2229_v54 = vpop.f32.mrf.mxu3  ;;  %2424 = vmatmul.bf16.gmra.mxu0 %v2312_v23  ;;  %v2141_v6 = vadd.f32 %v2140_v21, %v2052_v44  ;;  %v2054_v8 = vadd.f32 %v2053_v37, %v1965_v36 }
 0x28a   : > { %v2230_v40 = vadd.f32 %v2229_v54, %v2141_v6 }
 0x28c   : > { %v2288_v17 = vmax.f32 %v2230_v40, 0.0 }
 0x28f   : > { %v2142_v48 = vpop.f32.mrf.mxu2  ;;  %v2056_v5 = vpop.f32.mrf.mxu1 }
 0x290   : > { %v2143_v12 = vadd.f32 %v2142_v48, %v2054_v8  ;;  %v2231_v0 = vpop.f32.mrf.mxu3  ;;  %v2057_v10 = vadd.f32 %v2056_v5, %v7584_v58 }
 0x292   : > { %v2232_v14 = vadd.f32 %v2231_v0, %v2143_v12  ;;  %v1980_v0 = vadd.f32 %v7618_v46, %v7625_v60 }
 0x294   : > { %v2289_v38 = vmax.f32 %v2232_v14, 0.0 }
 0x296   : > { %v2313_v30 = vpack.c.bf16 %v2289_v38, %v2288_v17 }
 0x297   : > { %v2145_v9 = vpop.f32.mrf.mxu2  ;;  %v2058_v45 = vpop.f32.mrf.mxu1 }
 0x298   : > { %v2234_v31 = vpop.f32.mrf.mxu3  ;;  %2429 = vmatmul.bf16.gmra.mxu0 %v2313_v30  ;;  %v2146_v61 = vadd.f32 %v2145_v9, %v2057_v10  ;;  %v2059_v47 = vadd.f32 %v2058_v45, %v1970_v15 }
 0x29a   : > { %v2235_v32 = vadd.f32 %v2234_v31, %v2146_v61 }
 0x29c   : > { %v2290_v13 = vmax.f32 %v2235_v32, 0.0 }
 0x29f   : > { %v2147_v11 = vpop.f32.mrf.mxu2  ;;  %v2061_v34 = vpop.f32.mrf.mxu1 }
 0x2a0   : > { %v2148_v28 = vadd.f32 %v2147_v11, %v2059_v47  ;;  %v2236_v63 = vpop.f32.mrf.mxu3  ;;  %v2062_v59 = vadd.f32 %v2061_v34, %v7601_v52 }
 0x2a2   : > { %v2237_v51 = vadd.f32 %v2236_v63, %v2148_v28  ;;  %v1985_v63 = vadd.f32 %v7635_v24, %v7642_v43 }
 0x2a4   : > { %v2291_v33 = vmax.f32 %v2237_v51, 0.0 }
 0x2a5   : > { %v2395_v20 = vpop.f32.mrf.mxu0 }
 0x2a6   : > { %v2314_v55 = vpack.c.bf16 %v2291_v33, %v2290_v13 }
 0x2a7   : > { %v2150_v56 = vpop.f32.mrf.mxu2  ;;  %v2063_v62 = vpop.f32.mrf.mxu1 }
 0x2a8   : > { %v2239_v58 = vpop.f32.mrf.mxu3  ;;  %2434 = vmatmul.bf16.gmra.mxu0 %v2314_v55  ;;  %v2151_v57 = vadd.f32 %v2150_v56, %v2062_v59  ;;  %v2064_v35 = vadd.f32 %v2063_v62, %v1975_v2 }
 0x2aa   : > { %v2240_v21 = vadd.f32 %v2239_v58, %v2151_v57 }
 0x2ac   : > { %v2292_v6 = vmax.f32 %v2240_v21, 0.0 }
 0x2ad   : > { %v2397_v22 = vpop.f32.mrf.mxu0 }
 0x2ae   : > { %v6659_v16 = vpack.c.bf16 %v2397_v22, %v2395_v20 }
 0x2af   : > { %v2152_v23 = vpop.f32.mrf.mxu2  ;;  %v2066_v44 = vpop.f32.mrf.mxu1 }
 0x2b0   : > { %6660 = vst [vmem:[%s7773_s12] sm:$0xff] %v6659_v16   ;;  %v2153_v54 = vadd.f32 %v2152_v23, %v2064_v35  ;;  %v2241_v37 = vpop.f32.mrf.mxu3  ;;  %v2067_v12 = vadd.f32 %v2066_v44, %v7615_v42  ;;  %v1990_v23 = vadd.f32 %v7649_v4, %v7656_v41 }
 0x2b2   : > { %v2242_v36 = vadd.f32 %v2241_v37, %v2153_v54 }
 0x2b4   : > { %v2293_v52 = vmax.f32 %v2242_v36, 0.0 }
 0x2b5   : > { %v2400_v8 = vpop.f32.mrf.mxu0 }
 0x2b6   : > { %v2315_v48 = vpack.c.bf16 %v2293_v52, %v2292_v6 }
 0x2b7   : > { %v2155_v3 = vpop.f32.mrf.mxu2  ;;  %v2068_v40 = vpop.f32.mrf.mxu1 }
 0x2b8   : > { %v2244_v18 = vpop.f32.mrf.mxu3  ;;  %2439 = vmatmul.bf16.gmra.mxu0 %v2315_v48  ;;  %v2156_v5 = vadd.f32 %v2155_v3, %v2067_v12  ;;  %v2069_v17 = vadd.f32 %v2068_v40, %v1980_v0 }
 0x2ba   : > { %v2245_v9 = vadd.f32 %v2244_v18, %v2156_v5 }
 0x2bc   : > { %v2294_v61 = vmax.f32 %v2245_v9, 0.0 }
 0x2bd   : > { %v2402_v14 = vpop.f32.mrf.mxu0 }
 0x2be   : > { %v6664_v38 = vpack.c.bf16 %v2402_v14, %v2400_v8  ;;  %v1995_v14 = vadd.f32 %v7666_v29, %v7673_v25 }
 0x2bf   : > { %v2157_v30 = vpop.f32.mrf.mxu2  ;;  %v2071_v10 = vpop.f32.mrf.mxu1 }
 0x2c0   : > { %6736 = vst [vmem:[%s7773_s12 + $0x8] sm:$0xff] %v6664_v38   ;;  %v2158_v31 = vadd.f32 %v2157_v30, %v2069_v17  ;;  %v2246_v45 = vpop.f32.mrf.mxu3  ;;  %v2072_v60 = vadd.f32 %v2071_v10, %v7632_v50 }
 0x2c2   : > { %v2247_v15 = vadd.f32 %v2246_v45, %v2158_v31 }
 0x2c4   : > { %v2295_v47 = vmax.f32 %v2247_v15, 0.0 }
 0x2c5   : > { %v2405_v11 = vpop.f32.mrf.mxu0 }
 0x2c6   : > { %v2316_v32 = vpack.c.bf16 %v2295_v47, %v2294_v61 }
 0x2c7   : > { %v2160_v42 = vpop.f32.mrf.mxu2  ;;  %v2073_v46 = vpop.f32.mrf.mxu1 }
 0x2c8   : > { %v2249_v28 = vpop.f32.mrf.mxu3  ;;  %2444 = vmatmul.bf16.gmra.mxu0 %v2316_v32  ;;  %v2161_v34 = vadd.f32 %v2160_v42, %v2072_v60  ;;  %v2074_v13 = vadd.f32 %v2073_v46, %v1985_v63  ;;  %v2000_v60 = vadd.f32 %v7685_v49, %v7687_v53 }
 0x2ca   : > { %v2250_v55 = vadd.f32 %v2249_v28, %v2161_v34 }
 0x2cc   : > { %v2296_v2 = vmax.f32 %v2250_v55, 0.0 }
 0x2cd   : > { %v2407_v51 = vpop.f32.mrf.mxu0 }
 0x2ce   : > { %v6669_v33 = vpack.c.bf16 %v2407_v51, %v2405_v11 }
 0x2cf   : > { %v2162_v20 = vpop.f32.mrf.mxu2  ;;  %v2076_v62 = vpop.f32.mrf.mxu1 }
 0x2d0   : > { %6737 = vst [vmem:[%s7773_s12 + $0x10] sm:$0xff] %v6669_v33   ;;  %v2163_v56 = vadd.f32 %v2162_v20, %v2074_v13  ;;  %v2251_v58 = vpop.f32.mrf.mxu3  ;;  %v2077_v43 = vadd.f32 %v2076_v62, %v7646_v27 }
 0x2d2   : > { %v2252_v59 = vadd.f32 %v2251_v58, %v2163_v56 }
 0x2d4   : > { %v2297_v57 = vmax.f32 %v2252_v59, 0.0 }
 0x2d5   : > { %v2410_v22 = vpop.f32.mrf.mxu0 }
 0x2d6   : > { %v2317_v35 = vpack.c.bf16 %v2297_v57, %v2296_v2 }
 0x2d7   : > { %v2165_v50 = vpop.f32.mrf.mxu2  ;;  %v2078_v24 = vpop.f32.mrf.mxu1 }
 0x2d8   : > { %v2254_v16 = vpop.f32.mrf.mxu3  ;;  %2449 = vmatmul.bf16.gmra.mxu0 %v2317_v35  ;;  %v2166_v21 = vadd.f32 %v2165_v50, %v2077_v43  ;;  %v2079_v37 = vadd.f32 %v2078_v24, %v1990_v23  ;;  %v2005_v50 = vadd.f32 %v7766_v7, %v7699_v39 }
 0x2da   : > { %v2255_v6 = vadd.f32 %v2254_v16, %v2166_v21 }
 0x2dc   : > { %v2298_v18 = vmax.f32 %v2255_v6, 0.0 }
 0x2dd   : > { %v2412_v54 = vpop.f32.mrf.mxu0 }
 0x2de   : > { %v6674_v44 = vpack.c.bf16 %v2412_v54, %v2410_v22 }
 0x2df   : > { %v2167_v36 = vpop.f32.mrf.mxu2  ;;  %v2081_v48 = vpop.f32.mrf.mxu1 }
 0x2e0   : > { %6738 = vst [vmem:[%s7773_s12 + $0x18] sm:$0xff] %v6674_v44   ;;  %v2168_v52 = vadd.f32 %v2167_v36, %v2079_v37  ;;  %v2256_v8 = vpop.f32.mrf.mxu3  ;;  %v2082_v41 = vadd.f32 %v2081_v48, %v7663_v19 }
 0x2e2   : > { %v2257_v3 = vadd.f32 %v2256_v8, %v2168_v52 }
 0x2e4   : > { %v2299_v40 = vmax.f32 %v2257_v3, 0.0 }
 0x2e5   : > { %v2415_v12 = vpop.f32.mrf.mxu0 }
 0x2e6   : > { %v2318_v0 = vpack.c.bf16 %v2299_v40, %v2298_v18 }
 0x2e7   : > { %v2170_v27 = vpop.f32.mrf.mxu2  ;;  %v2083_v4 = vpop.f32.mrf.mxu1 }
 0x2e8   : > { %v2259_v5 = vpop.f32.mrf.mxu3  ;;  %2454 = vmatmul.bf16.gmra.mxu0 %v2318_v0  ;;  %v2171_v17 = vadd.f32 %v2170_v27, %v2082_v41  ;;  %v2084_v30 = vadd.f32 %v2083_v4, %v1995_v14 }
 0x2ea   : > { %v2260_v45 = vadd.f32 %v2259_v5, %v2171_v17 }
 0x2ec   : > { %v2300_v11 = vmax.f32 %v2260_v45, 0.0 }
 0x2ed   : > { %v2417_v38 = vpop.f32.mrf.mxu0 }
 0x2ee   : > { %v6679_v9 = vpack.c.bf16 %v2417_v38, %v2415_v12 }
 0x2ef   : > { %v2172_v31 = vpop.f32.mrf.mxu2  ;;  %v2086_v61 = vpop.f32.mrf.mxu1 }
 0x2f0   : > { %6739 = vst [vmem:[%s7773_s12 + $0x20] sm:$0xff] %v6679_v9   ;;  %v2173_v10 = vadd.f32 %v2172_v31, %v2084_v30  ;;  %v2261_v15 = vpop.f32.mrf.mxu3  ;;  %v2087_v25 = vadd.f32 %v2086_v61, %v7677_v1 }
 0x2f2   : > { %v2262_v47 = vadd.f32 %v2261_v15, %v2173_v10 }
 0x2f4   : > { %v2301_v32 = vmax.f32 %v2262_v47, 0.0 }
 0x2f5   : > { %v2420_v42 = vpop.f32.mrf.mxu0 }
 0x2f6   : > { %v2319_v28 = vpack.c.bf16 %v2301_v32, %v2300_v11 }
 0x2f7   : > { %v2175_v19 = vpop.f32.mrf.mxu2  ;;  %v2088_v29 = vpop.f32.mrf.mxu1 }
 0x2f8   : > { %v2264_v46 = vpop.f32.mrf.mxu3  ;;  %2459 = vmatmul.bf16.gmra.mxu0 %v2319_v28  ;;  %v2176_v63 = vadd.f32 %v2175_v19, %v2087_v25  ;;  %v2089_v51 = vadd.f32 %v2088_v29, %v2000_v60 }
 0x2fa   : > { %v2265_v20 = vadd.f32 %v2264_v46, %v2176_v63 }
 0x2fc   : > { %v2302_v59 = vmax.f32 %v2265_v20, 0.0 }
 0x2fd   : > { %v2422_v34 = vpop.f32.mrf.mxu0 }
 0x2fe   : > { %v6684_v13 = vpack.c.bf16 %v2422_v34, %v2420_v42 }
 0x2ff   : > { %v2177_v33 = vpop.f32.mrf.mxu2  ;;  %v2091_v58 = vpop.f32.mrf.mxu1 }
 0x300   : > { %6740 = vst [vmem:[%s7773_s12 + $0x28] sm:$0xff] %v6684_v13   ;;  %v2178_v55 = vadd.f32 %v2177_v33, %v2089_v51  ;;  %v2266_v56 = vpop.f32.mrf.mxu3  ;;  %v2092_v49 = vadd.f32 %v2091_v58, %v7691_v26 }
 0x302   : > { %v2267_v62 = vadd.f32 %v2266_v56, %v2178_v55 }
 0x304   : > { %v2303_v2 = vmax.f32 %v2267_v62, 0.0 }
 0x305   : > { %v2425_v57 = vpop.f32.mrf.mxu0 }
 0x306   : > { %v2320_v22 = vpack.c.bf16 %v2303_v2, %v2302_v59 }
 0x307   : > { %v2180_v1 = vpop.f32.mrf.mxu2  ;;  %v2093_v53 = vpop.f32.mrf.mxu1 }
 0x308   : > { %v2269_v35 = vpop.f32.mrf.mxu3  ;;  %2464 = vmatmul.bf16.gmra.mxu0 %v2320_v22  ;;  %v2181_v16 = vadd.f32 %v2180_v1, %v2092_v49  ;;  %v2094_v43 = vadd.f32 %v2093_v53, %v2005_v50 }
 0x30a   : > { %v2270_v54 = vadd.f32 %v2269_v35, %v2181_v16 }
 0x30c   : > { %v2304_v6 = vmax.f32 %v2270_v54, 0.0 }
 0x30d   : > { %v2427_v24 = vpop.f32.mrf.mxu0 }
 0x30e   : > { %v6689_v23 = vpack.c.bf16 %v2427_v24, %v2425_v57 }
 0x30f   : > { %v2182_v21 = vpop.f32.mrf.mxu2 }
 0x310   : > { %6741 = vst [vmem:[%s7773_s12 + $0x30] sm:$0xff] %v6689_v23   ;;  %v2183_v37 = vadd.f32 %v2182_v21, %v2094_v43  ;;  %v2271_v44 = vpop.f32.mrf.mxu3 }
 0x312   : > { %v2272_v36 = vadd.f32 %v2271_v44, %v2183_v37 }
 0x314   : > { %v2305_v52 = vmax.f32 %v2272_v36, 0.0 }
 0x315   : > { %v2430_v26 = vpop.f32.mrf.mxu0 }
 0x316   : > { %v2321_v8 = vpack.c.bf16 %v2305_v52, %v2304_v6 }
 0x318   : > { %2469 = vmatmul.bf16.gmra.mxu0 %v2321_v8 }
 0x31d   : > { %v2432_v39 = vpop.f32.mrf.mxu0 }
 0x31e   : > { %v6694_v7 = vpack.c.bf16 %v2432_v39, %v2430_v26 }
 0x320   : > { %6742 = vst [vmem:[%s7773_s12 + $0x38] sm:$0xff] %v6694_v7  }
 0x325   : > { %v2435_v48 = vpop.f32.mrf.mxu0 }
 0x32d   : > { %v2437_v3 = vpop.f32.mrf.mxu0 }
 0x32e   : > { %v6699_v18 = vpack.c.bf16 %v2437_v3, %v2435_v48 }
 0x330   : > { %6743 = vst [vmem:[%s7773_s12 + $0x40] sm:$0xff] %v6699_v18  }
 0x335   : > { %v2440_v40 = vpop.f32.mrf.mxu0 }
 0x33d   : > { %v2442_v12 = vpop.f32.mrf.mxu0 }
 0x33e   : > { %v6704_v0 = vpack.c.bf16 %v2442_v12, %v2440_v40 }
 0x340   : > { %6744 = vst [vmem:[%s7773_s12 + $0x48] sm:$0xff] %v6704_v0  }
 0x345   : > { %v2445_v27 = vpop.f32.mrf.mxu0 }
 0x34d   : > { %v2447_v5 = vpop.f32.mrf.mxu0 }
 0x34e   : > { %v6709_v4 = vpack.c.bf16 %v2447_v5, %v2445_v27 }
 0x350   : > { %6745 = vst [vmem:[%s7773_s12 + $0x50] sm:$0xff] %v6709_v4  }
 0x355   : > { %v2450_v41 = vpop.f32.mrf.mxu0 }
 0x35d   : > { %v2452_v14 = vpop.f32.mrf.mxu0 }
 0x35e   : > { %v6714_v17 = vpack.c.bf16 %v2452_v14, %v2450_v41 }
 0x360   : > { %6746 = vst [vmem:[%s7773_s12 + $0x58] sm:$0xff] %v6714_v17  }
 0x365   : > { %v2455_v38 = vpop.f32.mrf.mxu0 }
 0x36d   : > { %v2457_v30 = vpop.f32.mrf.mxu0 }
 0x36e   : > { %v6719_v9 = vpack.c.bf16 %v2457_v30, %v2455_v38 }
 0x370   : > { %6747 = vst [vmem:[%s7773_s12 + $0x60] sm:$0xff] %v6719_v9  }
 0x375   : > { %v2460_v31 = vpop.f32.mrf.mxu0 }
 0x37d   : > { %v2462_v45 = vpop.f32.mrf.mxu0 }
 0x37e   : > { %v6724_v10 = vpack.c.bf16 %v2462_v45, %v2460_v31 }
 0x380   : > { %6748 = vst [vmem:[%s7773_s12 + $0x68] sm:$0xff] %v6724_v10  }
 0x385   : > { %v2465_v15 = vpop.f32.mrf.mxu0 }
 0x38d   : > { %v2467_v61 = vpop.f32.mrf.mxu0 }
 0x38e   : > { %v6729_v47 = vpack.c.bf16 %v2467_v61, %v2465_v15 }
 0x390   : > { %6749 = vst [vmem:[%s7773_s12 + $0x70] sm:$0xff] %v6729_v47  }
 0x395   : > { %v2470_v11 = vpop.f32.mrf.mxu0 }
 0x39d   : > { %v2472_v32 = vpop.f32.mrf.mxu0 }
 0x39e   : > { %v6734_v42 = vpack.c.bf16 %v2472_v32, %v2470_v11 }
 0x3a0   : > { %6750 = vst [vmem:[%s7773_s12 + $0x78] sm:$0xff] %v6734_v42  }
 0x3a1 PF: > { %p5484_p12 = scmp.ne.s32.totalorder %s6910_s19, 1 }
 0x3a2   : > { %s6463_s19 = sshll.u32 (!%p5484_p12), %s6906_s18, 10 }
 0x3a3   : > { %2546 = sbr.rel (%p5484_p12) target bundleno = 1611 (0x64b), region = 60  ;;  %s7811_s11 = scalar_lea.vmem (!%p5484_p12), [#allocation2], %s6463_s19 }
 0x3a8   : > { %v6599_v28 = vld [vmem:[#allocation3 + $0x38] sm:$0xff]  ;;  %v6598_v25 = vld [vmem:[#allocation3 + $0x30] sm:$0xff]  ;;  %v6597_v51 = vld [vmem:[#allocation3 + $0x28] sm:$0xff] }
 0x3a9   : > { %v6607_v19 = vld [vmem:[#allocation3 + $0x78] sm:$0xff]  ;;  %3834 = vmatpush.bf16.msra.mxu0 %v6599_v28  ;;  %v6606_v60 = vld [vmem:[#allocation3 + $0x70] sm:$0xff]  ;;  %v6605_v13 = vld [vmem:[#allocation3 + $0x68] sm:$0xff] }
 0x3aa   : > { %v6615_v46 = vld [vmem:[#allocation3 + $0xb8] sm:$0xff]  ;;  %3923 = vmatpush.bf16.msra.mxu1 %v6607_v19  ;;  %v6614_v63 = vld [vmem:[#allocation3 + $0xb0] sm:$0xff]  ;;  %v6613_v33 = vld [vmem:[#allocation3 + $0xa8] sm:$0xff] }
 0x3ab   : > { %v6623_v29 = vld [vmem:[#allocation3 + $0xf8] sm:$0xff]  ;;  %4012 = vmatpush.bf16.msra.mxu2 %v6615_v46  ;;  %v6622_v34 = vld [vmem:[#allocation3 + $0xf0] sm:$0xff]  ;;  %v6621_v20 = vld [vmem:[#allocation3 + $0xe8] sm:$0xff] }
 0x3ac   : > { %4101 = vmatpush.bf16.msra.mxu3 %v6623_v29  ;;  %v6596_v55 = vld [vmem:[#allocation3 + $0x20] sm:$0xff]  ;;  %v6595_v59 = vld [vmem:[#allocation3 + $0x18] sm:$0xff]  ;;  %v6594_v1 = vld [vmem:[#allocation3 + $0x10] sm:$0xff] }
 0x3ad   : > { %3835 = vmatpush.bf16.msra.mxu0 %v6598_v25  ;;  %v6604_v56 = vld [vmem:[#allocation3 + $0x60] sm:$0xff]  ;;  %v6603_v2 = vld [vmem:[#allocation3 + $0x58] sm:$0xff]  ;;  %v6602_v35 = vld [vmem:[#allocation3 + $0x50] sm:$0xff] }
 0x3ae   : > { %3924 = vmatpush.bf16.msra.mxu1 %v6606_v60  ;;  %v6612_v58 = vld [vmem:[#allocation3 + $0xa0] sm:$0xff]  ;;  %v6611_v57 = vld [vmem:[#allocation3 + $0x98] sm:$0xff]  ;;  %v6610_v49 = vld [vmem:[#allocation3 + $0x90] sm:$0xff] }
 0x3af   : > { %4013 = vmatpush.bf16.msra.mxu2 %v6614_v63  ;;  %v6620_v62 = vld [vmem:[#allocation3 + $0xe0] sm:$0xff]  ;;  %v6619_v22 = vld [vmem:[#allocation3 + $0xd8] sm:$0xff]  ;;  %v6618_v53 = vld [vmem:[#allocation3 + $0xd0] sm:$0xff] }
 0x3b0   : > { %4102 = vmatpush.bf16.msra.mxu3 %v6622_v34  ;;  %v6593_v50 = vld [vmem:[#allocation3 + $0x8] sm:$0xff]  ;;  %v6592_v23 = vld [vmem:[#allocation3] sm:$0xff]  ;;  %v6647_v48 = vld [vmem:[#allocation3 + $0x1b8] sm:$0xff] }
 0x3b1   : > { %3836 = vmatpush.bf16.msra.mxu0 %v6597_v51  ;;  %v6601_v16 = vld [vmem:[#allocation3 + $0x48] sm:$0xff]  ;;  %v6600_v21 = vld [vmem:[#allocation3 + $0x40] sm:$0xff]  ;;  %v6631_v3 = vld [vmem:[#allocation3 + $0x138] sm:$0xff] }
 0x3b2   : > { %3925 = vmatpush.bf16.msra.mxu1 %v6605_v13  ;;  %v6609_v24 = vld [vmem:[#allocation3 + $0x88] sm:$0xff]  ;;  %v6608_v54 = vld [vmem:[#allocation3 + $0x80] sm:$0xff]  ;;  %v6655_v27 = vld [vmem:[#allocation3 + $0x1f8] sm:$0xff] }
 0x3b3   : > { %4014 = vmatpush.bf16.msra.mxu2 %v6613_v33  ;;  %v6617_v43 = vld [vmem:[#allocation3 + $0xc8] sm:$0xff]  ;;  %v6616_v37 = vld [vmem:[#allocation3 + $0xc0] sm:$0xff]  ;;  %v6639_v5 = vld [vmem:[#allocation3 + $0x178] sm:$0xff] }
 0x3b4   : > { %4103 = vmatpush.bf16.msra.mxu3 %v6621_v20  ;;  %v5489_v44 = vld [vmem:[%s7811_s11] sm:$0xf]  ;;  %v6464_v6 = vld [vmem:[%s7811_s11 + $0x4] sm:$0xf]  ;;  %v5497_v26 = vld [vmem:[%s7811_s11 + $0x8] sm:$0xf] }
 0x3b5   : > { %3837 = vmatpush.bf16.msra.mxu0 %v6596_v55  ;;  %v6468_v36 = vld [vmem:[%s7811_s11 + $0x1c] sm:$0xf0]  ;;  %v5491_v52 = vld [vmem:[%s7811_s11 + $0x20] sm:$0xf0]  ;;  %v6469_v8 = vld [vmem:[%s7811_s11 + $0x24] sm:$0xf0] }
 0x3b6   : > { %3926 = vmatpush.bf16.msra.mxu1 %v6604_v56  ;;  %v6465_v39 = vld [vmem:[%s7811_s11 + $0xc] sm:$0xf]  ;;  %v5490_v18 = vor.u32 %v6468_v36, %v5489_v44  ;;  %v5494_v40 = vor.u32 %v6464_v6, %v5491_v52  ;;  %v5498_v12 = vor.u32 %v6469_v8, %v5497_v26  ;;  %v6646_v4 = vld [vmem:[#allocation3 + $0x1b0] sm:$0xff]  ;;  %v5521_v38 = vld [vmem:[%s7811_s11 + $0x40] sm:$0xf] }
 0x3b7   : > { %4015 = vmatpush.bf16.msra.mxu2 %v6612_v58  ;;  %v5499_v7 = vld [vmem:[%s7811_s11 + $0x28] sm:$0xf0]  ;;  %v6630_v41 = vld [vmem:[#allocation3 + $0x130] sm:$0xff]  ;;  %v6476_v30 = vld [vmem:[%s7811_s11 + $0x5c] sm:$0xf0] }
 0x3b8   : > { %4104 = vmatpush.bf16.msra.mxu3 %v6620_v62  ;;  %v5502_v0 = vor.u32 %v6465_v39, %v5499_v7  ;;  %v6654_v14 = vld [vmem:[#allocation3 + $0x1f0] sm:$0xff]  ;;  %v6472_v9 = vld [vmem:[%s7811_s11 + $0x44] sm:$0xf]  ;;  %v5529_v45 = vld [vmem:[%s7811_s11 + $0x48] sm:$0xf]  ;;  %v5522_v47 = vor.u32 %v6476_v30, %v5521_v38 }
 0x3b9   : > { %3838 = vmatpush.bf16.msra.mxu0 %v6595_v59  ;;  %v6638_v17 = vld [vmem:[#allocation3 + $0x170] sm:$0xff]  ;;  %v5523_v31 = vld [vmem:[%s7811_s11 + $0x60] sm:$0xf0]  ;;  %v6477_v10 = vld [vmem:[%s7811_s11 + $0x64] sm:$0xf0] }
 0x3ba   : > { %3927 = vmatpush.bf16.msra.mxu1 %v6603_v2  ;;  %v6473_v15 = vld [vmem:[%s7811_s11 + $0x4c] sm:$0xf]  ;;  %v5526_v11 = vor.u32 %v6472_v9, %v5523_v31  ;;  %v5530_v32 = vor.u32 %v6477_v10, %v5529_v45  ;;  %v5553_v28 = vld [vmem:[%s7811_s11 + $0x80] sm:$0xf]  ;;  %v6480_v46 = vld [vmem:[%s7811_s11 + $0x84] sm:$0xf] }
 0x3bb   : > { %4016 = vmatpush.bf16.msra.mxu2 %v6611_v57  ;;  %v5531_v61 = vld [vmem:[%s7811_s11 + $0x68] sm:$0xf0]  ;;  %v6484_v19 = vld [vmem:[%s7811_s11 + $0x9c] sm:$0xf0]  ;;  %v5555_v29 = vld [vmem:[%s7811_s11 + $0xa0] sm:$0xf0] }
 0x3bc   : > { %4105 = vmatpush.bf16.msra.mxu3 %v6619_v22  ;;  %v5534_v42 = vor.u32 %v6473_v15, %v5531_v61  ;;  %v5561_v25 = vld [vmem:[%s7811_s11 + $0x88] sm:$0xf]  ;;  %v6481_v63 = vld [vmem:[%s7811_s11 + $0x8c] sm:$0xf]  ;;  %v5554_v51 = vor.u32 %v6484_v19, %v5553_v28  ;;  %v5558_v13 = vor.u32 %v6480_v46, %v5555_v29  ;;  %v5585_v59 = vld [vmem:[%s7811_s11 + $0xc0] sm:$0xf] }
 0x3bd   : > { %3839 = vmatpush.bf16.msra.mxu0 %v6594_v1  ;;  %v6485_v60 = vld [vmem:[%s7811_s11 + $0xa4] sm:$0xf0]  ;;  %v5563_v34 = vld [vmem:[%s7811_s11 + $0xa8] sm:$0xf0]  ;;  %v6492_v2 = vld [vmem:[%s7811_s11 + $0xdc] sm:$0xf0] }
 0x3be   : > { %3928 = vmatpush.bf16.msra.mxu1 %v6602_v35  ;;  %v5562_v33 = vor.u32 %v6485_v60, %v5561_v25  ;;  %v5566_v20 = vor.u32 %v6481_v63, %v5563_v34  ;;  %v6645_v55 = vld [vmem:[#allocation3 + $0x1a8] sm:$0xff]  ;;  %v6488_v57 = vld [vmem:[%s7811_s11 + $0xc4] sm:$0xf]  ;;  %v5681_v45 = vld [vmem:[%s7811_s11 + $0x180] sm:$0xf] }
 0x3bf   : > { %4017 = vmatpush.bf16.msra.mxu2 %v6610_v49  ;;  %v6629_v56 = vld [vmem:[#allocation3 + $0x128] sm:$0xff]  ;;  %v5587_v22 = vld [vmem:[%s7811_s11 + $0xe0] sm:$0xf0]  ;;  %v6516_v10 = vld [vmem:[%s7811_s11 + $0x19c] sm:$0xf0] }
 0x3c0   : > { %4106 = vmatpush.bf16.msra.mxu3 %v6618_v53  ;;  %v6653_v58 = vld [vmem:[#allocation3 + $0x1e8] sm:$0xff]  ;;  %v6512_v15 = vld [vmem:[%s7811_s11 + $0x184] sm:$0xf]  ;;  %v5682_v28 = vor.u32 %v6516_v10, %v5681_v45  ;;  %v6643_v25 = vld [vmem:[#allocation3 + $0x198] sm:$0xff] }
 0x3c1   : > { %3840 = vmatpush.bf16.msra.mxu0 %v6593_v50  ;;  %v6637_v62 = vld [vmem:[#allocation3 + $0x168] sm:$0xff]  ;;  %v5586_v50 = vor.u32 %v6492_v2, %v5585_v59  ;;  %v5683_v61 = vld [vmem:[%s7811_s11 + $0x1a0] sm:$0xf0]  ;;  %v6627_v60 = vld [vmem:[#allocation3 + $0x118] sm:$0xff] }
 0x3c2   : > { %3929 = vmatpush.bf16.msra.mxu1 %v6601_v16  ;;  %v5593_v1 = vld [vmem:[%s7811_s11 + $0xc8] sm:$0xf]  ;;  %v6489_v49 = vld [vmem:[%s7811_s11 + $0xcc] sm:$0xf]  ;;  %v5590_v16 = vor.u32 %v6488_v57, %v5587_v22  ;;  %v5686_v19 = vor.u32 %v6512_v15, %v5683_v61  ;;  %v6651_v63 = vld [vmem:[#allocation3 + $0x1d8] sm:$0xff] }
 0x3c3   : > { %4018 = vmatpush.bf16.msra.mxu2 %v6609_v24  ;;  %v6493_v35 = vld [vmem:[%s7811_s11 + $0xe4] sm:$0xf0]  ;;  %v5595_v53 = vld [vmem:[%s7811_s11 + $0xe8] sm:$0xf0]  ;;  %v6635_v34 = vld [vmem:[#allocation3 + $0x158] sm:$0xff] }
 0x3c4   : > { %4107 = vmatpush.bf16.msra.mxu3 %v6617_v43  ;;  %v5594_v24 = vor.u32 %v6493_v35, %v5593_v1  ;;  %v5598_v43 = vor.u32 %v6489_v49, %v5595_v53  ;;  %v5625_v44 = vld [vmem:[%s7811_s11 + $0x108] sm:$0xf]  ;;  %v6497_v6 = vld [vmem:[%s7811_s11 + $0x10c] sm:$0xf]  ;;  %v7880_v1 = vld [vmem:[%s8253_s3] ss:$0 sm:$0xff] }
 0x3c5   : > { %3841 = vmatpush.bf16.msra.mxu0 %v6592_v23  ;;  %v5617_v23 = vld [vmem:[%s7811_s11 + $0x100] sm:$0xf]  ;;  %v6501_v36 = vld [vmem:[%s7811_s11 + $0x124] sm:$0xf0]  ;;  %v5627_v52 = vld [vmem:[%s7811_s11 + $0x128] sm:$0xf0] }
 0x3c6   : > { %3930 = vmatpush.bf16.msra.mxu1 %v6600_v21  ;;  %v6500_v21 = vld [vmem:[%s7811_s11 + $0x11c] sm:$0xf0]  ;;  %v5626_v39 = vor.u32 %v6501_v36, %v5625_v44  ;;  %v5630_v7 = vor.u32 %v6497_v6, %v5627_v52  ;;  %v6528_v53 = vld [vmem:[%s7811_s11 + $0x204] sm:$0xf]  ;;  %v5787_v45 = vld [vmem:[%s7811_s11 + $0x268] sm:$0xf0] }
 0x3c7   : > { %4019 = vmatpush.bf16.msra.mxu2 %v6608_v54  ;;  %v6496_v54 = vld [vmem:[%s7811_s11 + $0x104] sm:$0xf]  ;;  %v5618_v26 = vor.u32 %v6500_v21, %v5617_v23  ;;  %v5745_v35 = vld [vmem:[%s7811_s11 + $0x200] sm:$0xf]  ;;  %v5755_v23 = vld [vmem:[%s7811_s11 + $0x228] sm:$0xf0] }
 0x3c8   : > { %4108 = vmatpush.bf16.msra.mxu3 %v6616_v37  ;;  %3842 = vmatmul.bf16.vlgmr.msra.gmra.mxu0 %v5490_v18  ;;  %v5619_v37 = vld [vmem:[%s7811_s11 + $0x120] sm:$0xf0]  ;;  %v6532_v49 = vld [vmem:[%s7811_s11 + $0x21c] sm:$0xf0] }
 0x3c9   : > { %4190 = vmatpush.bf16.msrb.mxu0 %v6631_v3  ;;  %3931 = vmatmul.bf16.vlgmr.msra.gmra.mxu1 %v5494_v40  ;;  %v5622_v8 = vor.u32 %v6496_v54, %v5619_v37  ;;  %v6628_v3 = vld [vmem:[#allocation3 + $0x120] sm:$0xff]  ;;  %v5746_v21 = vor.u32 %v6532_v49, %v5745_v35  ;;  %v5819_v35 = vld [vmem:[%s7811_s11 + $0x2a8] sm:$0xf0] }
 0x3ca   : > { %4020 = vmatmul.bf16.vlgmr.msra.gmra.mxu2 %v5498_v12  ;;  %4279 = vmatpush.bf16.msrb.mxu1 %v6639_v5  ;;  %v6652_v18 = vld [vmem:[#allocation3 + $0x1e0] sm:$0xff] }
 0x3cb   : > { %4368 = vmatpush.bf16.msrb.mxu2 %v6647_v48  ;;  %4109 = vmatmul.bf16.vlgmr.msra.gmra.mxu3 %v5502_v0  ;;  %v6644_v48 = vld [vmem:[#allocation3 + $0x1a0] sm:$0xff] }
 0x3cc   : > { %4457 = vmatpush.bf16.msrb.mxu3 %v6655_v27  ;;  %v6636_v40 = vld [vmem:[#allocation3 + $0x160] sm:$0xff] }
 0x3cd   : > { %4191 = vmatpush.bf16.msrb.mxu0 %v6630_v41  ;;  %v5649_v12 = vld [vmem:[%s7811_s11 + $0x140] sm:$0xf]  ;;  %v6504_v27 = vld [vmem:[%s7811_s11 + $0x144] sm:$0xf]  ;;  %v6509_v41 = vld [vmem:[%s7811_s11 + $0x164] sm:$0xf0] }
 0x3ce   : > { %4280 = vmatpush.bf16.msrb.mxu1 %v6638_v17  ;;  %v6508_v0 = vld [vmem:[%s7811_s11 + $0x15c] sm:$0xf0]  ;;  %v5651_v5 = vld [vmem:[%s7811_s11 + $0x160] sm:$0xf0]  ;;  %v5659_v17 = vld [vmem:[%s7811_s11 + $0x168] sm:$0xf0] }
 0x3cf   : > { %4369 = vmatpush.bf16.msrb.mxu2 %v6646_v4  ;;  %v5657_v4 = vld [vmem:[%s7811_s11 + $0x148] sm:$0xf]  ;;  %v5650_v38 = vor.u32 %v6508_v0, %v5649_v12  ;;  %v5654_v30 = vor.u32 %v6504_v27, %v5651_v5  ;;  %v6634_v5 = vld [vmem:[#allocation3 + $0x150] sm:$0xff] }
 0x3d0   : > { %4458 = vmatpush.bf16.msrb.mxu3 %v6654_v14  ;;  %v6505_v14 = vld [vmem:[%s7811_s11 + $0x14c] sm:$0xf]  ;;  %v5658_v9 = vor.u32 %v6509_v41, %v5657_v4  ;;  %v5777_v41 = vld [vmem:[%s7811_s11 + $0x240] sm:$0xf] }
 0x3d1   : > { %4192 = vmatpush.bf16.msrb.mxu0 %v6629_v56  ;;  %v5662_v31 = vor.u32 %v6505_v14, %v5659_v17  ;;  %v6525_v56 = vld [vmem:[%s7811_s11 + $0x1e4] sm:$0xf0]  ;;  %v6540_v14 = vld [vmem:[%s7811_s11 + $0x25c] sm:$0xf0]  ;;  %v6536_v17 = vld [vmem:[%s7811_s11 + $0x244] sm:$0xf] }
 0x3d2   : > { %4281 = vmatpush.bf16.msrb.mxu1 %v6637_v62  ;;  %v5723_v62 = vld [vmem:[%s7811_s11 + $0x1e8] sm:$0xf0]  ;;  %v5778_v61 = vor.u32 %v6540_v14, %v5777_v41  ;;  %v6552_v41 = vld [vmem:[%s7811_s11 + $0x2c4] sm:$0xf] }
 0x3d3   : > { %4370 = vmatpush.bf16.msrb.mxu2 %v6645_v55  ;;  %v5721_v55 = vld [vmem:[%s7811_s11 + $0x1c8] sm:$0xf]  ;;  %v5843_v14 = vld [vmem:[%s7811_s11 + $0x2e0] sm:$0xf0] }
 0x3d4   : > { %4459 = vmatpush.bf16.msrb.mxu3 %v6653_v58  ;;  %v6521_v58 = vld [vmem:[%s7811_s11 + $0x1cc] sm:$0xf]  ;;  %v5722_v57 = vor.u32 %v6525_v56, %v5721_v55  ;;  %v5809_v56 = vld [vmem:[%s7811_s11 + $0x280] sm:$0xf] }
 0x3d5   : > { %4193 = vmatpush.bf16.msrb.mxu0 %v6628_v3  ;;  %v5726_v22 = vor.u32 %v6521_v58, %v5723_v62  ;;  %v6548_v58 = vld [vmem:[%s7811_s11 + $0x29c] sm:$0xf0]  ;;  %v6544_v62 = vld [vmem:[%s7811_s11 + $0x284] sm:$0xf] }
 0x3d6   : > { %4282 = vmatpush.bf16.msrb.mxu1 %v6636_v40 }
 0x3d7   : > { %4371 = vmatpush.bf16.msrb.mxu2 %v6644_v48 }
 0x3d8   : > { %3847 = vmatmul.bf16.gmra.mxu0 %v5522_v47  ;;  %4460 = vmatpush.bf16.msrb.mxu3 %v6652_v18  ;;  %v5689_v47 = vld [vmem:[%s7811_s11 + $0x188] sm:$0xf] }
 0x3d9   : > { %3936 = vmatmul.bf16.gmra.mxu1 %v5526_v11  ;;  %v6517_v11 = vld [vmem:[%s7811_s11 + $0x1a4] sm:$0xf0]  ;;  %4194 = vmatpush.bf16.msrb.mxu0 %v6627_v60 }
 0x3da   : > { %4025 = vmatmul.bf16.gmra.mxu2 %v5530_v32  ;;  %v6513_v32 = vld [vmem:[%s7811_s11 + $0x18c] sm:$0xf]  ;;  %v5690_v46 = vor.u32 %v6517_v11, %v5689_v47  ;;  %4283 = vmatpush.bf16.msrb.mxu1 %v6635_v34 }
 0x3db   : > { %4114 = vmatmul.bf16.gmra.mxu3 %v5534_v42  ;;  %v5691_v42 = vld [vmem:[%s7811_s11 + $0x1a8] sm:$0xf0]  ;;  %4372 = vmatpush.bf16.msrb.mxu2 %v6643_v25 }
 0x3dc   : > { %v5694_v29 = vor.u32 %v6513_v32, %v5691_v42  ;;  %4461 = vmatpush.bf16.msrb.mxu3 %v6651_v63 }
 0x3de   : > { %4284 = vmatpush.bf16.msrb.mxu1 %v6634_v5  ;;  %v5841_v5 = vld [vmem:[%s7811_s11 + $0x2c0] sm:$0xf] }
 0x3e8   : > { %3852 = vmatmul.bf16.gmra.mxu0 %v5554_v51  ;;  %v5713_v51 = vld [vmem:[%s7811_s11 + $0x1c0] sm:$0xf] }
 0x3e9   : > { %3941 = vmatmul.bf16.gmra.mxu1 %v5558_v13  ;;  %v6524_v13 = vld [vmem:[%s7811_s11 + $0x1dc] sm:$0xf0] }
 0x3ea   : > { %4030 = vmatmul.bf16.gmra.mxu2 %v5562_v33  ;;  %v6520_v33 = vld [vmem:[%s7811_s11 + $0x1c4] sm:$0xf]  ;;  %v5714_v59 = vor.u32 %v6524_v13, %v5713_v51 }
 0x3eb   : > { %4119 = vmatmul.bf16.gmra.mxu3 %v5566_v20  ;;  %v5715_v20 = vld [vmem:[%s7811_s11 + $0x1e0] sm:$0xf0] }
 0x3ec   : > { %v5718_v2 = vor.u32 %v6520_v33, %v5715_v20 }
 0x3f8   : > { %3857 = vmatmul.bf16.gmra.mxu0 %v5586_v50  ;;  %v5747_v50 = vld [vmem:[%s7811_s11 + $0x220] sm:$0xf0] }
 0x3f9   : > { %3946 = vmatmul.bf16.gmra.mxu1 %v5590_v16  ;;  %v5753_v16 = vld [vmem:[%s7811_s11 + $0x208] sm:$0xf]  ;;  %v5750_v54 = vor.u32 %v6528_v53, %v5747_v50  ;;  %v5810_v50 = vor.u32 %v6548_v58, %v5809_v56  ;;  %v5873_v56 = vld [vmem:[%s7811_s11 + $0x300] sm:$0xf] }
 0x3fa   : > { %4035 = vmatmul.bf16.gmra.mxu2 %v5594_v24  ;;  %v6533_v24 = vld [vmem:[%s7811_s11 + $0x224] sm:$0xf0]  ;;  %v6564_v58 = vld [vmem:[%s7811_s11 + $0x31c] sm:$0xf0] }
 0x3fb   : > { %4124 = vmatmul.bf16.gmra.mxu3 %v5598_v43  ;;  %v6529_v43 = vld [vmem:[%s7811_s11 + $0x20c] sm:$0xf]  ;;  %v5754_v36 = vor.u32 %v6533_v24, %v5753_v16 }
 0x3fc   : > { %v5758_v6 = vor.u32 %v6529_v43, %v5755_v23 }
 0x408   : > { %3862 = vmatmul.bf16.gmra.mxu0 %v5618_v26 }
 0x409   : > { %3951 = vmatmul.bf16.gmra.mxu1 %v5622_v8  ;;  %v6642_v8 = vld [vmem:[#allocation3 + $0x190] sm:$0xff] }
 0x40a   : > { %4040 = vmatmul.bf16.gmra.mxu2 %v5626_v39  ;;  %v6626_v39 = vld [vmem:[#allocation3 + $0x110] sm:$0xff] }
 0x40b   : > { %4129 = vmatmul.bf16.gmra.mxu3 %v5630_v7  ;;  %v6650_v7 = vld [vmem:[#allocation3 + $0x1d0] sm:$0xff]  ;;  %4373 = vmatpush.bf16.msrb.mxu2 %v6642_v8 }
 0x40c   : > { %4195 = vmatpush.bf16.msrb.mxu0 %v6626_v39  ;;  %4462 = vmatpush.bf16.msrb.mxu3 %v6650_v7 }
 0x418   : > { %3867 = vmatmul.bf16.gmra.mxu0 %v5650_v38  ;;  %v5779_v38 = vld [vmem:[%s7811_s11 + $0x260] sm:$0xf0] }
 0x419   : > { %3956 = vmatmul.bf16.gmra.mxu1 %v5654_v30  ;;  %v5785_v30 = vld [vmem:[%s7811_s11 + $0x248] sm:$0xf]  ;;  %v5782_v47 = vor.u32 %v6536_v17, %v5779_v38 }
 0x41a   : > { %4045 = vmatmul.bf16.gmra.mxu2 %v5658_v9  ;;  %v6541_v9 = vld [vmem:[%s7811_s11 + $0x264] sm:$0xf0] }
 0x41b   : > { %4134 = vmatmul.bf16.gmra.mxu3 %v5662_v31  ;;  %v6537_v31 = vld [vmem:[%s7811_s11 + $0x24c] sm:$0xf]  ;;  %v5849_v17 = vld [vmem:[%s7811_s11 + $0x2c8] sm:$0xf] }
 0x41c   : > { %v6557_v38 = vld [vmem:[%s7811_s11 + $0x2e4] sm:$0xf0] }
 0x428   : > { %3872 = vmatmul.bf16.gmra.mxu0 %v5682_v28  ;;  %v5786_v28 = vor.u32 %v6541_v9, %v5785_v30  ;;  %v6553_v30 = vld [vmem:[%s7811_s11 + $0x2cc] sm:$0xf] }
 0x429   : > { %3961 = vmatmul.bf16.gmra.mxu1 %v5686_v19  ;;  %v5790_v19 = vor.u32 %v6537_v31, %v5787_v45  ;;  %v5851_v9 = vld [vmem:[%s7811_s11 + $0x2e8] sm:$0xf0] }
 0x42a   : > { %4050 = vmatmul.bf16.gmra.mxu2 %v5690_v46 }
 0x42b   : > { %4139 = vmatmul.bf16.gmra.mxu3 %v5694_v29 }
 0x438   : > { %3877 = vmatmul.bf16.gmra.mxu0 %v5714_v59  ;;  %v5811_v59 = vld [vmem:[%s7811_s11 + $0x2a0] sm:$0xf0] }
 0x439   : > { %3966 = vmatmul.bf16.gmra.mxu1 %v5718_v2  ;;  %v5817_v2 = vld [vmem:[%s7811_s11 + $0x288] sm:$0xf]  ;;  %v5814_v16 = vor.u32 %v6544_v62, %v5811_v59  ;;  %v6560_v62 = vld [vmem:[%s7811_s11 + $0x304] sm:$0xf] }
 0x43a   : > { %4055 = vmatmul.bf16.gmra.mxu2 %v5722_v57  ;;  %v6549_v57 = vld [vmem:[%s7811_s11 + $0x2a4] sm:$0xf0]  ;;  %v5875_v59 = vld [vmem:[%s7811_s11 + $0x320] sm:$0xf0] }
 0x43b   : > { %4144 = vmatmul.bf16.gmra.mxu3 %v5726_v22  ;;  %v6545_v22 = vld [vmem:[%s7811_s11 + $0x28c] sm:$0xf] }
 0x445   : > { %v3843_v37 = vpop.f32.mrf.mxu0 }
 0x446   : > { %v3932_v44 = vpop.f32.mrf.mxu1  ;;  %v3844_v52 = vadd.f32 %v7880_v1, %v3843_v37 }
 0x448   : > { %v3933_v26 = vadd.f32 %v3932_v44, %v3844_v52  ;;  %3882 = vmatmul.bf16.gmra.mxu0 %v5746_v21  ;;  %v5818_v21 = vor.u32 %v6549_v57, %v5817_v2  ;;  %v6625_v52 = vld [vmem:[#allocation3 + $0x108] sm:$0xff] }
 0x449   : > { %3971 = vmatmul.bf16.gmra.mxu1 %v5750_v54  ;;  %v5822_v54 = vor.u32 %v6545_v22, %v5819_v35  ;;  %4196 = vmatpush.bf16.msrb.mxu0 %v6625_v52  ;;  %v5881_v2 = vld [vmem:[%s7811_s11 + $0x308] sm:$0xf]  ;;  %v6561_v22 = vld [vmem:[%s7811_s11 + $0x30c] sm:$0xf]  ;;  %v6640_v52 = vld [vmem:[#allocation3 + $0x180] sm:$0xff] }
 0x44a   : > { %4060 = vmatmul.bf16.gmra.mxu2 %v5754_v36  ;;  %v6565_v57 = vld [vmem:[%s7811_s11 + $0x324] sm:$0xf0]  ;;  %v5883_v35 = vld [vmem:[%s7811_s11 + $0x328] sm:$0xf0] }
 0x44b   : > { %4149 = vmatmul.bf16.gmra.mxu3 %v5758_v6  ;;  %v6641_v6 = vld [vmem:[#allocation3 + $0x188] sm:$0xff] }
 0x44c   : > { %4374 = vmatpush.bf16.msrb.mxu2 %v6641_v6 }
 0x44d   : > { %v4021_v48 = vpop.f32.mrf.mxu2  ;;  %v3845_v40 = vpop.f32.mrf.mxu0 }
 0x44e   : > { %v4110_v3 = vpop.f32.mrf.mxu3  ;;  %v4022_v18 = vadd.f32 %v4021_v48, %v3933_v26  ;;  %v3934_v12 = vpop.f32.mrf.mxu1  ;;  %v3846_v0 = vadd.f32 %v7880_v1, %v3845_v40  ;;  %v6649_v26 = vld [vmem:[#allocation3 + $0x1c8] sm:$0xff] }
 0x44f   : > { %4463 = vmatpush.bf16.msrb.mxu3 %v6649_v26  ;;  %v6624_v26 = vld [vmem:[#allocation3 + $0x100] sm:$0xff] }
 0x450   : > { %v7892_v27 = vadd.f32 %v4110_v3, %v4022_v18  ;;  %v3935_v4 = vadd.f32 %v3934_v12, %v3846_v0  ;;  %v6633_v12 = vld [vmem:[#allocation3 + $0x148] sm:$0xff]  ;;  %4375 = vmatpush.bf16.msrb.mxu2 %v6640_v52  ;;  %4197 = vmatpush.bf16.msrb.mxu0 %v6624_v26 }
 0x451   : > { %4285 = vmatpush.bf16.msrb.mxu1 %v6633_v12 }
 0x455   : > { %v4023_v10 = vpop.f32.mrf.mxu2  ;;  %v3848_v32 = vpop.f32.mrf.mxu0 }
 0x456   : > { %v4112_v15 = vpop.f32.mrf.mxu3  ;;  %v4024_v11 = vadd.f32 %v4023_v10, %v3935_v4  ;;  %v3937_v42 = vpop.f32.mrf.mxu1  ;;  %v3849_v46 = vadd.f32 %v7880_v1, %v3848_v32  ;;  %v6556_v4 = vld [vmem:[%s7811_s11 + $0x2dc] sm:$0xf0]  ;;  %v5850_v32 = vor.u32 %v6557_v38, %v5849_v17  ;;  %v6568_v17 = vld [vmem:[%s7811_s11 + $0x344] sm:$0xf] }
 0x457   : > { %v5842_v10 = vor.u32 %v6556_v4, %v5841_v5  ;;  %v6632_v5 = vld [vmem:[#allocation3 + $0x140] sm:$0xff] }
 0x458   : > { %v7903_v29 = vadd.f32 %v4112_v15, %v4024_v11  ;;  %v3938_v25 = vadd.f32 %v3937_v42, %v3849_v46  ;;  %3887 = vmatmul.bf16.gmra.mxu0 %v5778_v61  ;;  %v5846_v15 = vor.u32 %v6552_v41, %v5843_v14  ;;  %v5854_v42 = vor.u32 %v6553_v30, %v5851_v9  ;;  %v5905_v41 = vld [vmem:[%s7811_s11 + $0x340] sm:$0xf]  ;;  %v5907_v38 = vld [vmem:[%s7811_s11 + $0x360] sm:$0xf0]  ;;  %v5913_v30 = vld [vmem:[%s7811_s11 + $0x348] sm:$0xf] }
 0x459   : > { %3976 = vmatmul.bf16.gmra.mxu1 %v5782_v47  ;;  %v6572_v14 = vld [vmem:[%s7811_s11 + $0x35c] sm:$0xf0]  ;;  %v6573_v9 = vld [vmem:[%s7811_s11 + $0x364] sm:$0xf0] }
 0x45a   : > { %4065 = vmatmul.bf16.gmra.mxu2 %v5786_v28  ;;  %4286 = vmatpush.bf16.msrb.mxu1 %v6632_v5 }
 0x45b   : > { %4154 = vmatmul.bf16.gmra.mxu3 %v5790_v19 }
 0x45d   : > { %v4026_v60 = vpop.f32.mrf.mxu2  ;;  %v3850_v51 = vpop.f32.mrf.mxu0 }
 0x45e   : > { %v4115_v63 = vpop.f32.mrf.mxu3  ;;  %v4027_v34 = vadd.f32 %v4026_v60, %v3938_v25  ;;  %v3939_v13 = vpop.f32.mrf.mxu1  ;;  %v3851_v33 = vadd.f32 %v7880_v1, %v3850_v51 }
 0x460   : > { %v7906_v20 = vadd.f32 %v4115_v63, %v4027_v34  ;;  %v3940_v55 = vadd.f32 %v3939_v13, %v3851_v33 }
 0x465   : > { %v4028_v49 = vpop.f32.mrf.mxu2  ;;  %v3853_v43 = vpop.f32.mrf.mxu0 }
 0x466   : > { %v4117_v53 = vpop.f32.mrf.mxu3  ;;  %v4029_v24 = vadd.f32 %v4028_v49, %v3940_v55  ;;  %v3942_v23 = vpop.f32.mrf.mxu1  ;;  %v3854_v37 = vadd.f32 %v7880_v1, %v3853_v43 }
 0x468   : > { %v7917_v44 = vadd.f32 %v4117_v53, %v4029_v24  ;;  %v3943_v36 = vadd.f32 %v3942_v23, %v3854_v37  ;;  %3892 = vmatmul.bf16.gmra.mxu0 %v5810_v50  ;;  %v5874_v50 = vor.u32 %v6564_v58, %v5873_v56 }
 0x469   : > { %3981 = vmatmul.bf16.gmra.mxu1 %v5814_v16  ;;  %v5878_v16 = vor.u32 %v6560_v62, %v5875_v59 }
 0x46a   : > { %4070 = vmatmul.bf16.gmra.mxu2 %v5818_v21  ;;  %v5882_v21 = vor.u32 %v6565_v57, %v5881_v2  ;;  %v5937_v2 = vld [vmem:[%s7811_s11 + $0x380] sm:$0xf] }
 0x46b   : > { %4159 = vmatmul.bf16.gmra.mxu3 %v5822_v54  ;;  %v5886_v54 = vor.u32 %v6561_v22, %v5883_v35  ;;  %v6580_v57 = vld [vmem:[%s7811_s11 + $0x39c] sm:$0xf0]  ;;  %v6576_v22 = vld [vmem:[%s7811_s11 + $0x384] sm:$0xf] }
 0x46c   : > { %v5939_v35 = vld [vmem:[%s7811_s11 + $0x3a0] sm:$0xf0] }
 0x46d   : > { %v4031_v8 = vpop.f32.mrf.mxu2  ;;  %v3855_v48 = vpop.f32.mrf.mxu0 }
 0x46e   : > { %v4120_v39 = vpop.f32.mrf.mxu3  ;;  %v4032_v7 = vadd.f32 %v4031_v8, %v3943_v36  ;;  %v3944_v3 = vpop.f32.mrf.mxu1  ;;  %v3856_v18 = vadd.f32 %v7880_v1, %v3855_v48  ;;  %v6648_v8 = vld [vmem:[#allocation3 + $0x1c0] sm:$0xff] }
 0x46f   : > { %4464 = vmatpush.bf16.msrb.mxu3 %v6648_v8 }
 0x470   : > { %v7920_v40 = vadd.f32 %v4120_v39, %v4032_v7  ;;  %v3945_v0 = vadd.f32 %v3944_v3, %v3856_v18 }
 0x475   : > { %v4033_v31 = vpop.f32.mrf.mxu2  ;;  %v3858_v47 = vpop.f32.mrf.mxu0 }
 0x476   : > { %v4122_v45 = vpop.f32.mrf.mxu3  ;;  %v4034_v61 = vadd.f32 %v4033_v31, %v3945_v0  ;;  %v3947_v11 = vpop.f32.mrf.mxu1  ;;  %v3859_v28 = vadd.f32 %v7880_v1, %v3858_v47  ;;  %v6569_v31 = vld [vmem:[%s7811_s11 + $0x34c] sm:$0xf]  ;;  %v5910_v47 = vor.u32 %v6568_v17, %v5907_v38  ;;  %v5969_v17 = vld [vmem:[%s7811_s11 + $0x3c0] sm:$0xf] }
 0x477   : > { %v6588_v38 = vld [vmem:[%s7811_s11 + $0x3dc] sm:$0xf0] }
 0x478   : > { %v7931_v19 = vadd.f32 %v4122_v45, %v4034_v61  ;;  %v3948_v46 = vadd.f32 %v3947_v11, %v3859_v28  ;;  %3897 = vmatmul.bf16.gmra.mxu0 %v5842_v10  ;;  %v5915_v45 = vld [vmem:[%s7811_s11 + $0x368] sm:$0xf0]  ;;  %v5906_v61 = vor.u32 %v6572_v14, %v5905_v41  ;;  %v5914_v28 = vor.u32 %v6573_v9, %v5913_v30  ;;  %v6584_v30 = vld [vmem:[%s7811_s11 + $0x3c4] sm:$0xf] }
 0x479   : > { %3986 = vmatmul.bf16.gmra.mxu1 %v5846_v15  ;;  %v5971_v9 = vld [vmem:[%s7811_s11 + $0x3e0] sm:$0xf0] }
 0x47a   : > { %4075 = vmatmul.bf16.gmra.mxu2 %v5850_v32 }
 0x47b   : > { %4164 = vmatmul.bf16.gmra.mxu3 %v5854_v42 }
 0x47d   : > { %v4036_v25 = vpop.f32.mrf.mxu2  ;;  %v3860_v34 = vpop.f32.mrf.mxu0 }
 0x47e   : > { %v4125_v60 = vpop.f32.mrf.mxu3  ;;  %v4037_v63 = vadd.f32 %v4036_v25, %v3948_v46  ;;  %v3949_v51 = vpop.f32.mrf.mxu1  ;;  %v3861_v13 = vadd.f32 %v7880_v1, %v3860_v34  ;;  %v5918_v46 = vor.u32 %v6569_v31, %v5915_v45  ;;  %v5977_v31 = vld [vmem:[%s7811_s11 + $0x3c8] sm:$0xf] }
 0x47f   : > { %v6589_v45 = vld [vmem:[%s7811_s11 + $0x3e4] sm:$0xf0] }
 0x480   : > { %v7934_v33 = vadd.f32 %v4125_v60, %v4037_v63  ;;  %v3950_v55 = vadd.f32 %v3949_v51, %v3861_v13 }
 0x485   : > { %v4038_v49 = vpop.f32.mrf.mxu2  ;;  %v3863_v43 = vpop.f32.mrf.mxu0 }
 0x486   : > { %v4127_v53 = vpop.f32.mrf.mxu3  ;;  %v4039_v24 = vadd.f32 %v4038_v49, %v3950_v55  ;;  %v3952_v23 = vpop.f32.mrf.mxu1  ;;  %v3864_v37 = vadd.f32 %v7880_v1, %v3863_v43  ;;  %v5945_v49 = vld [vmem:[%s7811_s11 + $0x388] sm:$0xf] }
 0x488   : > { %v7945_v36 = vadd.f32 %v4127_v53, %v4039_v24  ;;  %v3953_v6 = vadd.f32 %v3952_v23, %v3864_v37  ;;  %3902 = vmatmul.bf16.gmra.mxu0 %v5874_v50  ;;  %v6581_v53 = vld [vmem:[%s7811_s11 + $0x3a4] sm:$0xf0]  ;;  %v6577_v50 = vld [vmem:[%s7811_s11 + $0x38c] sm:$0xf]  ;;  %v5938_v23 = vor.u32 %v6580_v57, %v5937_v2 }
 0x489   : > { %3991 = vmatmul.bf16.gmra.mxu1 %v5878_v16  ;;  %v5947_v16 = vld [vmem:[%s7811_s11 + $0x3a8] sm:$0xf0]  ;;  %v5946_v52 = vor.u32 %v6581_v53, %v5945_v49  ;;  %v5505_v49 = vld [vmem:[%s7811_s11 + $0x10] sm:$0xf] }
 0x48a   : > { %4080 = vmatmul.bf16.gmra.mxu2 %v5882_v21  ;;  %v5942_v21 = vor.u32 %v6576_v22, %v5939_v35  ;;  %v5950_v26 = vor.u32 %v6577_v50, %v5947_v16  ;;  %v6470_v53 = vld [vmem:[%s7811_s11 + $0x2c] sm:$0xf0]  ;;  %v6466_v50 = vld [vmem:[%s7811_s11 + $0x14] sm:$0xf] }
 0x48b   : > { %4169 = vmatmul.bf16.gmra.mxu3 %v5886_v54  ;;  %v5507_v16 = vld [vmem:[%s7811_s11 + $0x30] sm:$0xf0] }
 0x48d   : > { %v4041_v39 = vpop.f32.mrf.mxu2  ;;  %v3865_v3 = vpop.f32.mrf.mxu0 }
 0x48e   : > { %v4130_v7 = vpop.f32.mrf.mxu3  ;;  %v4042_v48 = vadd.f32 %v4041_v39, %v3953_v6  ;;  %v3954_v18 = vpop.f32.mrf.mxu1  ;;  %v3866_v12 = vadd.f32 %v7880_v1, %v3865_v3 }
 0x490   : > { %v7948_v0 = vadd.f32 %v4130_v7, %v4042_v48  ;;  %v3955_v4 = vadd.f32 %v3954_v18, %v3866_v12 }
 0x495   : > { %v4043_v10 = vpop.f32.mrf.mxu2  ;;  %v3868_v32 = vpop.f32.mrf.mxu0 }
 0x496   : > { %v4132_v15 = vpop.f32.mrf.mxu3  ;;  %v4044_v11 = vadd.f32 %v4043_v10, %v3955_v4  ;;  %v3957_v42 = vpop.f32.mrf.mxu1  ;;  %v3869_v25 = vadd.f32 %v7880_v1, %v3868_v32  ;;  %v6585_v10 = vld [vmem:[%s7811_s11 + $0x3cc] sm:$0xf]  ;;  %v5974_v32 = vor.u32 %v6584_v30, %v5971_v9 }
 0x498   : > { %v7959_v60 = vadd.f32 %v4132_v15, %v4044_v11  ;;  %v3958_v63 = vadd.f32 %v3957_v42, %v3869_v25  ;;  %3907 = vmatmul.bf16.gmra.mxu0 %v5906_v61  ;;  %v5979_v15 = vld [vmem:[%s7811_s11 + $0x3e8] sm:$0xf0]  ;;  %v5970_v11 = vor.u32 %v6588_v38, %v5969_v17  ;;  %v5978_v25 = vor.u32 %v6589_v45, %v5977_v31 }
 0x499   : > { %3996 = vmatmul.bf16.gmra.mxu1 %v5910_v47 }
 0x49a   : > { %4085 = vmatmul.bf16.gmra.mxu2 %v5914_v28 }
 0x49b   : > { %4174 = vmatmul.bf16.gmra.mxu3 %v5918_v46 }
 0x49d   : > { %v4046_v34 = vpop.f32.mrf.mxu2  ;;  %v3870_v55 = vpop.f32.mrf.mxu0 }
 0x49e   : > { %v4135_v51 = vpop.f32.mrf.mxu3  ;;  %v4047_v13 = vadd.f32 %v4046_v34, %v3958_v63  ;;  %v3959_v56 = vpop.f32.mrf.mxu1  ;;  %v3871_v58 = vadd.f32 %v7880_v1, %v3870_v55  ;;  %v5982_v63 = vor.u32 %v6585_v10, %v5979_v15  ;;  %v5537_v10 = vld [vmem:[%s7811_s11 + $0x50] sm:$0xf] }
 0x49f   : > { %v6478_v15 = vld [vmem:[%s7811_s11 + $0x6c] sm:$0xf0] }
 0x4a0   : > { %v7962_v62 = vadd.f32 %v4135_v51, %v4047_v13  ;;  %v3960_v59 = vadd.f32 %v3959_v56, %v3871_v58 }
 0x4a5   : > { %v4048_v24 = vpop.f32.mrf.mxu2  ;;  %v3873_v37 = vpop.f32.mrf.mxu0 }
 0x4a6   : > { %v4137_v43 = vpop.f32.mrf.mxu3  ;;  %v4049_v54 = vadd.f32 %v4048_v24, %v3960_v59  ;;  %v3962_v6 = vpop.f32.mrf.mxu1  ;;  %v3874_v8 = vadd.f32 %v7880_v1, %v3873_v37  ;;  %v5513_v24 = vld [vmem:[%s7811_s11 + $0x18] sm:$0xf] }
 0x4a8   : > { %v7973_v39 = vadd.f32 %v4137_v43, %v4049_v54  ;;  %v3963_v7 = vadd.f32 %v3962_v6, %v3874_v8  ;;  %3912 = vmatmul.bf16.gmra.mxu0 %v5938_v23  ;;  %v6471_v43 = vld [vmem:[%s7811_s11 + $0x34] sm:$0xf0]  ;;  %v6467_v23 = vld [vmem:[%s7811_s11 + $0x1c] sm:$0xf]  ;;  %v5506_v6 = vor.u32 %v6470_v53, %v5505_v49 }
 0x4a9   : > { %4001 = vmatmul.bf16.gmra.mxu1 %v5942_v21  ;;  %v5515_v21 = vld [vmem:[%s7811_s11 + $0x38] sm:$0xf0] }
 0x4aa   : > { %4090 = vmatmul.bf16.gmra.mxu2 %v5946_v52  ;;  %v5510_v52 = vor.u32 %v6466_v50, %v5507_v16 }
 0x4ab   : > { %4179 = vmatmul.bf16.gmra.mxu3 %v5950_v26 }
 0x4ad   : > { %v4051_v48 = vpop.f32.mrf.mxu2  ;;  %v3875_v12 = vpop.f32.mrf.mxu0 }
 0x4ae   : > { %v4140_v3 = vpop.f32.mrf.mxu3  ;;  %v4052_v18 = vadd.f32 %v4051_v48, %v3963_v7  ;;  %v3964_v5 = vpop.f32.mrf.mxu1  ;;  %v3876_v4 = vadd.f32 %v7880_v1, %v3875_v12  ;;  %v5514_v48 = vor.u32 %v6471_v43, %v5513_v24 }
 0x4b0   : > { %v7976_v41 = vadd.f32 %v4140_v3, %v4052_v18  ;;  %v3965_v14 = vadd.f32 %v3964_v5, %v3876_v4  ;;  %v5518_v3 = vor.u32 %v6467_v23, %v5515_v21 }
 0x4b5   : > { %v4053_v61 = vpop.f32.mrf.mxu2  ;;  %v3878_v28 = vpop.f32.mrf.mxu0 }
 0x4b6   : > { %v4142_v47 = vpop.f32.mrf.mxu3  ;;  %v4054_v42 = vadd.f32 %v4053_v61, %v3965_v14  ;;  %v3967_v46 = vpop.f32.mrf.mxu1  ;;  %v3879_v34 = vadd.f32 %v7880_v1, %v3878_v28  ;;  %v6474_v61 = vld [vmem:[%s7811_s11 + $0x54] sm:$0xf]  ;;  %v5547_v28 = vld [vmem:[%s7811_s11 + $0x78] sm:$0xf0] }
 0x4b8   : > { %v7987_v51 = vadd.f32 %v4142_v47, %v4054_v42  ;;  %v3968_v13 = vadd.f32 %v3967_v46, %v3879_v34  ;;  %3917 = vmatmul.bf16.gmra.mxu0 %v5970_v11  ;;  %v5539_v47 = vld [vmem:[%s7811_s11 + $0x70] sm:$0xf0]  ;;  %v5545_v11 = vld [vmem:[%s7811_s11 + $0x58] sm:$0xf]  ;;  %v6475_v42 = vld [vmem:[%s7811_s11 + $0x5c] sm:$0xf] }
 0x4b9   : > { %4006 = vmatmul.bf16.gmra.mxu1 %v5974_v32  ;;  %v6479_v32 = vld [vmem:[%s7811_s11 + $0x74] sm:$0xf0]  ;;  %v5542_v34 = vor.u32 %v6474_v61, %v5539_v47 }
 0x4ba   : > { %4095 = vmatmul.bf16.gmra.mxu2 %v5978_v25 }
 0x4bb   : > { %4184 = vmatmul.bf16.gmra.mxu3 %v5982_v63  ;;  %v5538_v63 = vor.u32 %v6478_v15, %v5537_v10 }
 0x4bd   : > { %v4056_v55 = vpop.f32.mrf.mxu2  ;;  %v3880_v59 = vpop.f32.mrf.mxu0 }
 0x4be   : > { %v4145_v56 = vpop.f32.mrf.mxu3  ;;  %v4057_v58 = vadd.f32 %v4056_v55, %v3968_v13  ;;  %v3969_v2 = vpop.f32.mrf.mxu1  ;;  %v3881_v57 = vadd.f32 %v7880_v1, %v3880_v59  ;;  %v5550_v59 = vor.u32 %v6475_v42, %v5547_v28 }
 0x4c0   : > { %v7990_v22 = vadd.f32 %v4145_v56, %v4057_v58  ;;  %v3970_v35 = vadd.f32 %v3969_v2, %v3881_v57  ;;  %v5546_v58 = vor.u32 %v6479_v32, %v5545_v11 }
 0x4c5   : > { %v4058_v54 = vpop.f32.mrf.mxu2  ;;  %v3883_v8 = vpop.f32.mrf.mxu0 }
 0x4c6   : > { %v4147_v37 = vpop.f32.mrf.mxu3  ;;  %v4059_v26 = vadd.f32 %v4058_v54, %v3970_v35  ;;  %v3972_v7 = vpop.f32.mrf.mxu1  ;;  %v3884_v18 = vadd.f32 %v7880_v1, %v3883_v8  ;;  %v5569_v54 = vld [vmem:[%s7811_s11 + $0x90] sm:$0xf]  ;;  %v6487_v8 = vld [vmem:[%s7811_s11 + $0xb4] sm:$0xf0] }
 0x4c8   : > { %v8001_v12 = vadd.f32 %v4147_v37, %v4059_v26  ;;  %v3973_v5 = vadd.f32 %v3972_v7, %v3884_v18  ;;  %4198 = vmatmul.bf16.vlgmr.msrb.gmra.mxu0 %v5506_v6  ;;  %v6486_v37 = vld [vmem:[%s7811_s11 + $0xac] sm:$0xf0]  ;;  %v6482_v6 = vld [vmem:[%s7811_s11 + $0x94] sm:$0xf]  ;;  %v5577_v26 = vld [vmem:[%s7811_s11 + $0x98] sm:$0xf] }
 0x4c9   : > { %4287 = vmatmul.bf16.vlgmr.msrb.gmra.mxu1 %v5510_v52  ;;  %v5571_v52 = vld [vmem:[%s7811_s11 + $0xb0] sm:$0xf0]  ;;  %v6483_v7 = vld [vmem:[%s7811_s11 + $0x9c] sm:$0xf] }
 0x4ca   : > { %4376 = vmatmul.bf16.vlgmr.msrb.gmra.mxu2 %v5514_v48  ;;  %v5579_v48 = vld [vmem:[%s7811_s11 + $0xb8] sm:$0xf0] }
 0x4cb   : > { %4465 = vmatmul.bf16.vlgmr.msrb.gmra.mxu3 %v5518_v3 }
 0x4cd   : > { %v4061_v4 = vpop.f32.mrf.mxu2  ;;  %v3885_v38 = vpop.f32.mrf.mxu0 }
 0x4ce   : > { %v4150_v14 = vpop.f32.mrf.mxu3  ;;  %v4062_v17 = vadd.f32 %v4061_v4, %v3973_v5  ;;  %v3974_v30 = vpop.f32.mrf.mxu1  ;;  %v3886_v9 = vadd.f32 %v7880_v1, %v3885_v38  ;;  %v5570_v5 = vor.u32 %v6486_v37, %v5569_v54  ;;  %v5574_v4 = vor.u32 %v6482_v6, %v5571_v52 }
 0x4d0   : > { %v8004_v31 = vadd.f32 %v4150_v14, %v4062_v17  ;;  %v3975_v45 = vadd.f32 %v3974_v30, %v3886_v9  ;;  %v5578_v30 = vor.u32 %v6487_v8, %v5577_v26  ;;  %v5582_v9 = vor.u32 %v6483_v7, %v5579_v48 }
 0x4d5   : > { %v4063_v46 = vpop.f32.mrf.mxu2  ;;  %v3888_v55 = vpop.f32.mrf.mxu0 }
 0x4d6   : > { %v4152_v25 = vpop.f32.mrf.mxu3  ;;  %v4064_v13 = vadd.f32 %v4063_v46, %v3975_v45  ;;  %v3977_v56 = vpop.f32.mrf.mxu1  ;;  %v3889_v2 = vadd.f32 %v7880_v1, %v3888_v55  ;;  %v5603_v55 = vld [vmem:[%s7811_s11 + $0xf0] sm:$0xf0] }
 0x4d8   : > { %v8015_v57 = vadd.f32 %v4152_v25, %v4064_v13  ;;  %v3978_v35 = vadd.f32 %v3977_v56, %v3889_v2  ;;  %4203 = vmatmul.bf16.gmra.mxu0 %v5538_v63  ;;  %v5601_v63 = vld [vmem:[%s7811_s11 + $0xd0] sm:$0xf]  ;;  %v6490_v13 = vld [vmem:[%s7811_s11 + $0xd4] sm:$0xf]  ;;  %v5609_v56 = vld [vmem:[%s7811_s11 + $0xd8] sm:$0xf] }
 0x4d9   : > { %4292 = vmatmul.bf16.gmra.mxu1 %v5542_v34  ;;  %v6494_v34 = vld [vmem:[%s7811_s11 + $0xec] sm:$0xf0]  ;;  %v5611_v2 = vld [vmem:[%s7811_s11 + $0xf8] sm:$0xf0] }
 0x4da   : > { %4381 = vmatmul.bf16.gmra.mxu2 %v5546_v58  ;;  %v6495_v58 = vld [vmem:[%s7811_s11 + $0xf4] sm:$0xf0] }
 0x4db   : > { %4470 = vmatmul.bf16.gmra.mxu3 %v5550_v59  ;;  %v6491_v59 = vld [vmem:[%s7811_s11 + $0xdc] sm:$0xf] }
 0x4dc   : > { %v5614_v54 = vor.u32 %v6491_v59, %v5611_v2 }
 0x4dd   : > { %v4066_v49 = vpop.f32.mrf.mxu2  ;;  %v3890_v16 = vpop.f32.mrf.mxu0 }
 0x4de   : > { %v4155_v53 = vpop.f32.mrf.mxu3  ;;  %v4067_v50 = vadd.f32 %v4066_v49, %v3978_v35  ;;  %v3979_v24 = vpop.f32.mrf.mxu1  ;;  %v3891_v43 = vadd.f32 %v7880_v1, %v3890_v16 }
 0x4e0   : > { %v8018_v23 = vadd.f32 %v4155_v53, %v4067_v50  ;;  %v3980_v21 = vadd.f32 %v3979_v24, %v3891_v43  ;;  %v5602_v53 = vor.u32 %v6494_v34, %v5601_v63  ;;  %v5606_v50 = vor.u32 %v6490_v13, %v5603_v55 }
 0x4e5   : > { %v4068_v3 = vpop.f32.mrf.mxu2  ;;  %v3893_v17 = vpop.f32.mrf.mxu0 }
 0x4e6   : > { %v4157_v18 = vpop.f32.mrf.mxu3  ;;  %v4069_v14 = vadd.f32 %v4068_v3, %v3980_v21  ;;  %v3982_v38 = vpop.f32.mrf.mxu1  ;;  %v3894_v45 = vadd.f32 %v7880_v1, %v3893_v17  ;;  %v5610_v21 = vor.u32 %v6495_v58, %v5609_v56  ;;  %v6502_v17 = vld [vmem:[%s7811_s11 + $0x12c] sm:$0xf0] }
 0x4e8   : > { %v8029_v10 = vadd.f32 %v4157_v18, %v4069_v14  ;;  %v3983_v15 = vadd.f32 %v3982_v38, %v3894_v45  ;;  %4208 = vmatmul.bf16.gmra.mxu0 %v5570_v5  ;;  %v5633_v14 = vld [vmem:[%s7811_s11 + $0x110] sm:$0xf]  ;;  %v6498_v38 = vld [vmem:[%s7811_s11 + $0x114] sm:$0xf]  ;;  %v6503_v45 = vld [vmem:[%s7811_s11 + $0x134] sm:$0xf0] }
 0x4e9   : > { %4297 = vmatmul.bf16.gmra.mxu1 %v5574_v4 }
 0x4ea   : > { %4386 = vmatmul.bf16.gmra.mxu2 %v5578_v30  ;;  %v5635_v30 = vld [vmem:[%s7811_s11 + $0x130] sm:$0xf0] }
 0x4eb   : > { %4475 = vmatmul.bf16.gmra.mxu3 %v5582_v9  ;;  %v5641_v9 = vld [vmem:[%s7811_s11 + $0x118] sm:$0xf] }
 0x4ec   : > { %v5642_v34 = vor.u32 %v6503_v45, %v5641_v9 }
 0x4ed   : > { %v4071_v61 = vpop.f32.mrf.mxu2  ;;  %v3895_v32 = vpop.f32.mrf.mxu0 }
 0x4ee   : > { %v4160_v47 = vpop.f32.mrf.mxu3  ;;  %v4072_v11 = vadd.f32 %v4071_v61, %v3983_v15  ;;  %v3984_v42 = vpop.f32.mrf.mxu1  ;;  %v3896_v28 = vadd.f32 %v7880_v1, %v3895_v32  ;;  %v6499_v15 = vld [vmem:[%s7811_s11 + $0x11c] sm:$0xf]  ;;  %v5634_v32 = vor.u32 %v6502_v17, %v5633_v14 }
 0x4ef   : > { %v5643_v61 = vld [vmem:[%s7811_s11 + $0x138] sm:$0xf0] }
 0x4f0   : > { %v8032_v46 = vadd.f32 %v4160_v47, %v4072_v11  ;;  %v3985_v25 = vadd.f32 %v3984_v42, %v3896_v28  ;;  %v5638_v42 = vor.u32 %v6498_v38, %v5635_v30  ;;  %v5646_v13 = vor.u32 %v6499_v15, %v5643_v61 }
 0x4f5   : > { %v4073_v35 = vpop.f32.mrf.mxu2  ;;  %v3898_v24 = vpop.f32.mrf.mxu0 }
 0x4f6   : > { %v4162_v49 = vpop.f32.mrf.mxu3  ;;  %v4074_v16 = vadd.f32 %v4073_v35, %v3985_v25  ;;  %v3987_v43 = vpop.f32.mrf.mxu1  ;;  %v3899_v37 = vadd.f32 %v7880_v1, %v3898_v24 }
 0x4f8   : > { %v8043_v6 = vadd.f32 %v4162_v49, %v4074_v16  ;;  %v3988_v52 = vadd.f32 %v3987_v43, %v3899_v37  ;;  %4213 = vmatmul.bf16.gmra.mxu0 %v5602_v53  ;;  %v5665_v43 = vld [vmem:[%s7811_s11 + $0x150] sm:$0xf]  ;;  %v5667_v37 = vld [vmem:[%s7811_s11 + $0x170] sm:$0xf0] }
 0x4f9   : > { %4302 = vmatmul.bf16.gmra.mxu1 %v5606_v50 }
 0x4fa   : > { %4391 = vmatmul.bf16.gmra.mxu2 %v5610_v21  ;;  %v6510_v21 = vld [vmem:[%s7811_s11 + $0x16c] sm:$0xf0] }
 0x4fb   : > { %4480 = vmatmul.bf16.gmra.mxu3 %v5614_v54  ;;  %v6506_v54 = vld [vmem:[%s7811_s11 + $0x154] sm:$0xf] }
 0x4fd   : > { %v4076_v26 = vpop.f32.mrf.mxu2  ;;  %v3900_v48 = vpop.f32.mrf.mxu0 }
 0x4fe   : > { %v4165_v8 = vpop.f32.mrf.mxu3  ;;  %v4077_v7 = vadd.f32 %v4076_v26, %v3988_v52  ;;  %v3989_v3 = vpop.f32.mrf.mxu1  ;;  %v3901_v18 = vadd.f32 %v7880_v1, %v3900_v48  ;;  %v5673_v52 = vld [vmem:[%s7811_s11 + $0x158] sm:$0xf] }
 0x4ff   : > { %v6511_v26 = vld [vmem:[%s7811_s11 + $0x174] sm:$0xf0] }
 0x500   : > { %v8046_v5 = vadd.f32 %v4165_v8, %v4077_v7  ;;  %v3990_v4 = vadd.f32 %v3989_v3, %v3901_v18  ;;  %v6507_v8 = vld [vmem:[%s7811_s11 + $0x15c] sm:$0xf]  ;;  %v5666_v18 = vor.u32 %v6510_v21, %v5665_v43  ;;  %v5674_v30 = vor.u32 %v6511_v26, %v5673_v52 }
 0x501   : > { %v5675_v7 = vld [vmem:[%s7811_s11 + $0x178] sm:$0xf0] }
 0x502   : > { %v5678_v9 = vor.u32 %v6507_v8, %v5675_v7 }
 0x505   : > { %v4078_v47 = vpop.f32.mrf.mxu2  ;;  %v3903_v25 = vpop.f32.mrf.mxu0 }
 0x506   : > { %v4167_v11 = vpop.f32.mrf.mxu3  ;;  %v4079_v28 = vadd.f32 %v4078_v47, %v3990_v4  ;;  %v3992_v63 = vpop.f32.mrf.mxu1  ;;  %v3904_v55 = vadd.f32 %v7880_v1, %v3903_v25  ;;  %v5670_v4 = vor.u32 %v6506_v54, %v5667_v37 }
 0x508   : > { %v8057_v56 = vadd.f32 %v4167_v11, %v4079_v28  ;;  %v3993_v58 = vadd.f32 %v3992_v63, %v3904_v55  ;;  %4218 = vmatmul.bf16.gmra.mxu0 %v5634_v32  ;;  %v6518_v55 = vld [vmem:[%s7811_s11 + $0x1ac] sm:$0xf0] }
 0x509   : > { %4307 = vmatmul.bf16.gmra.mxu1 %v5638_v42 }
 0x50a   : > { %4396 = vmatmul.bf16.gmra.mxu2 %v5642_v34 }
 0x50b   : > { %4485 = vmatmul.bf16.gmra.mxu3 %v5646_v13  ;;  %v5697_v13 = vld [vmem:[%s7811_s11 + $0x190] sm:$0xf] }
 0x50c   : > { %v5698_v43 = vor.u32 %v6518_v55, %v5697_v13 }
 0x50d   : > { %v4081_v59 = vpop.f32.mrf.mxu2  ;;  %v3905_v49 = vpop.f32.mrf.mxu0 }
 0x50e   : > { %v4170_v2 = vpop.f32.mrf.mxu3  ;;  %v4082_v35 = vadd.f32 %v4081_v59, %v3993_v58  ;;  %v3994_v53 = vpop.f32.mrf.mxu1  ;;  %v3906_v50 = vadd.f32 %v7880_v1, %v3905_v49  ;;  %v6514_v58 = vld [vmem:[%s7811_s11 + $0x194] sm:$0xf]  ;;  %v6515_v49 = vld [vmem:[%s7811_s11 + $0x19c] sm:$0xf] }
 0x50f   : > { %v5699_v59 = vld [vmem:[%s7811_s11 + $0x1b0] sm:$0xf0] }
 0x510   : > { %v8060_v16 = vadd.f32 %v4170_v2, %v4082_v35  ;;  %v3995_v24 = vadd.f32 %v3994_v53, %v3906_v50  ;;  %v5705_v2 = vld [vmem:[%s7811_s11 + $0x198] sm:$0xf]  ;;  %v5707_v53 = vld [vmem:[%s7811_s11 + $0x1b8] sm:$0xf0]  ;;  %v5702_v21 = vor.u32 %v6514_v58, %v5699_v59 }
 0x511   : > { %v6519_v35 = vld [vmem:[%s7811_s11 + $0x1b4] sm:$0xf0]  ;;  %v5710_v8 = vor.u32 %v6515_v49, %v5707_v53 }
 0x512   : > { %v5706_v26 = vor.u32 %v6519_v35, %v5705_v2 }
 0x515   : > { %v4083_v48 = vpop.f32.mrf.mxu2  ;;  %v3908_v17 = vpop.f32.mrf.mxu0 }
 0x516   : > { %v4172_v3 = vpop.f32.mrf.mxu3  ;;  %v4084_v14 = vadd.f32 %v4083_v48, %v3995_v24  ;;  %v3997_v38 = vpop.f32.mrf.mxu1  ;;  %v3909_v45 = vadd.f32 %v7880_v1, %v3908_v17 }
 0x518   : > { %v8071_v15 = vadd.f32 %v4172_v3, %v4084_v14  ;;  %v3998_v61 = vadd.f32 %v3997_v38, %v3909_v45  ;;  %4223 = vmatmul.bf16.gmra.mxu0 %v5666_v18 }
 0x519   : > { %4312 = vmatmul.bf16.gmra.mxu1 %v5670_v4 }
 0x51a   : > { %4401 = vmatmul.bf16.gmra.mxu2 %v5674_v30 }
 0x51b   : > { %4490 = vmatmul.bf16.gmra.mxu3 %v5678_v9 }
 0x51d   : > { %v4086_v47 = vpop.f32.mrf.mxu2  ;;  %v3910_v42 = vpop.f32.mrf.mxu0 }
 0x51e   : > { %v4175_v11 = vpop.f32.mrf.mxu3  ;;  %v4087_v32 = vadd.f32 %v4086_v47, %v3998_v61  ;;  %v3999_v28 = vpop.f32.mrf.mxu1  ;;  %v3911_v25 = vadd.f32 %v7880_v1, %v3910_v42  ;;  %v5729_v61 = vld [vmem:[%s7811_s11 + $0x1d0] sm:$0xf]  ;;  %v5737_v42 = vld [vmem:[%s7811_s11 + $0x1d8] sm:$0xf] }
 0x51f   : > { %v6526_v47 = vld [vmem:[%s7811_s11 + $0x1ec] sm:$0xf0] }
 0x520   : > { %v8074_v63 = vadd.f32 %v4175_v11, %v4087_v32  ;;  %v4000_v34 = vadd.f32 %v3999_v28, %v3911_v25  ;;  %v6522_v11 = vld [vmem:[%s7811_s11 + $0x1d4] sm:$0xf]  ;;  %v6527_v28 = vld [vmem:[%s7811_s11 + $0x1f4] sm:$0xf0]  ;;  %v6523_v25 = vld [vmem:[%s7811_s11 + $0x1dc] sm:$0xf]  ;;  %v5730_v58 = vor.u32 %v6526_v47, %v5729_v61 }
 0x521   : > { %v5731_v32 = vld [vmem:[%s7811_s11 + $0x1f0] sm:$0xf0]  ;;  %v5738_v53 = vor.u32 %v6527_v28, %v5737_v42  ;;  %v6531_v61 = vld [vmem:[%s7811_s11 + $0x21c] sm:$0xf] }
 0x522   : > { %v5734_v59 = vor.u32 %v6522_v11, %v5731_v32  ;;  %v5771_v47 = vld [vmem:[%s7811_s11 + $0x238] sm:$0xf0] }
 0x525   : > { %v4088_v50 = vpop.f32.mrf.mxu2  ;;  %v3913_v37 = vpop.f32.mrf.mxu0 }
 0x526   : > { %v4177_v24 = vpop.f32.mrf.mxu3  ;;  %v4089_v54 = vadd.f32 %v4088_v50, %v4000_v34  ;;  %v4002_v52 = vpop.f32.mrf.mxu1  ;;  %v3914_v7 = vadd.f32 %v7880_v1, %v3913_v37  ;;  %v5739_v34 = vld [vmem:[%s7811_s11 + $0x1f8] sm:$0xf0]  ;;  %v6823_v50 = vld [vmem:[%s8253_s3] ss:$0 sm:$0xff] }
 0x528   : > { %v8085_v48 = vadd.f32 %v4177_v24, %v4089_v54  ;;  %v4003_v3 = vadd.f32 %v4002_v52, %v3914_v7  ;;  %4228 = vmatmul.bf16.gmra.mxu0 %v5698_v43 }
 0x529   : > { %4317 = vmatmul.bf16.gmra.mxu1 %v5702_v21 }
 0x52a   : > { %4406 = vmatmul.bf16.gmra.mxu2 %v5706_v26 }
 0x52b   : > { %4495 = vmatmul.bf16.gmra.mxu3 %v5710_v8 }
 0x52d   : > { %v4091_v18 = vpop.f32.mrf.mxu2  ;;  %v3915_v17 = vpop.f32.mrf.mxu0 }
 0x52e   : > { %v4180_v4 = vpop.f32.mrf.mxu3  ;;  %v4092_v14 = vadd.f32 %v4091_v18, %v4003_v3  ;;  %v4004_v38 = vpop.f32.mrf.mxu1  ;;  %v3916_v30 = vadd.f32 %v7880_v1, %v3915_v17  ;;  %v5742_v1 = vor.u32 %v6523_v25, %v5739_v34  ;;  %v6530_v17 = vld [vmem:[%s7811_s11 + $0x214] sm:$0xf] }
 0x530   : > { %v8088_v9 = vadd.f32 %v4180_v4, %v4092_v14  ;;  %v4005_v45 = vadd.f32 %v4004_v38, %v3916_v30  ;;  %v5761_v4 = vld [vmem:[%s7811_s11 + $0x210] sm:$0xf]  ;;  %v5763_v38 = vld [vmem:[%s7811_s11 + $0x230] sm:$0xf0]  ;;  %v5769_v30 = vld [vmem:[%s7811_s11 + $0x218] sm:$0xf] }
 0x531   : > { %v6534_v14 = vld [vmem:[%s7811_s11 + $0x22c] sm:$0xf0]  ;;  %v5766_v28 = vor.u32 %v6530_v17, %v5763_v38 }
 0x532   : > { %v5762_v42 = vor.u32 %v6534_v14, %v5761_v4  ;;  %v5803_v4 = vld [vmem:[%s7811_s11 + $0x278] sm:$0xf0] }
 0x535   : > { %v4093_v13 = vpop.f32.mrf.mxu2  ;;  %v3918_v35 = vpop.f32.mrf.mxu0 }
 0x536   : > { %v4182_v55 = vpop.f32.mrf.mxu3  ;;  %v4094_v2 = vadd.f32 %v4093_v13, %v4005_v45  ;;  %v4007_v49 = vpop.f32.mrf.mxu1  ;;  %v3919_v24 = vadd.f32 %v6823_v50, %v3918_v35  ;;  %v6535_v45 = vld [vmem:[%s7811_s11 + $0x234] sm:$0xf0] }
 0x538   : > { %v8101_v43 = vadd.f32 %v4182_v55, %v4094_v2  ;;  %v4008_v21 = vadd.f32 %v4007_v49, %v3919_v24  ;;  %4233 = vmatmul.bf16.gmra.mxu0 %v5730_v58  ;;  %v5770_v55 = vor.u32 %v6535_v45, %v5769_v30  ;;  %v5774_v58 = vor.u32 %v6531_v61, %v5771_v47 }
 0x539   : > { %4322 = vmatmul.bf16.gmra.mxu1 %v5734_v59 }
 0x53a   : > { %4411 = vmatmul.bf16.gmra.mxu2 %v5738_v53 }
 0x53b   : > { %4500 = vmatmul.bf16.gmra.mxu3 %v5742_v1 }
 0x53d   : > { %v4096_v54 = vpop.f32.mrf.mxu2  ;;  %v3920_v26 = vpop.f32.mrf.mxu0 }
 0x53e   : > { %v4185_v37 = vpop.f32.mrf.mxu3  ;;  %v4097_v52 = vadd.f32 %v4096_v54, %v4008_v21  ;;  %v4009_v8 = vpop.f32.mrf.mxu1  ;;  %v3921_v7 = vadd.f32 %v6823_v50, %v3920_v26  ;;  %v5795_v26 = vld [vmem:[%s7811_s11 + $0x270] sm:$0xf0] }
 0x540   : > { %v8103_v3 = vadd.f32 %v4185_v37, %v4097_v52  ;;  %v4010_v18 = vadd.f32 %v4009_v8, %v3921_v7  ;;  %v6542_v37 = vld [vmem:[%s7811_s11 + $0x26c] sm:$0xf0]  ;;  %v6538_v52 = vld [vmem:[%s7811_s11 + $0x254] sm:$0xf]  ;;  %v5801_v8 = vld [vmem:[%s7811_s11 + $0x258] sm:$0xf] }
 0x541   : > { %v6543_v7 = vld [vmem:[%s7811_s11 + $0x274] sm:$0xf0]  ;;  %v5798_v45 = vor.u32 %v6538_v52, %v5795_v26 }
 0x545   : > { %v4098_v11 = vpop.f32.mrf.mxu2  ;;  %v4199_v34 = vpop.f32.mrf.mxu0 }
 0x546   : > { %v4187_v32 = vpop.f32.mrf.mxu3  ;;  %v4099_v25 = vadd.f32 %v4098_v11, %v4010_v18  ;;  %v4288_v13 = vpop.f32.mrf.mxu1  ;;  %v4200_v2 = vadd.f32 %v4199_v34, %v7892_v27  ;;  %v5793_v27 = vld [vmem:[%s7811_s11 + $0x250] sm:$0xf]  ;;  %v6539_v18 = vld [vmem:[%s7811_s11 + $0x25c] sm:$0xf] }
 0x547   : > { %v5794_v30 = vor.u32 %v6542_v37, %v5793_v27  ;;  %v5835_v27 = vld [vmem:[%s7811_s11 + $0x2b8] sm:$0xf0] }
 0x548   : > { %v8113_v59 = vadd.f32 %v4187_v32, %v4099_v25  ;;  %4238 = vmatmul.bf16.gmra.mxu0 %v5762_v42  ;;  %v4289_v35 = vadd.f32 %v4288_v13, %v4200_v2  ;;  %v5802_v32 = vor.u32 %v6543_v7, %v5801_v8 }
 0x549   : > { %4327 = vmatmul.bf16.gmra.mxu1 %v5766_v28 }
 0x54a   : > { %4416 = vmatmul.bf16.gmra.mxu2 %v5770_v55 }
 0x54b   : > { %4505 = vmatmul.bf16.gmra.mxu3 %v5774_v58 }
 0x54d   : > { %v4377_v49 = vpop.f32.mrf.mxu2  ;;  %v4201_v50 = vpop.f32.mrf.mxu0 }
 0x54e   : > { %v4466_v53 = vpop.f32.mrf.mxu3  ;;  %v4378_v1 = vadd.f32 %v4377_v49, %v4289_v35  ;;  %v4290_v24 = vpop.f32.mrf.mxu1  ;;  %v4202_v54 = vadd.f32 %v4201_v50, %v7903_v29  ;;  %v5806_v29 = vor.u32 %v6539_v18, %v5803_v4  ;;  %v5825_v49 = vld [vmem:[%s7811_s11 + $0x290] sm:$0xf]  ;;  %v5827_v50 = vld [vmem:[%s7811_s11 + $0x2b0] sm:$0xf0] }
 0x550   : > { %v4467_v21 = vadd.f32 %v4466_v53, %v4378_v1  ;;  %v4291_v14 = vadd.f32 %v4290_v24, %v4202_v54  ;;  %v6550_v53 = vld [vmem:[%s7811_s11 + $0x2ac] sm:$0xf0]  ;;  %v6546_v1 = vld [vmem:[%s7811_s11 + $0x294] sm:$0xf]  ;;  %v5833_v24 = vld [vmem:[%s7811_s11 + $0x298] sm:$0xf] }
 0x551   : > { %v6547_v54 = vld [vmem:[%s7811_s11 + $0x29c] sm:$0xf]  ;;  %v5826_v8 = vor.u32 %v6550_v53, %v5825_v49  ;;  %v5830_v7 = vor.u32 %v6546_v1, %v5827_v50 }
 0x552   : > { %4546 = vst [vmem:[%s7000_s10] sm:$0xff] %v4467_v21  ;;  %v6551_v21 = vld [vmem:[%s7811_s11 + $0x2b4] sm:$0xf0] }
 0x555   : > { %v4379_v17 = vpop.f32.mrf.mxu2  ;;  %v4204_v47 = vpop.f32.mrf.mxu0 }
 0x556   : > { %v4468_v38 = vpop.f32.mrf.mxu3  ;;  %v4380_v61 = vadd.f32 %v4379_v17, %v4291_v14  ;;  %v4293_v11 = vpop.f32.mrf.mxu1  ;;  %v4205_v28 = vadd.f32 %v4204_v47, %v7906_v20  ;;  %v5834_v17 = vor.u32 %v6551_v21, %v5833_v24 }
 0x558   : > { %v4469_v42 = vadd.f32 %v4468_v38, %v4380_v61  ;;  %4243 = vmatmul.bf16.gmra.mxu0 %v5794_v30  ;;  %v4294_v25 = vadd.f32 %v4293_v11, %v4205_v28  ;;  %v5857_v28 = vld [vmem:[%s7811_s11 + $0x2d0] sm:$0xf] }
 0x559   : > { %4332 = vmatmul.bf16.gmra.mxu1 %v5798_v45 }
 0x55a   : > { %4547 = vst [vmem:[%s7000_s10 + $0x8] sm:$0xff] %v4469_v42  ;;  %4421 = vmatmul.bf16.gmra.mxu2 %v5802_v32 }
 0x55b   : > { %4510 = vmatmul.bf16.gmra.mxu3 %v5806_v29 }
 0x55d   : > { %v4382_v34 = vpop.f32.mrf.mxu2  ;;  %v4206_v58 = vpop.f32.mrf.mxu0 }
 0x55e   : > { %v4471_v13 = vpop.f32.mrf.mxu3  ;;  %v4383_v55 = vadd.f32 %v4382_v34, %v4294_v25  ;;  %v4295_v2 = vpop.f32.mrf.mxu1  ;;  %v4207_v20 = vadd.f32 %v4206_v58, %v7917_v44  ;;  %v5838_v44 = vor.u32 %v6547_v54, %v5835_v27  ;;  %v6558_v25 = vld [vmem:[%s7811_s11 + $0x2ec] sm:$0xf0]  ;;  %v6554_v34 = vld [vmem:[%s7811_s11 + $0x2d4] sm:$0xf]  ;;  %v6559_v58 = vld [vmem:[%s7811_s11 + $0x2f4] sm:$0xf0] }
 0x55f   : > { %v5858_v1 = vor.u32 %v6558_v25, %v5857_v28 }
 0x560   : > { %v4472_v35 = vadd.f32 %v4471_v13, %v4383_v55  ;;  %v4296_v37 = vadd.f32 %v4295_v2, %v4207_v20  ;;  %v5859_v13 = vld [vmem:[%s7811_s11 + $0x2f0] sm:$0xf0]  ;;  %v5865_v55 = vld [vmem:[%s7811_s11 + $0x2d8] sm:$0xf]  ;;  %v6555_v2 = vld [vmem:[%s7811_s11 + $0x2dc] sm:$0xf] }
 0x561   : > { %v5862_v50 = vor.u32 %v6554_v34, %v5859_v13  ;;  %v5866_v27 = vor.u32 %v6559_v58, %v5865_v55 }
 0x562   : > { %4548 = vst [vmem:[%s7000_s10 + $0x10] sm:$0xff] %v4472_v35  ;;  %v5867_v35 = vld [vmem:[%s7811_s11 + $0x2f8] sm:$0xf0] }
 0x565   : > { %v4384_v52 = vpop.f32.mrf.mxu2  ;;  %v4209_v4 = vpop.f32.mrf.mxu0 }
 0x566   : > { %v4473_v26 = vpop.f32.mrf.mxu3  ;;  %v4385_v18 = vadd.f32 %v4384_v52, %v4296_v37  ;;  %v4298_v14 = vpop.f32.mrf.mxu1  ;;  %v4210_v30 = vadd.f32 %v4209_v4, %v7920_v40 }
 0x568   : > { %v4474_v38 = vadd.f32 %v4473_v26, %v4385_v18  ;;  %4248 = vmatmul.bf16.gmra.mxu0 %v5826_v8  ;;  %v4299_v45 = vadd.f32 %v4298_v14, %v4210_v30  ;;  %v6562_v30 = vld [vmem:[%s7811_s11 + $0x314] sm:$0xf] }
 0x569   : > { %4337 = vmatmul.bf16.gmra.mxu1 %v5830_v7 }
 0x56a   : > { %4549 = vst [vmem:[%s7000_s10 + $0x18] sm:$0xff] %v4474_v38  ;;  %4426 = vmatmul.bf16.gmra.mxu2 %v5834_v17  ;;  %v6566_v38 = vld [vmem:[%s7811_s11 + $0x32c] sm:$0xf0] }
 0x56b   : > { %4515 = vmatmul.bf16.gmra.mxu3 %v5838_v44  ;;  %v5889_v44 = vld [vmem:[%s7811_s11 + $0x310] sm:$0xf] }
 0x56c   : > { %v5890_v28 = vor.u32 %v6566_v38, %v5889_v44 }
 0x56d   : > { %v4387_v61 = vpop.f32.mrf.mxu2  ;;  %v4211_v32 = vpop.f32.mrf.mxu0 }
 0x56e   : > { %v4476_v47 = vpop.f32.mrf.mxu3  ;;  %v4388_v11 = vadd.f32 %v4387_v61, %v4299_v45  ;;  %v4300_v29 = vpop.f32.mrf.mxu1  ;;  %v4212_v40 = vadd.f32 %v4211_v32, %v7931_v19  ;;  %v5870_v19 = vor.u32 %v6555_v2, %v5867_v35  ;;  %v5891_v45 = vld [vmem:[%s7811_s11 + $0x330] sm:$0xf0]  ;;  %v5897_v61 = vld [vmem:[%s7811_s11 + $0x318] sm:$0xf]  ;;  %v5899_v32 = vld [vmem:[%s7811_s11 + $0x338] sm:$0xf0] }
 0x56f   : > { %v5894_v25 = vor.u32 %v6562_v30, %v5891_v45 }
 0x570   : > { %v4477_v42 = vadd.f32 %v4476_v47, %v4388_v11  ;;  %v4301_v20 = vadd.f32 %v4300_v29, %v4212_v40  ;;  %v6567_v47 = vld [vmem:[%s7811_s11 + $0x334] sm:$0xf0]  ;;  %v6563_v11 = vld [vmem:[%s7811_s11 + $0x31c] sm:$0xf] }
 0x571   : > { %v5898_v58 = vor.u32 %v6567_v47, %v5897_v61 }
 0x572   : > { %4550 = vst [vmem:[%s7000_s10 + $0x20] sm:$0xff] %v4477_v42 }
 0x575   : > { %v4389_v49 = vpop.f32.mrf.mxu2  ;;  %v4214_v21 = vpop.f32.mrf.mxu0 }
 0x576   : > { %v4478_v53 = vpop.f32.mrf.mxu3  ;;  %v4390_v24 = vadd.f32 %v4389_v49, %v4301_v20  ;;  %v4303_v54 = vpop.f32.mrf.mxu1  ;;  %v4215_v52 = vadd.f32 %v4214_v21, %v7934_v33 }
 0x578   : > { %v4479_v37 = vadd.f32 %v4478_v53, %v4390_v24  ;;  %4253 = vmatmul.bf16.gmra.mxu0 %v5858_v1  ;;  %v4304_v26 = vadd.f32 %v4303_v54, %v4215_v52  ;;  %v5921_v54 = vld [vmem:[%s7811_s11 + $0x350] sm:$0xf]  ;;  %v5929_v52 = vld [vmem:[%s7811_s11 + $0x358] sm:$0xf] }
 0x579   : > { %4342 = vmatmul.bf16.gmra.mxu1 %v5862_v50 }
 0x57a   : > { %4551 = vst [vmem:[%s7000_s10 + $0x28] sm:$0xff] %v4479_v37  ;;  %4431 = vmatmul.bf16.gmra.mxu2 %v5866_v27  ;;  %v6574_v27 = vld [vmem:[%s7811_s11 + $0x36c] sm:$0xf0]  ;;  %v5923_v37 = vld [vmem:[%s7811_s11 + $0x370] sm:$0xf0] }
 0x57b   : > { %4520 = vmatmul.bf16.gmra.mxu3 %v5870_v19  ;;  %v6570_v19 = vld [vmem:[%s7811_s11 + $0x354] sm:$0xf] }
 0x57d   : > { %v4392_v8 = vpop.f32.mrf.mxu2  ;;  %v4216_v4 = vpop.f32.mrf.mxu0 }
 0x57e   : > { %v4481_v7 = vpop.f32.mrf.mxu3  ;;  %v4393_v18 = vadd.f32 %v4392_v8, %v4304_v26  ;;  %v4305_v14 = vpop.f32.mrf.mxu1  ;;  %v4217_v33 = vadd.f32 %v4216_v4, %v7945_v36  ;;  %v5902_v36 = vor.u32 %v6563_v11, %v5899_v32  ;;  %v6575_v26 = vld [vmem:[%s7811_s11 + $0x374] sm:$0xf0]  ;;  %v6571_v8 = vld [vmem:[%s7811_s11 + $0x35c] sm:$0xf] }
 0x57f   : > { %v5930_v45 = vor.u32 %v6575_v26, %v5929_v52 }
 0x580   : > { %v4482_v17 = vadd.f32 %v4481_v7, %v4393_v18  ;;  %v4306_v29 = vadd.f32 %v4305_v14, %v4217_v33  ;;  %v5931_v7 = vld [vmem:[%s7811_s11 + $0x378] sm:$0xf0]  ;;  %v5926_v33 = vor.u32 %v6570_v19, %v5923_v37 }
 0x582   : > { %4552 = vst [vmem:[%s7000_s10 + $0x30] sm:$0xff] %v4482_v17  ;;  %v5922_v17 = vor.u32 %v6574_v27, %v5921_v54 }
 0x585   : > { %v4394_v42 = vpop.f32.mrf.mxu2  ;;  %v4219_v13 = vpop.f32.mrf.mxu0 }
 0x586   : > { %v4483_v40 = vpop.f32.mrf.mxu3  ;;  %v4395_v34 = vadd.f32 %v4394_v42, %v4306_v29  ;;  %v4308_v55 = vpop.f32.mrf.mxu1  ;;  %v4220_v35 = vadd.f32 %v4219_v13, %v7948_v0  ;;  %v6582_v13 = vld [vmem:[%s7811_s11 + $0x3ac] sm:$0xf0] }
 0x588   : > { %v4484_v2 = vadd.f32 %v4483_v40, %v4395_v34  ;;  %4258 = vmatmul.bf16.gmra.mxu0 %v5890_v28  ;;  %v4309_v20 = vadd.f32 %v4308_v55, %v4220_v35  ;;  %v5953_v34 = vld [vmem:[%s7811_s11 + $0x390] sm:$0xf]  ;;  %v6578_v55 = vld [vmem:[%s7811_s11 + $0x394] sm:$0xf]  ;;  %v6579_v35 = vld [vmem:[%s7811_s11 + $0x39c] sm:$0xf] }
 0x589   : > { %4347 = vmatmul.bf16.gmra.mxu1 %v5894_v25 }
 0x58a   : > { %4553 = vst [vmem:[%s7000_s10 + $0x38] sm:$0xff] %v4484_v2  ;;  %4436 = vmatmul.bf16.gmra.mxu2 %v5898_v58  ;;  %v5955_v58 = vld [vmem:[%s7811_s11 + $0x3b0] sm:$0xf0]  ;;  %v6583_v2 = vld [vmem:[%s7811_s11 + $0x3b4] sm:$0xf0] }
 0x58b   : > { %4525 = vmatmul.bf16.gmra.mxu3 %v5902_v36  ;;  %v5961_v36 = vld [vmem:[%s7811_s11 + $0x398] sm:$0xf] }
 0x58c   : > { %v5962_v27 = vor.u32 %v6583_v2, %v5961_v36 }
 0x58d   : > { %v4397_v49 = vpop.f32.mrf.mxu2  ;;  %v4221_v50 = vpop.f32.mrf.mxu0 }
 0x58e   : > { %v4486_v53 = vpop.f32.mrf.mxu3  ;;  %v4398_v1 = vadd.f32 %v4397_v49, %v4309_v20  ;;  %v4310_v24 = vpop.f32.mrf.mxu1  ;;  %v4222_v0 = vadd.f32 %v4221_v50, %v7959_v60  ;;  %v5934_v60 = vor.u32 %v6571_v8, %v5931_v7  ;;  %v5963_v20 = vld [vmem:[%s7811_s11 + $0x3b8] sm:$0xf0]  ;;  %v5954_v50 = vor.u32 %v6582_v13, %v5953_v34 }
 0x590   : > { %v4487_v21 = vadd.f32 %v4486_v53, %v4398_v1  ;;  %v4311_v18 = vadd.f32 %v4310_v24, %v4222_v0  ;;  %v5958_v24 = vor.u32 %v6578_v55, %v5955_v58 }
 0x592   : > { %4554 = vst [vmem:[%s7000_s10 + $0x40] sm:$0xff] %v4487_v21 }
 0x595   : > { %v4399_v4 = vpop.f32.mrf.mxu2  ;;  %v4224_v38 = vpop.f32.mrf.mxu0 }
 0x596   : > { %v4488_v14 = vpop.f32.mrf.mxu3  ;;  %v4400_v44 = vadd.f32 %v4399_v4, %v4311_v18  ;;  %v4313_v30 = vpop.f32.mrf.mxu1  ;;  %v4225_v47 = vadd.f32 %v4224_v38, %v7962_v62  ;;  %v5987_v38 = vld [vmem:[%s7811_s11 + $0x3f0] sm:$0xf0] }
 0x598   : > { %v4489_v61 = vadd.f32 %v4488_v14, %v4400_v44  ;;  %4263 = vmatmul.bf16.gmra.mxu0 %v5922_v17  ;;  %v4314_v11 = vadd.f32 %v4313_v30, %v4225_v47  ;;  %v5985_v17 = vld [vmem:[%s7811_s11 + $0x3d0] sm:$0xf]  ;;  %v6586_v44 = vld [vmem:[%s7811_s11 + $0x3d4] sm:$0xf]  ;;  %v5993_v30 = vld [vmem:[%s7811_s11 + $0x3d8] sm:$0xf] }
 0x599   : > { %4352 = vmatmul.bf16.gmra.mxu1 %v5926_v33  ;;  %v6590_v33 = vld [vmem:[%s7811_s11 + $0x3ec] sm:$0xf0] }
 0x59a   : > { %4555 = vst [vmem:[%s7000_s10 + $0x48] sm:$0xff] %v4489_v61  ;;  %4441 = vmatmul.bf16.gmra.mxu2 %v5930_v45  ;;  %v6591_v45 = vld [vmem:[%s7811_s11 + $0x3f4] sm:$0xf0]  ;;  %v5995_v61 = vld [vmem:[%s7811_s11 + $0x3f8] sm:$0xf0] }
 0x59b   : > { %4530 = vmatmul.bf16.gmra.mxu3 %v5934_v60  ;;  %v6587_v60 = vld [vmem:[%s7811_s11 + $0x3dc] sm:$0xf] }
 0x59d   : > { %v4402_v32 = vpop.f32.mrf.mxu2  ;;  %v4226_v40 = vpop.f32.mrf.mxu0 }
 0x59e   : > { %v4491_v29 = vpop.f32.mrf.mxu3  ;;  %v4403_v42 = vadd.f32 %v4402_v32, %v4314_v11  ;;  %v4315_v28 = vpop.f32.mrf.mxu1  ;;  %v4227_v62 = vadd.f32 %v4226_v40, %v7973_v39  ;;  %v5966_v39 = vor.u32 %v6579_v35, %v5963_v20 }
 0x5a0   : > { %v4492_v25 = vadd.f32 %v4491_v29, %v4403_v42  ;;  %v4316_v49 = vadd.f32 %v4315_v28, %v4227_v62  ;;  %v5986_v29 = vor.u32 %v6590_v33, %v5985_v17  ;;  %v5990_v42 = vor.u32 %v6586_v44, %v5987_v38 }
 0x5a1   : > { %v5994_v62 = vor.u32 %v6591_v45, %v5993_v30 }
 0x5a2   : > { %4556 = vst [vmem:[%s7000_s10 + $0x50] sm:$0xff] %v4492_v25 }
 0x5a5   : > { %v4404_v53 = vpop.f32.mrf.mxu2  ;;  %v4229_v0 = vpop.f32.mrf.mxu0 }
 0x5a6   : > { %v4493_v1 = vpop.f32.mrf.mxu3  ;;  %v4405_v21 = vadd.f32 %v4404_v53, %v4316_v49  ;;  %v4318_v54 = vpop.f32.mrf.mxu1  ;;  %v4230_v37 = vadd.f32 %v4229_v0, %v7976_v41 }
 0x5a8   : > { %v4494_v19 = vadd.f32 %v4493_v1, %v4405_v21  ;;  %4268 = vmatmul.bf16.gmra.mxu0 %v5954_v50  ;;  %v4319_v52 = vadd.f32 %v4318_v54, %v4230_v37 }
 0x5a9   : > { %4357 = vmatmul.bf16.gmra.mxu1 %v5958_v24 }
 0x5aa   : > { %4557 = vst [vmem:[%s7000_s10 + $0x58] sm:$0xff] %v4494_v19  ;;  %4446 = vmatmul.bf16.gmra.mxu2 %v5962_v27 }
 0x5ab   : > { %4535 = vmatmul.bf16.gmra.mxu3 %v5966_v39 }
 0x5ad   : > { %v4407_v26 = vpop.f32.mrf.mxu2  ;;  %v4231_v18 = vpop.f32.mrf.mxu0 }
 0x5ae   : > { %v4496_v8 = vpop.f32.mrf.mxu3  ;;  %v4408_v7 = vadd.f32 %v4407_v26, %v4319_v52  ;;  %v4320_v4 = vpop.f32.mrf.mxu1  ;;  %v4232_v41 = vadd.f32 %v4231_v18, %v7987_v51  ;;  %v5998_v51 = vor.u32 %v6587_v60, %v5995_v61 }
 0x5b0   : > { %v4497_v14 = vadd.f32 %v4496_v8, %v4408_v7  ;;  %v4321_v47 = vadd.f32 %v4320_v4, %v4232_v41 }
 0x5b2   : > { %4558 = vst [vmem:[%s7000_s10 + $0x60] sm:$0xff] %v4497_v14 }
 0x5b5   : > { %v4409_v11 = vpop.f32.mrf.mxu2  ;;  %v4234_v28 = vpop.f32.mrf.mxu0 }
 0x5b6   : > { %v4498_v32 = vpop.f32.mrf.mxu3  ;;  %v4410_v40 = vadd.f32 %v4409_v11, %v4321_v47  ;;  %v4323_v25 = vpop.f32.mrf.mxu1  ;;  %v4235_v13 = vadd.f32 %v4234_v28, %v7990_v22 }
 0x5b8   : > { %v4499_v34 = vadd.f32 %v4498_v32, %v4410_v40  ;;  %4273 = vmatmul.bf16.gmra.mxu0 %v5986_v29  ;;  %v4324_v55 = vadd.f32 %v4323_v25, %v4235_v13 }
 0x5b9   : > { %4362 = vmatmul.bf16.gmra.mxu1 %v5990_v42 }
 0x5ba   : > { %4559 = vst [vmem:[%s7000_s10 + $0x68] sm:$0xff] %v4499_v34  ;;  %4451 = vmatmul.bf16.gmra.mxu2 %v5994_v62 }
 0x5bb   : > { %4540 = vmatmul.bf16.gmra.mxu3 %v5998_v51 }
 0x5bd   : > { %v4412_v58 = vpop.f32.mrf.mxu2  ;;  %v4236_v35 = vpop.f32.mrf.mxu0 }
 0x5be   : > { %v4501_v36 = vpop.f32.mrf.mxu3  ;;  %v4413_v2 = vadd.f32 %v4412_v58, %v4324_v55  ;;  %v4325_v20 = vpop.f32.mrf.mxu1  ;;  %v4237_v53 = vadd.f32 %v4236_v35, %v8001_v12 }
 0x5c0   : > { %v4502_v49 = vadd.f32 %v4501_v36, %v4413_v2  ;;  %v4326_v1 = vadd.f32 %v4325_v20, %v4237_v53 }
 0x5c2   : > { %4560 = vst [vmem:[%s7000_s10 + $0x70] sm:$0xff] %v4502_v49 }
 0x5c5   : > { %v4414_v50 = vpop.f32.mrf.mxu2  ;;  %v4239_v21 = vpop.f32.mrf.mxu0 }
 0x5c6   : > { %v4503_v22 = vpop.f32.mrf.mxu3  ;;  %v4415_v24 = vadd.f32 %v4414_v50, %v4326_v1  ;;  %v4328_v0 = vpop.f32.mrf.mxu1  ;;  %v4240_v27 = vadd.f32 %v4239_v21, %v8004_v31 }
 0x5c8   : > { %v4504_v54 = vadd.f32 %v4503_v22, %v4415_v24  ;;  %v4329_v39 = vadd.f32 %v4328_v0, %v4240_v27 }
 0x5ca   : > { %4561 = vst [vmem:[%s7000_s10 + $0x78] sm:$0xff] %v4504_v54 }
 0x5cd   : > { %v4417_v19 = vpop.f32.mrf.mxu2  ;;  %v4241_v26 = vpop.f32.mrf.mxu0 }
 0x5ce   : > { %v4506_v37 = vpop.f32.mrf.mxu3  ;;  %v4418_v52 = vadd.f32 %v4417_v19, %v4329_v39  ;;  %v4330_v8 = vpop.f32.mrf.mxu1  ;;  %v4242_v7 = vadd.f32 %v4241_v26, %v8015_v57 }
 0x5d0   : > { %v4507_v12 = vadd.f32 %v4506_v37, %v4418_v52  ;;  %v4331_v18 = vadd.f32 %v4330_v8, %v4242_v7 }
 0x5d2   : > { %4562 = vst [vmem:[%s7000_s10 + $0x80] sm:$0xff] %v4507_v12 }
 0x5d5   : > { %v4419_v4 = vpop.f32.mrf.mxu2  ;;  %v4244_v17 = vpop.f32.mrf.mxu0 }
 0x5d6   : > { %v4508_v14 = vpop.f32.mrf.mxu3  ;;  %v4420_v41 = vadd.f32 %v4419_v4, %v4331_v18  ;;  %v4333_v33 = vpop.f32.mrf.mxu1  ;;  %v4245_v44 = vadd.f32 %v4244_v17, %v8018_v23 }
 0x5d8   : > { %v4509_v31 = vadd.f32 %v4508_v14, %v4420_v41  ;;  %v4334_v38 = vadd.f32 %v4333_v33, %v4245_v44 }
 0x5da   : > { %4563 = vst [vmem:[%s7000_s10 + $0x88] sm:$0xff] %v4509_v31 }
 0x5dd   : > { %v4422_v30 = vpop.f32.mrf.mxu2  ;;  %v4246_v61 = vpop.f32.mrf.mxu0 }
 0x5de   : > { %v4511_v45 = vpop.f32.mrf.mxu3  ;;  %v4423_v60 = vadd.f32 %v4422_v30, %v4334_v38  ;;  %v4335_v47 = vpop.f32.mrf.mxu1  ;;  %v4247_v11 = vadd.f32 %v4246_v61, %v8029_v10 }
 0x5e0   : > { %v4512_v57 = vadd.f32 %v4511_v45, %v4423_v60  ;;  %v4336_v32 = vadd.f32 %v4335_v47, %v4247_v11 }
 0x5e2   : > { %4564 = vst [vmem:[%s7000_s10 + $0x90] sm:$0xff] %v4512_v57 }
 0x5e5   : > { %v4424_v29 = vpop.f32.mrf.mxu2  ;;  %v4249_v28 = vpop.f32.mrf.mxu0 }
 0x5e6   : > { %v4513_v42 = vpop.f32.mrf.mxu3  ;;  %v4425_v40 = vadd.f32 %v4424_v29, %v4336_v32  ;;  %v4338_v25 = vpop.f32.mrf.mxu1  ;;  %v4250_v62 = vadd.f32 %v4249_v28, %v8032_v46 }
 0x5e8   : > { %v4514_v23 = vadd.f32 %v4513_v42, %v4425_v40  ;;  %v4339_v51 = vadd.f32 %v4338_v25, %v4250_v62 }
 0x5ea   : > { %4565 = vst [vmem:[%s7000_s10 + $0x98] sm:$0xff] %v4514_v23 }
 0x5ed   : > { %v4427_v34 = vpop.f32.mrf.mxu2  ;;  %v4251_v58 = vpop.f32.mrf.mxu0 }
 0x5ee   : > { %v4516_v13 = vpop.f32.mrf.mxu3  ;;  %v4428_v55 = vadd.f32 %v4427_v34, %v4339_v51  ;;  %v4340_v36 = vpop.f32.mrf.mxu1  ;;  %v4252_v2 = vadd.f32 %v4251_v58, %v8043_v6 }
 0x5f0   : > { %v4517_v10 = vadd.f32 %v4516_v13, %v4428_v55  ;;  %v4341_v35 = vadd.f32 %v4340_v36, %v4252_v2 }
 0x5f2   : > { %4566 = vst [vmem:[%s7000_s10 + $0xa0] sm:$0xff] %v4517_v10 }
 0x5f5   : > { %v4429_v20 = vpop.f32.mrf.mxu2  ;;  %v4254_v1 = vpop.f32.mrf.mxu0 }
 0x5f6   : > { %v4518_v49 = vpop.f32.mrf.mxu3  ;;  %v4430_v53 = vadd.f32 %v4429_v20, %v4341_v35  ;;  %v4343_v50 = vpop.f32.mrf.mxu1  ;;  %v4255_v22 = vadd.f32 %v4254_v1, %v8046_v5 }
 0x5f8   : > { %v4519_v46 = vadd.f32 %v4518_v49, %v4430_v53  ;;  %v4344_v24 = vadd.f32 %v4343_v50, %v4255_v22 }
 0x5fa   : > { %4567 = vst [vmem:[%s7000_s10 + $0xa8] sm:$0xff] %v4519_v46 }
 0x5fd   : > { %v4432_v21 = vpop.f32.mrf.mxu2  ;;  %v4256_v27 = vpop.f32.mrf.mxu0 }
 0x5fe   : > { %v4521_v0 = vpop.f32.mrf.mxu3  ;;  %v4433_v54 = vadd.f32 %v4432_v21, %v4344_v24  ;;  %v4345_v39 = vpop.f32.mrf.mxu1  ;;  %v4257_v19 = vadd.f32 %v4256_v27, %v8057_v56 }
 0x600   : > { %v4522_v6 = vadd.f32 %v4521_v0, %v4433_v54  ;;  %v4346_v37 = vadd.f32 %v4345_v39, %v4257_v19 }
 0x602   : > { %4568 = vst [vmem:[%s7000_s10 + $0xb0] sm:$0xff] %v4522_v6 }
 0x605   : > { %v4434_v52 = vpop.f32.mrf.mxu2  ;;  %v4259_v12 = vpop.f32.mrf.mxu0 }
 0x606   : > { %v4523_v26 = vpop.f32.mrf.mxu3  ;;  %v4435_v8 = vadd.f32 %v4434_v52, %v4346_v37  ;;  %v4348_v7 = vpop.f32.mrf.mxu1  ;;  %v4260_v18 = vadd.f32 %v4259_v12, %v8060_v16 }
 0x608   : > { %v4524_v5 = vadd.f32 %v4523_v26, %v4435_v8  ;;  %v4349_v4 = vadd.f32 %v4348_v7, %v4260_v18 }
 0x60a   : > { %4569 = vst [vmem:[%s7000_s10 + $0xb8] sm:$0xff] %v4524_v5 }
 0x60d   : > { %v4437_v14 = vpop.f32.mrf.mxu2  ;;  %v4261_v33 = vpop.f32.mrf.mxu0 }
 0x60e   : > { %v4526_v41 = vpop.f32.mrf.mxu3  ;;  %v4438_v17 = vadd.f32 %v4437_v14, %v4349_v4  ;;  %v4350_v31 = vpop.f32.mrf.mxu1  ;;  %v4262_v44 = vadd.f32 %v4261_v33, %v8071_v15 }
 0x610   : > { %v4527_v56 = vadd.f32 %v4526_v41, %v4438_v17  ;;  %v4351_v38 = vadd.f32 %v4350_v31, %v4262_v44 }
 0x612   : > { %4570 = vst [vmem:[%s7000_s10 + $0xc0] sm:$0xff] %v4527_v56 }
 0x615   : > { %v4439_v30 = vpop.f32.mrf.mxu2  ;;  %v4264_v61 = vpop.f32.mrf.mxu0 }
 0x616   : > { %v4528_v45 = vpop.f32.mrf.mxu3  ;;  %v4440_v60 = vadd.f32 %v4439_v30, %v4351_v38  ;;  %v4353_v47 = vpop.f32.mrf.mxu1  ;;  %v4265_v57 = vadd.f32 %v4264_v61, %v8074_v63 }
 0x618   : > { %v4529_v16 = vadd.f32 %v4528_v45, %v4440_v60  ;;  %v4354_v11 = vadd.f32 %v4353_v47, %v4265_v57 }
 0x61a   : > { %4571 = vst [vmem:[%s7000_s10 + $0xc8] sm:$0xff] %v4529_v16 }
 0x61d   : > { %v4442_v32 = vpop.f32.mrf.mxu2  ;;  %v4266_v40 = vpop.f32.mrf.mxu0 }
 0x61e   : > { %v4531_v29 = vpop.f32.mrf.mxu3  ;;  %v4443_v42 = vadd.f32 %v4442_v32, %v4354_v11  ;;  %v4355_v28 = vpop.f32.mrf.mxu1  ;;  %v4267_v25 = vadd.f32 %v4266_v40, %v8085_v48 }
 0x620   : > { %v4532_v15 = vadd.f32 %v4531_v29, %v4443_v42  ;;  %v4356_v23 = vadd.f32 %v4355_v28, %v4267_v25 }
 0x622   : > { %4572 = vst [vmem:[%s7000_s10 + $0xd0] sm:$0xff] %v4532_v15 }
 0x625   : > { %v4444_v62 = vpop.f32.mrf.mxu2  ;;  %v4269_v13 = vpop.f32.mrf.mxu0 }
 0x626   : > { %v4533_v51 = vpop.f32.mrf.mxu3  ;;  %v4445_v34 = vadd.f32 %v4444_v62, %v4356_v23  ;;  %v4358_v55 = vpop.f32.mrf.mxu1  ;;  %v4270_v58 = vadd.f32 %v4269_v13, %v8088_v9 }
 0x628   : > { %v4534_v63 = vadd.f32 %v4533_v51, %v4445_v34  ;;  %v4359_v36 = vadd.f32 %v4358_v55, %v4270_v58 }
 0x62a   : > { %4573 = vst [vmem:[%s7000_s10 + $0xd8] sm:$0xff] %v4534_v63 }
 0x62d   : > { %v4447_v10 = vpop.f32.mrf.mxu2  ;;  %v4271_v20 = vpop.f32.mrf.mxu0 }
 0x62e   : > { %v4536_v2 = vpop.f32.mrf.mxu3  ;;  %v4448_v35 = vadd.f32 %v4447_v10, %v4359_v36  ;;  %v4360_v49 = vpop.f32.mrf.mxu1  ;;  %v4272_v53 = vadd.f32 %v4271_v20, %v8101_v43 }
 0x630   : > { %v4537_v48 = vadd.f32 %v4536_v2, %v4448_v35  ;;  %v4361_v1 = vadd.f32 %v4360_v49, %v4272_v53 }
 0x632   : > { %4574 = vst [vmem:[%s7000_s10 + $0xe0] sm:$0xff] %v4537_v48 }
 0x635   : > { %v4449_v50 = vpop.f32.mrf.mxu2  ;;  %v4274_v24 = vpop.f32.mrf.mxu0 }
 0x636   : > { %v4538_v46 = vpop.f32.mrf.mxu3  ;;  %v4450_v22 = vadd.f32 %v4449_v50, %v4361_v1  ;;  %v4275_v9 = vadd.f32 %v4274_v24, %v8103_v3  ;;  %v4363_v0 = vpop.f32.mrf.mxu1 }
 0x638   : > { %v4539_v21 = vadd.f32 %v4538_v46, %v4450_v22  ;;  %v4364_v54 = vadd.f32 %v4363_v0, %v4275_v9 }
 0x63a   : > { %4575 = vst [vmem:[%s7000_s10 + $0xe8] sm:$0xff] %v4539_v21 }
 0x63d   : > { %v4452_v27 = vpop.f32.mrf.mxu2  ;;  %v4276_v19 = vpop.f32.mrf.mxu0 }
 0x63e   : > { %v4541_v39 = vpop.f32.mrf.mxu3  ;;  %v4453_v6 = vadd.f32 %v4452_v27, %v4364_v54  ;;  %v4277_v43 = vadd.f32 %v4276_v19, %v8113_v59  ;;  %v4365_v52 = vpop.f32.mrf.mxu1 }
 0x640   : > { %v4542_v37 = vadd.f32 %v4541_v39, %v4453_v6  ;;  %v4366_v26 = vadd.f32 %v4365_v52, %v4277_v43 }
 0x642   : > { %4576 = vst [vmem:[%s7000_s10 + $0xf0] sm:$0xff] %v4542_v37 }
 0x645   : > { %v4454_v8 = vpop.f32.mrf.mxu2 }
 0x646   : > { %v4455_v12 = vadd.f32 %v4454_v8, %v4366_v26  ;;  %v4543_v7 = vpop.f32.mrf.mxu3 }
 0x648   : > { %v4544_v5 = vadd.f32 %v4543_v7, %v4455_v12 }
 0x64a   : > { %4577 = vst [vmem:[%s7000_s10 + $0xf8] sm:$0xff] %v4544_v5 }
 0x64b PF: > { %s15_s22 = sadd.s32 1, %s6922_s22   ;;  %s8256_s18 = smov %s6914_s20 }
 0x64c   : > { %p12_p2 = scmp.ge.s32.totalorder %s15_s22, 10   ;;  %s8257_s19 = smov %s6918_s21 }
 0x64d   : > { %s8258_s20 = smov %s8261_s23  ;;  %s8259_s21 = smov %s8265_s24 }
 0x64e   :  { %14 = sbr.rel (!%p12_p2) target bundleno = 3 (0x3), region = 95 }
 0x653   :  { %4603 = vsyncmov [#allocation4] }
 0x656   :  { %s4604_s10 = vpop.sfrf %4603 }
 0x657   :  { %p6257_p3 = scmp.ne.s32.totalorder %s4604_s10, 0 }
 0x659   :  { %4608 = shalt.err (%p6257_p3)  }
 0x65a   :  { %4610 = vsyncmov [#allocation4 + $0x1] }
 0x65d   :  { %s4611_s28 = vpop.sfrf %4610 }
 0x65e   :  { %p6258_p4 = scmp.ne.s32.totalorder %s4611_s28, 0 }
 0x660   :  { %4615 = shalt.err (%p6258_p4)  }

</bundles_post_ra>
